<compile_context>
chip_gen: v7x
topology: tpu7x:2x2x1
jax: 0.10.0
libtpu: 0.0.40
codegen_flags: <defaults>
</compile_context>

<pallas_src>
import functools
import math

import jax
import jax.numpy as jnp
from jax.experimental import pallas as pl
from jax.experimental.pallas import tpu as pltpu


COMPUTE_DTYPE = jnp.bfloat16          # MXU operand dtype (f32 accumulation)
VMEM_LIMIT = 32 * 1024 * 1024         # safe on v5e/v6e (128 MiB) and v7x (64 MiB)
NEG = -1e30                           # "log zero" that never overflows to -inf


# ----------------------------------------------------------------------------
# Tiled linear kernel: y = act(x @ w + b)
# ----------------------------------------------------------------------------
def _linear_kernel(x_ref, w_ref, b_ref, o_ref, *, activation):
    y = jnp.dot(x_ref[...], w_ref[...], preferred_element_type=jnp.float32)
    y = y + b_ref[...]
    if activation == "tanh":
        y = jnp.tanh(y)
    o_ref[...] = y.astype(o_ref.dtype)


def linear(x, w, b, activation=None, tm=256):
    """x:(M,K) @ w:(K,N) + b:(N,) -> (M,N). M tiled, weights stay resident."""
    M, K = x.shape
    N = w.shape[1]
    if M <= tm:
        tm = M                       # single full block (second-to-last == full dim)
    else:
        tm = max(8, (tm // 8) * 8)   # keep sublane-aligned tiles, ragged tail ok
    grid = (pl.cdiv(M, tm),)
    return pl.pallas_call(
        functools.partial(_linear_kernel, activation=activation),
        out_shape=jax.ShapeDtypeStruct((M, N), jnp.float32),
        grid=grid,
        in_specs=[
            pl.BlockSpec((tm, K), lambda i: (i, 0)),
            pl.BlockSpec((K, N), lambda i: (0, 0)),   # resident weights
            pl.BlockSpec((1, N), lambda i: (0, 0)),
        ],
        out_specs=pl.BlockSpec((tm, N), lambda i: (i, 0)),
        compiler_params=pltpu.CompilerParams(
            dimension_semantics=("parallel",),
            vmem_limit_bytes=VMEM_LIMIT,
        ),
    )(x.astype(COMPUTE_DTYPE), w.astype(COMPUTE_DTYPE),
      b.reshape(1, N).astype(jnp.float32))


# ----------------------------------------------------------------------------
# LSTM recurrence, chunked over time (grid axis "arbitrary", state in scratch)
# ----------------------------------------------------------------------------
def _lstm_kernel(gx_ref, whh_ref, hout_ref, h_scr, c_scr, *, t_chunk):
    @pl.when(pl.program_id(0) == 0)
    def _():
        h_scr[...] = jnp.zeros_like(h_scr)
        c_scr[...] = jnp.zeros_like(c_scr)

    H = h_scr.shape[1]
    # TODO(synk): H=32 gate slices are sub-128-lane; padding H to 128 (or a
    # (4,B,H) gate layout) would remove masked lane work on the serial path.
    for t in range(t_chunk):  # static unroll of a small chunk
        gates = gx_ref[t] + jnp.dot(
            h_scr[...].astype(whh_ref.dtype), whh_ref[...],
            preferred_element_type=jnp.float32)
        # PyTorch LSTM gate order: i, f, g, o
        i_g = jax.nn.sigmoid(gates[:, 0 * H:1 * H])
        f_g = jax.nn.sigmoid(gates[:, 1 * H:2 * H])
        g_g = jnp.tanh(gates[:, 2 * H:3 * H])
        o_g = jax.nn.sigmoid(gates[:, 3 * H:4 * H])
        c = f_g * c_scr[...] + i_g * g_g
        h = o_g * jnp.tanh(c)
        c_scr[...] = c
        h_scr[...] = h
        hout_ref[t] = h.astype(hout_ref.dtype)


def lstm_time_major(gx, whh, t_chunk=16):
    """gx:(T,B,4H) precomputed input gates (x@Wih^T + b), whh:(H,4H) -> h:(T,B,H)."""
    T, B, G = gx.shape
    H = G // 4
    t_chunk = T if T <= t_chunk else t_chunk
    # TODO(synk): fuse the x@W_ih GEMM into this kernel (emit_pipeline) to avoid
    # materializing the 4H-wide gx in HBM.
    return pl.pallas_call(
        functools.partial(_lstm_kernel, t_chunk=t_chunk),
        out_shape=jax.ShapeDtypeStruct((T, B, H), jnp.float32),
        grid=(pl.cdiv(T, t_chunk),),
        in_specs=[
            pl.BlockSpec((t_chunk, B, G), lambda t: (t, 0, 0)),
            pl.BlockSpec((H, G), lambda t: (0, 0)),   # resident recurrent weights
        ],
        out_specs=pl.BlockSpec((t_chunk, B, H), lambda t: (t, 0, 0)),
        scratch_shapes=[
            pltpu.VMEM((B, H), jnp.float32),
            pltpu.VMEM((B, H), jnp.float32),
        ],
        compiler_params=pltpu.CompilerParams(
            dimension_semantics=("arbitrary",),
            vmem_limit_bytes=VMEM_LIMIT,
        ),
    )(gx, whh.astype(COMPUTE_DTYPE))


# ----------------------------------------------------------------------------
# Fused joint network: lin_enc + lin_dec + tanh + lin_out + log_softmax.
# Output last dim padded to a multiple of 128 for lane-dense stores.
# ----------------------------------------------------------------------------
def _joint_kernel(henc_ref, hdec_ref, wenc_ref, benc_ref, wdec_ref,
                  wout_ref, bout_ref, out_ref):
    he = henc_ref[0]                       # (t_tile, E)  bf16
    hd = hdec_ref[0]                       # (U1, D)      bf16
    henc_p = jnp.dot(he, wenc_ref[...],
                     preferred_element_type=jnp.float32) + benc_ref[...]   # (t_tile, J)
    hdec_p = jnp.dot(hd, wdec_ref[...],
                     preferred_element_type=jnp.float32)                   # (U1, J)
    z = jnp.tanh(henc_p[:, None, :] + hdec_p[None, :, :])                  # (t_tile, U1, J)
    tt, u1, j = z.shape
    logits = jnp.dot(z.reshape(tt * u1, j).astype(wout_ref.dtype), wout_ref[...],
                     preferred_element_type=jnp.float32) + bout_ref[...]   # (tt*u1, Vp)
    m = jnp.max(logits, axis=-1, keepdims=True)
    lse = m + jnp.log(jnp.sum(jnp.exp(logits - m), axis=-1, keepdims=True))
    lp = logits - lse
    out_ref[...] = lp.reshape(1, tt, u1, -1)


def joint_logprobs(hs_pad, h_dec, w_enc, b_enc, w_dec, w_out, b_out, t_tile=128):
    """hs_pad:(B,T,E), h_dec:(B,U1,D) -> log-probs (B,T,U1,Vp) with Vp = pad128(V)."""
    B, T, E = hs_pad.shape
    U1, D = h_dec.shape[1], h_dec.shape[2]
    J, V = w_out.shape
    Vp = ((V + 127) // 128) * 128
    # pad vocab lanes: zero weights, -1e30 bias -> exp underflows, softmax exact.
    w_out_p = jnp.zeros((J, Vp), jnp.float32).at[:, :V].set(w_out)
    b_out_p = jnp.full((Vp,), NEG, jnp.float32).at[:V].set(b_out)

    t_tile = T if T <= t_tile else t_tile
    grid = (B, pl.cdiv(T, t_tile))
    return pl.pallas_call(
        _joint_kernel,
        out_shape=jax.ShapeDtypeStruct((B, T, U1, Vp), jnp.float32),
        grid=grid,
        in_specs=[
            pl.BlockSpec((1, t_tile, E), lambda b, t: (b, t, 0)),
            pl.BlockSpec((1, U1, D), lambda b, t: (b, 0, 0)),
            pl.BlockSpec((E, J), lambda b, t: (0, 0)),
            pl.BlockSpec((1, J), lambda b, t: (0, 0)),
            pl.BlockSpec((D, J), lambda b, t: (0, 0)),
            pl.BlockSpec((J, Vp), lambda b, t: (0, 0)),
            pl.BlockSpec((1, Vp), lambda b, t: (0, 0)),
        ],
        out_specs=pl.BlockSpec((1, t_tile, U1, Vp), lambda b, t: (b, t, 0, 0)),
        compiler_params=pltpu.CompilerParams(
            dimension_semantics=("parallel", "parallel"),
            vmem_limit_bytes=VMEM_LIMIT,
        ),
    )(hs_pad.astype(COMPUTE_DTYPE), h_dec.astype(COMPUTE_DTYPE),
      w_enc.astype(COMPUTE_DTYPE), b_enc.reshape(1, J).astype(jnp.float32),
      w_dec.astype(COMPUTE_DTYPE), w_out_p.astype(COMPUTE_DTYPE),
      b_out_p.reshape(1, Vp))


# ----------------------------------------------------------------------------
# RNN-T loss: wavefront (anti-diagonal) log-space forward DP with lax.scan.
# Replaces the warp-transducer CUDA op. O(T+U) sequential steps, vectorized
# over (B, U+1).
# ----------------------------------------------------------------------------
def rnnt_loss(lp, ys, hlens, ylens, blank=0):
    """lp:(B,T,U1,Vp) log-probs, ys:(B,U) labels, hlens/ylens:(B,) -> mean NLL."""
    B, T, U1, _ = lp.shape
    U = U1 - 1
    lpb = lp[:, :, :, blank]                                              # (B,T,U1)
    lpl = jnp.take_along_axis(
        lp[:, :, :U, :], ys[:, None, :, None], axis=3)[..., 0]            # (B,T,U)
    lpl = jnp.concatenate(
        [lpl, jnp.full((B, T, 1), NEG, lp.dtype)], axis=2)                # (B,T,U1)

    u_idx = jnp.arange(U1)

    def diag_gather(arr, t_idx):
        # arr:(B,T,U1), t_idx:(U1,) -> out[b,u] = arr[b, clip(t_idx[u]), u]
        tc = jnp.clip(t_idx, 0, T - 1)
        idx = jnp.broadcast_to(tc[None, None, :], (B, 1, U1))
        return jnp.take_along_axis(arr, idx, axis=1)[:, 0, :]

    # diag d holds alpha[t = d - u, u]; diag 0: only (0,0) is valid.
    diag0 = jnp.full((B, U1), NEG, jnp.float32).at[:, 0].set(0.0)

    def step(prev, d):
        t = d - u_idx                 # target time index per u
        t_src = t - 1                 # source diag index (= d-1-u)
        src_valid = (t_src >= 0) & (t_src <= T - 1)
        tgt_valid = (t >= 0) & (t <= T - 1)
        lpb_g = diag_gather(lpb, t_src)        # blank emitted at (t-1, u)
        lpl_g = diag_gather(lpl, t_src)        # label emitted at (t, u-1); t = t_src[u-1]
        ft = jnp.where(src_valid[None, :], prev + lpb_g, NEG)
        lab = jnp.where(src_valid[None, :], prev + lpl_g, NEG)
        fl = jnp.concatenate([jnp.full((B, 1), NEG, jnp.float32), lab[:, :-1]], axis=1)
        new = jnp.where(tgt_valid[None, :], jnp.logaddexp(ft, fl), NEG)
        return new, new

    n_diag = T + U1 - 1
    _, diags = jax.lax.scan(step, diag0, jnp.arange(1, n_diag))
    all_diags = jnp.concatenate([diag0[None], diags], axis=0)             # (n_diag,B,U1)

    bidx = jnp.arange(B)
    d_fin = hlens - 1 + ylens
    alpha_fin = all_diags[d_fin, bidx, ylens]
    ll = alpha_fin + lpb[bidx, hlens - 1, ylens]
    return -jnp.mean(ll)  # warprnnt RNNTLoss default: mean over batch


# ----------------------------------------------------------------------------
# E2E forward (frontend=None, etype='lstmp', rnnt_mode='rnnt')
# ----------------------------------------------------------------------------
def e2e_forward(params, xs_pad, ilens, ys_pad):
    B, T, idim = xs_pad.shape

    # --- encoder: 1-layer uni-LSTM + linear projection (RNNP 'lstmp') ---
    x_tm = jnp.transpose(xs_pad, (1, 0, 2))                               # (T,B,idim)
    gx = linear(x_tm.reshape(T * B, idim), params["enc_w_ih"], params["enc_b_ih"])
    gx = gx.reshape(T, B, -1)
    h_enc = lstm_time_major(gx, params["enc_w_hh"])                       # (T,B,eunits)
    eunits = h_enc.shape[-1]
    hs = linear(h_enc.reshape(T * B, eunits), params["enc_w_bt"], params["enc_b_bt"])
    # TODO(synk): the (T,B)->(B,T) transposes could be absorbed into the joint
    # kernel's index_map to avoid the extra XLA copies.
    hs_pad = jnp.transpose(hs.reshape(T, B, -1), (1, 0, 2))               # (B,T,eprojs)
    hlens = ilens.astype(jnp.int32)
    mask = (jnp.arange(T)[None, :] < hlens[:, None])[..., None]
    hs_pad = jnp.where(mask, hs_pad, 0.0)                                 # masked_fill in Encoder

    # --- decoder prediction network (embed + 1-layer LSTMCell) ---
    ys_safe = jnp.where(ys_pad < 0, 0, ys_pad)                            # (B,U)
    ylens = jnp.sum(ys_pad >= 0, axis=1).astype(jnp.int32)
    ys_in = jnp.concatenate(
        [jnp.zeros((B, 1), ys_safe.dtype), ys_safe], axis=1)              # blank-prepended (B,U+1)
    eys = jnp.take(params["embed"], ys_in, axis=0)                        # (B,U1,E)
    U1, E = eys.shape[1], eys.shape[2]
    eys_tm = jnp.transpose(eys, (1, 0, 2))                                # (U1,B,E)
    gxd = linear(eys_tm.reshape(U1 * B, E), params["dec_w_ih"], params["dec_b_ih"])
    gxd = gxd.reshape(U1, B, -1)
    h_dec = jnp.transpose(lstm_time_major(gxd, params["dec_w_hh"]), (1, 0, 2))  # (B,U1,dunits)

    # --- fused joint network + log-softmax (Pallas hot path) ---
    lp = joint_logprobs(hs_pad, h_dec,
                        params["w_lin_enc"], params["b_lin_enc"],
                        params["w_lin_dec"],
                        params["w_lin_out"], params["b_lin_out"])

    # --- transducer loss ---
    # TODO(synk): Reporter/cer/wer/beam-search side effects are host-side logging, not implemented.
    return rnnt_loss(lp, ys_safe, hlens, ylens)


# ----------------------------------------------------------------------------
# Deterministic parameter init (chainer-style LeCun normal, biases = 0,
# embedding ~ N(0,1)), mirroring init_like_chainer for rnnt mode.
# ----------------------------------------------------------------------------
def _lecun(key, out_dim, in_dim):
    std = 1.0 / math.sqrt(in_dim)
    return (std * jax.random.normal(key, (out_dim, in_dim), jnp.float32)).T  # stored (in,out)


def init_params(key, idim, odim, eunits, eprojs, dunits, embed_dim, joint_dim):
    ks = jax.random.split(key, 10)
    return {
        # encoder LSTM + projection
        "enc_w_ih": _lecun(ks[0], 4 * eunits, idim),
        "enc_b_ih": jnp.zeros((4 * eunits,), jnp.float32),   # b_ih + b_hh, both zero
        "enc_w_hh": _lecun(ks[1], 4 * eunits, eunits),
        "enc_w_bt": _lecun(ks[2], eprojs, eunits),
        "enc_b_bt": jnp.zeros((eprojs,), jnp.float32),
        # decoder embedding + LSTMCell
        "embed": jax.random.normal(ks[3], (odim, embed_dim), jnp.float32),
        "dec_w_ih": _lecun(ks[4], 4 * dunits, embed_dim),
        "dec_b_ih": jnp.zeros((4 * dunits,), jnp.float32),
        "dec_w_hh": _lecun(ks[5], 4 * dunits, dunits),
        # joint network
        "w_lin_enc": _lecun(ks[6], joint_dim, eprojs),
        "b_lin_enc": jnp.zeros((joint_dim,), jnp.float32),
        "w_lin_dec": _lecun(ks[7], joint_dim, dunits),        # bias=False in espnet
        "w_lin_out": _lecun(ks[8], odim, joint_dim),
        "b_lin_out": jnp.zeros((odim,), jnp.float32),
    }


if __name__ == "__main__":
    # Small shapes consistent with the module's forward(xs_pad, ilens, ys_pad)
    idim, odim = 16, 8
    B, T, Lmax = 2, 8, 4
    eunits = eprojs = dunits = embed_dim = joint_dim = 32

    key = jax.random.PRNGKey(0)
    kx, kp = jax.random.split(key)
    xs_pad = jax.random.normal(kx, (B, T, idim), jnp.float32)
    ilens = jnp.array([8, 6], jnp.int32)
    ys_pad = jnp.array([[1, 3, 5, 2],
                        [4, 6, 2, -1]], jnp.int32)            # -1 = ignore_id padding

    params = init_params(kp, idim, odim, eunits, eprojs, dunits, embed_dim, joint_dim)

    loss = jax.jit(e2e_forward)(params, xs_pad, ilens, ys_pad)
    loss = jax.block_until_ready(loss)
    assert bool(jnp.isfinite(loss)), "loss is not finite"
    print("KERNEL_OK")
</pallas_src>

<mosaic_0001>
module attributes {stable_mosaic.version = 11 : i64} {
  func.func @_linear_kernel(%arg0: i32, %arg1: memref<16x32xbf16, #tpu.memory_space<vmem>>, %arg2: memref<32x32xbf16, #tpu.memory_space<vmem>>, %arg3: memref<1x32xf32, #tpu.memory_space<vmem>>, %arg4: memref<16x32xf32, #tpu.memory_space<vmem>>) attributes {dimension_semantics = [#tpu.dimension_semantics<parallel>], iteration_bounds = array<i64: 1>, scalar_prefetch = 0 : i64, scratch_operands = 0 : i64, tpu.core_type = #tpu.core_type<tc>, window_params = [{transform_indices = @transform_0, window_bounds = array<i64: 16, 32>}, {pipeline_mode = #tpu.pipeline_mode<synchronous>, transform_indices = @transform_1, window_bounds = array<i64: 32, 32>}, {pipeline_mode = #tpu.pipeline_mode<synchronous>, transform_indices = @transform_2, window_bounds = array<i64: 1, 32>}, {transform_indices = @transform_3, window_bounds = array<i64: 16, 32>}]} {
    %c0 = arith.constant 0 : index
    %c0_0 = arith.constant 0 : index
    %0 = vector.load %arg1[%c0, %c0_0] : memref<16x32xbf16, #tpu.memory_space<vmem>>, vector<16x32xbf16>
    %c0_1 = arith.constant 0 : index
    %c0_2 = arith.constant 0 : index
    %1 = vector.load %arg2[%c0_1, %c0_2] : memref<32x32xbf16, #tpu.memory_space<vmem>>, vector<32x32xbf16>
    %cst = arith.constant dense<0.000000e+00> : vector<16x32xf32>
    %2 = tpu.matmul %0, %1, %cst {dimension_numbers = #tpu.dot_dimension_numbers<[1], [0], [0], [1], [0, 0, 1, 1], [], []>} : vector<16x32xbf16>, vector<32x32xbf16>, vector<16x32xf32> -> vector<16x32xf32>
    %c0_3 = arith.constant 0 : index
    %c0_4 = arith.constant 0 : index
    %3 = vector.load %arg3[%c0_3, %c0_4] : memref<1x32xf32, #tpu.memory_space<vmem>>, vector<1x32xf32>
    %4 = vector.broadcast %3 : vector<1x32xf32> to vector<16x32xf32>
    %5 = arith.addf %2, %4 : vector<16x32xf32>
    %c0_5 = arith.constant 0 : index
    %c0_6 = arith.constant 0 : index
    %6 = vector.load %arg4[%c0_5, %c0_6] : memref<16x32xf32, #tpu.memory_space<vmem>>, vector<16x32xf32>
    tpu.vector_store %arg4[%c0_5, %c0_6], %5 {strides = array<i32>} : memref<16x32xf32, #tpu.memory_space<vmem>>, vector<16x32xf32>,
    return
  }
  func.func @transform_0(%arg0: i32) -> (i32, i32) {
    %c0_i32 = arith.constant 0 : i32
    %c0_i32_0 = arith.constant 0 : i32
    return %arg0, %c0_i32 : i32, i32
  }
  func.func @transform_1(%arg0: i32) -> (i32, i32) {
    %c0_i32 = arith.constant 0 : i32
    %c0_i32_0 = arith.constant 0 : i32
    %c0_i32_1 = arith.constant 0 : i32
    return %c0_i32, %c0_i32_0 : i32, i32
  }
  func.func @transform_2(%arg0: i32) -> (i32, i32) {
    %c0_i32 = arith.constant 0 : i32
    %c0_i32_0 = arith.constant 0 : i32
    %c0_i32_1 = arith.constant 0 : i32
    return %c0_i32, %c0_i32_0 : i32, i32
  }
  func.func @transform_3(%arg0: i32) -> (i32, i32) {
    %c0_i32 = arith.constant 0 : i32
    %c0_i32_0 = arith.constant 0 : i32
    return %arg0, %c0_i32 : i32, i32
  }
}

module attributes {stable_mosaic.version = 11 : i64} {
  func.func @_linear_kernel(%arg0: i32, %arg1: memref<16x16xbf16, #tpu.memory_space<vmem>>, %arg2: memref<16x128xbf16, #tpu.memory_space<vmem>>, %arg3: memref<1x128xf32, #tpu.memory_space<vmem>>, %arg4: memref<16x128xf32, #tpu.memory_space<vmem>>) attributes {dimension_semantics = [#tpu.dimension_semantics<parallel>], iteration_bounds = array<i64: 1>, scalar_prefetch = 0 : i64, scratch_operands = 0 : i64, tpu.core_type = #tpu.core_type<tc>, window_params = [{transform_indices = @transform_0, window_bounds = array<i64: 16, 16>}, {pipeline_mode = #tpu.pipeline_mode<synchronous>, transform_indices = @transform_1, window_bounds = array<i64: 16, 128>}, {pipeline_mode = #tpu.pipeline_mode<synchronous>, transform_indices = @transform_2, window_bounds = array<i64: 1, 128>}, {transform_indices = @transform_3, window_bounds = array<i64: 16, 128>}]} {
    %c0 = arith.constant 0 : index
    %c0_0 = arith.constant 0 : index
    %0 = vector.load %arg1[%c0, %c0_0] : memref<16x16xbf16, #tpu.memory_space<vmem>>, vector<16x16xbf16>
    %c0_1 = arith.constant 0 : index
    %c0_2 = arith.constant 0 : index
    %1 = vector.load %arg2[%c0_1, %c0_2] : memref<16x128xbf16, #tpu.memory_space<vmem>>, vector<16x128xbf16>
    %cst = arith.constant dense<0.000000e+00> : vector<16x128xf32>
    %2 = tpu.matmul %0, %1, %cst {dimension_numbers = #tpu.dot_dimension_numbers<[1], [0], [0], [1], [0, 0, 1, 1], [], []>} : vector<16x16xbf16>, vector<16x128xbf16>, vector<16x128xf32> -> vector<16x128xf32>
    %c0_3 = arith.constant 0 : index
    %c0_4 = arith.constant 0 : index
    %3 = vector.load %arg3[%c0_3, %c0_4] : memref<1x128xf32, #tpu.memory_space<vmem>>, vector<1x128xf32>
    %4 = vector.broadcast %3 : vector<1x128xf32> to vector<16x128xf32>
    %5 = arith.addf %2, %4 : vector<16x128xf32>
    %c0_5 = arith.constant 0 : index
    %c0_6 = arith.constant 0 : index
    %6 = vector.load %arg4[%c0_5, %c0_6] : memref<16x128xf32, #tpu.memory_space<vmem>>, vector<16x128xf32>
    tpu.vector_store %arg4[%c0_5, %c0_6], %5 {strides = array<i32>} : memref<16x128xf32, #tpu.memory_space<vmem>>, vector<16x128xf32>,
    return
  }
  func.func @transform_0(%arg0: i32) -> (i32, i32) {
    %c0_i32 = arith.constant 0 : i32
    %c0_i32_0 = arith.constant 0 : i32
    return %arg0, %c0_i32 : i32, i32
  }
  func.func @transform_1(%arg0: i32) -> (i32, i32) {
    %c0_i32 = arith.constant 0 : i32
    %c0_i32_0 = arith.constant 0 : i32
    %c0_i32_1 = arith.constant 0 : i32
    return %c0_i32, %c0_i32_0 : i32, i32
  }
  func.func @transform_2(%arg0: i32) -> (i32, i32) {
    %c0_i32 = arith.constant 0 : i32
    %c0_i32_0 = arith.constant 0 : i32
    %c0_i32_1 = arith.constant 0 : i32
    return %c0_i32, %c0_i32_0 : i32, i32
  }
  func.func @transform_3(%arg0: i32) -> (i32, i32) {
    %c0_i32 = arith.constant 0 : i32
    %c0_i32_0 = arith.constant 0 : i32
    return %arg0, %c0_i32 : i32, i32
  }
}

module attributes {stable_mosaic.version = 11 : i64} {
  func.func @_lstm_kernel(%arg0: i32, %arg1: memref<8x2x128xf32, #tpu.memory_space<vmem>>, %arg2: memref<32x128xbf16, #tpu.memory_space<vmem>>, %arg3: memref<8x2x32xf32, #tpu.memory_space<vmem>>, %arg4: memref<2x32xf32, #tpu.memory_space<vmem>>, %arg5: memref<2x32xf32, #tpu.memory_space<vmem>>) attributes {dimension_semantics = [#tpu.dimension_semantics<arbitrary>], iteration_bounds = array<i64: 1>, scalar_prefetch = 0 : i64, scratch_operands = 2 : i64, tpu.core_type = #tpu.core_type<tc>, window_params = [{transform_indices = @transform_0, window_bounds = array<i64: 8, 2, 128>}, {pipeline_mode = #tpu.pipeline_mode<synchronous>, transform_indices = @transform_1, window_bounds = array<i64: 32, 128>}, {transform_indices = @transform_2, window_bounds = array<i64: 8, 2, 32>}]} {
    %c0_i32 = arith.constant 0 : i32
    %0 = arith.cmpi eq, %arg0, %c0_i32 : i32
    %1 = arith.extui %0 : i1 to i32
    %c0_i32_0 = arith.constant 0 : i32
    %2 = arith.cmpi ne, %1, %c0_i32_0 : i32
    scf.if %2 {
      %cst_152 = arith.constant 0.000000e+00 : f32
      %307 = vector.broadcast %cst_152 : f32 to vector<2x32xf32>
      %c0_153 = arith.constant 0 : index
      %c0_154 = arith.constant 0 : index
      %308 = vector.load %arg4[%c0_153, %c0_154] : memref<2x32xf32, #tpu.memory_space<vmem>>, vector<2x32xf32>
      tpu.vector_store %arg4[%c0_153, %c0_154], %307 {strides = array<i32>} : memref<2x32xf32, #tpu.memory_space<vmem>>, vector<2x32xf32>,
      %cst_155 = arith.constant 0.000000e+00 : f32
      %309 = vector.broadcast %cst_155 : f32 to vector<2x32xf32>
      %c0_156 = arith.constant 0 : index
      %c0_157 = arith.constant 0 : index
      %310 = vector.load %arg5[%c0_156, %c0_157] : memref<2x32xf32, #tpu.memory_space<vmem>>, vector<2x32xf32>
      tpu.vector_store %arg5[%c0_156, %c0_157], %309 {strides = array<i32>} : memref<2x32xf32, #tpu.memory_space<vmem>>, vector<2x32xf32>,
    } else {
    }
    %c0 = arith.constant 0 : index
    %c0_1 = arith.constant 0 : index
    %c0_2 = arith.constant 0 : index
    %3 = vector.load %arg1[%c0, %c0_1, %c0_2] : memref<8x2x128xf32, #tpu.memory_space<vmem>>, vector<1x2x128xf32>
    %4 = vector.shape_cast %3 : vector<1x2x128xf32> to vector<2x128xf32>
    %c0_3 = arith.constant 0 : index
    %c0_4 = arith.constant 0 : index
    %5 = vector.load %arg4[%c0_3, %c0_4] : memref<2x32xf32, #tpu.memory_space<vmem>>, vector<2x32xf32>
    %6 = arith.truncf %5 : vector<2x32xf32> to vector<2x32xbf16>
    %c0_5 = arith.constant 0 : index
    %c0_6 = arith.constant 0 : index
    %7 = vector.load %arg2[%c0_5, %c0_6] : memref<32x128xbf16, #tpu.memory_space<vmem>>, vector<32x128xbf16>
    %cst = arith.constant dense<0.000000e+00> : vector<2x128xf32>
    %8 = tpu.matmul %6, %7, %cst {dimension_numbers = #tpu.dot_dimension_numbers<[1], [0], [0], [1], [0, 0, 1, 1], [], []>} : vector<2x32xbf16>, vector<32x128xbf16>, vector<2x128xf32> -> vector<2x128xf32>
    %9 = arith.addf %4, %8 : vector<2x128xf32>
    %10 = vector.extract_strided_slice %9 {offsets = [0, 0], sizes = [2, 32], strides = [1, 1]} : vector<2x128xf32> to vector<2x32xf32>
    %11 = arith.negf %10 : vector<2x32xf32>
    %12 = math.exp %11 : vector<2x32xf32>
    %cst_7 = arith.constant 1.000000e+00 : f32
    %13 = vector.broadcast %cst_7 : f32 to vector<2x32xf32>
    %14 = arith.addf %13, %12 : vector<2x32xf32>
    %15 = arith.divf %13, %14 : vector<2x32xf32>
    %16 = vector.extract_strided_slice %9 {offsets = [0, 32], sizes = [2, 32], strides = [1, 1]} : vector<2x128xf32> to vector<2x32xf32>
    %17 = arith.negf %16 : vector<2x32xf32>
    %18 = math.exp %17 : vector<2x32xf32>
    %cst_8 = arith.constant 1.000000e+00 : f32
    %19 = vector.broadcast %cst_8 : f32 to vector<2x32xf32>
    %20 = arith.addf %19, %18 : vector<2x32xf32>
    %21 = arith.divf %19, %20 : vector<2x32xf32>
    %22 = vector.extract_strided_slice %9 {offsets = [0, 64], sizes = [2, 32], strides = [1, 1]} : vector<2x128xf32> to vector<2x32xf32>
    %23 = math.tanh %22 : vector<2x32xf32>
    %24 = vector.extract_strided_slice %9 {offsets = [0, 96], sizes = [2, 32], strides = [1, 1]} : vector<2x128xf32> to vector<2x32xf32>
    %25 = arith.negf %24 : vector<2x32xf32>
    %26 = math.exp %25 : vector<2x32xf32>
    %cst_9 = arith.constant 1.000000e+00 : f32
    %27 = vector.broadcast %cst_9 : f32 to vector<2x32xf32>
    %28 = arith.addf %27, %26 : vector<2x32xf32>
    %29 = arith.divf %27, %28 : vector<2x32xf32>
    %c0_10 = arith.constant 0 : index
    %c0_11 = arith.constant 0 : index
    %30 = vector.load %arg5[%c0_10, %c0_11] : memref<2x32xf32, #tpu.memory_space<vmem>>, vector<2x32xf32>
    %31 = arith.mulf %21, %30 : vector<2x32xf32>
    %32 = arith.mulf %15, %23 : vector<2x32xf32>
    %33 = arith.addf %31, %32 : vector<2x32xf32>
    %34 = math.tanh %33 : vector<2x32xf32>
    %35 = arith.mulf %29, %34 : vector<2x32xf32>
    %c0_12 = arith.constant 0 : index
    %c0_13 = arith.constant 0 : index
    %36 = vector.load %arg5[%c0_12, %c0_13] : memref<2x32xf32, #tpu.memory_space<vmem>>, vector<2x32xf32>
    tpu.vector_store %arg5[%c0_12, %c0_13], %33 {strides = array<i32>} : memref<2x32xf32, #tpu.memory_space<vmem>>, vector<2x32xf32>,
    %c0_14 = arith.constant 0 : index
    %c0_15 = arith.constant 0 : index
    %37 = vector.load %arg4[%c0_14, %c0_15] : memref<2x32xf32, #tpu.memory_space<vmem>>, vector<2x32xf32>
    tpu.vector_store %arg4[%c0_14, %c0_15], %35 {strides = array<i32>} : memref<2x32xf32, #tpu.memory_space<vmem>>, vector<2x32xf32>,
    %c0_16 = arith.constant 0 : index
    %c0_17 = arith.constant 0 : index
    %c0_18 = arith.constant 0 : index
    %38 = vector.load %arg3[%c0_16, %c0_17, %c0_18] : memref<8x2x32xf32, #tpu.memory_space<vmem>>, vector<1x2x32xf32>
    %39 = vector.shape_cast %38 : vector<1x2x32xf32> to vector<2x32xf32>
    %40 = vector.shape_cast %35 : vector<2x32xf32> to vector<1x2x32xf32>
    tpu.vector_store %arg3[%c0_16, %c0_17, %c0_18], %40 {strides = array<i32>} : memref<8x2x32xf32, #tpu.memory_space<vmem>>, vector<1x2x32xf32>,
    %c1 = arith.constant 1 : index
    %c0_19 = arith.constant 0 : index
    %c0_20 = arith.constant 0 : index
    %41 = vector.load %arg1[%c1, %c0_19, %c0_20] : memref<8x2x128xf32, #tpu.memory_space<vmem>>, vector<1x2x128xf32>
    %42 = vector.shape_cast %41 : vector<1x2x128xf32> to vector<2x128xf32>
    %c0_21 = arith.constant 0 : index
    %c0_22 = arith.constant 0 : index
    %43 = vector.load %arg4[%c0_21, %c0_22] : memref<2x32xf32, #tpu.memory_space<vmem>>, vector<2x32xf32>
    %44 = arith.truncf %43 : vector<2x32xf32> to vector<2x32xbf16>
    %c0_23 = arith.constant 0 : index
    %c0_24 = arith.constant 0 : index
    %45 = vector.load %arg2[%c0_23, %c0_24] : memref<32x128xbf16, #tpu.memory_space<vmem>>, vector<32x128xbf16>
    %cst_25 = arith.constant dense<0.000000e+00> : vector<2x128xf32>
    %46 = tpu.matmul %44, %45, %cst_25 {dimension_numbers = #tpu.dot_dimension_numbers<[1], [0], [0], [1], [0, 0, 1, 1], [], []>} : vector<2x32xbf16>, vector<32x128xbf16>, vector<2x128xf32> -> vector<2x128xf32>
    %47 = arith.addf %42, %46 : vector<2x128xf32>
    %48 = vector.extract_strided_slice %47 {offsets = [0, 0], sizes = [2, 32], strides = [1, 1]} : vector<2x128xf32> to vector<2x32xf32>
    %49 = arith.negf %48 : vector<2x32xf32>
    %50 = math.exp %49 : vector<2x32xf32>
    %cst_26 = arith.constant 1.000000e+00 : f32
    %51 = vector.broadcast %cst_26 : f32 to vector<2x32xf32>
    %52 = arith.addf %51, %50 : vector<2x32xf32>
    %53 = arith.divf %51, %52 : vector<2x32xf32>
    %54 = vector.extract_strided_slice %47 {offsets = [0, 32], sizes = [2, 32], strides = [1, 1]} : vector<2x128xf32> to vector<2x32xf32>
    %55 = arith.negf %54 : vector<2x32xf32>
    %56 = math.exp %55 : vector<2x32xf32>
    %cst_27 = arith.constant 1.000000e+00 : f32
    %57 = vector.broadcast %cst_27 : f32 to vector<2x32xf32>
    %58 = arith.addf %57, %56 : vector<2x32xf32>
    %59 = arith.divf %57, %58 : vector<2x32xf32>
    %60 = vector.extract_strided_slice %47 {offsets = [0, 64], sizes = [2, 32], strides = [1, 1]} : vector<2x128xf32> to vector<2x32xf32>
    %61 = math.tanh %60 : vector<2x32xf32>
    %62 = vector.extract_strided_slice %47 {offsets = [0, 96], sizes = [2, 32], strides = [1, 1]} : vector<2x128xf32> to vector<2x32xf32>
    %63 = arith.negf %62 : vector<2x32xf32>
    %64 = math.exp %63 : vector<2x32xf32>
    %cst_28 = arith.constant 1.000000e+00 : f32
    %65 = vector.broadcast %cst_28 : f32 to vector<2x32xf32>
    %66 = arith.addf %65, %64 : vector<2x32xf32>
    %67 = arith.divf %65, %66 : vector<2x32xf32>
    %c0_29 = arith.constant 0 : index
    %c0_30 = arith.constant 0 : index
    %68 = vector.load %arg5[%c0_29, %c0_30] : memref<2x32xf32, #tpu.memory_space<vmem>>, vector<2x32xf32>
    %69 = arith.mulf %59, %68 : vector<2x32xf32>
    %70 = arith.mulf %53, %61 : vector<2x32xf32>
    %71 = arith.addf %69, %70 : vector<2x32xf32>
    %72 = math.tanh %71 : vector<2x32xf32>
    %73 = arith.mulf %67, %72 : vector<2x32xf32>
    %c0_31 = arith.constant 0 : index
    %c0_32 = arith.constant 0 : index
    %74 = vector.load %arg5[%c0_31, %c0_32] : memref<2x32xf32, #tpu.memory_space<vmem>>, vector<2x32xf32>
    tpu.vector_store %arg5[%c0_31, %c0_32], %71 {strides = array<i32>} : memref<2x32xf32, #tpu.memory_space<vmem>>, vector<2x32xf32>,
    %c0_33 = arith.constant 0 : index
    %c0_34 = arith.constant 0 : index
    %75 = vector.load %arg4[%c0_33, %c0_34] : memref<2x32xf32, #tpu.memory_space<vmem>>, vector<2x32xf32>
    tpu.vector_store %arg4[%c0_33, %c0_34], %73 {strides = array<i32>} : memref<2x32xf32, #tpu.memory_space<vmem>>, vector<2x32xf32>,
    %c1_35 = arith.constant 1 : index
    %c0_36 = arith.constant 0 : index
    %c0_37 = arith.constant 0 : index
    %76 = vector.load %arg3[%c1_35, %c0_36, %c0_37] : memref<8x2x32xf32, #tpu.memory_space<vmem>>, vector<1x2x32xf32>
    %77 = vector.shape_cast %76 : vector<1x2x32xf32> to vector<2x32xf32>
    %78 = vector.shape_cast %73 : vector<2x32xf32> to vector<1x2x32xf32>
    tpu.vector_store %arg3[%c1_35, %c0_36, %c0_37], %78 {strides = array<i32>} : memref<8x2x32xf32, #tpu.memory_space<vmem>>, vector<1x2x32xf32>,
    %c2 = arith.constant 2 : index
    %c0_38 = arith.constant 0 : index
    %c0_39 = arith.constant 0 : index
    %79 = vector.load %arg1[%c2, %c0_38, %c0_39] : memref<8x2x128xf32, #tpu.memory_space<vmem>>, vector<1x2x128xf32>
    %80 = vector.shape_cast %79 : vector<1x2x128xf32> to vector<2x128xf32>
    %c0_40 = arith.constant 0 : index
    %c0_41 = arith.constant 0 : index
    %81 = vector.load %arg4[%c0_40, %c0_41] : memref<2x32xf32, #tpu.memory_space<vmem>>, vector<2x32xf32>
    %82 = arith.truncf %81 : vector<2x32xf32> to vector<2x32xbf16>
    %c0_42 = arith.constant 0 : index
    %c0_43 = arith.constant 0 : index
    %83 = vector.load %arg2[%c0_42, %c0_43] : memref<32x128xbf16, #tpu.memory_space<vmem>>, vector<32x128xbf16>
    %cst_44 = arith.constant dense<0.000000e+00> : vector<2x128xf32>
    %84 = tpu.matmul %82, %83, %cst_44 {dimension_numbers = #tpu.dot_dimension_numbers<[1], [0], [0], [1], [0, 0, 1, 1], [], []>} : vector<2x32xbf16>, vector<32x128xbf16>, vector<2x128xf32> -> vector<2x128xf32>
    %85 = arith.addf %80, %84 : vector<2x128xf32>
    %86 = vector.extract_strided_slice %85 {offsets = [0, 0], sizes = [2, 32], strides = [1, 1]} : vector<2x128xf32> to vector<2x32xf32>
    %87 = arith.negf %86 : vector<2x32xf32>
    %88 = math.exp %87 : vector<2x32xf32>
    %cst_45 = arith.constant 1.000000e+00 : f32
    %89 = vector.broadcast %cst_45 : f32 to vector<2x32xf32>
    %90 = arith.addf %89, %88 : vector<2x32xf32>
    %91 = arith.divf %89, %90 : vector<2x32xf32>
    %92 = vector.extract_strided_slice %85 {offsets = [0, 32], sizes = [2, 32], strides = [1, 1]} : vector<2x128xf32> to vector<2x32xf32>
    %93 = arith.negf %92 : vector<2x32xf32>
    %94 = math.exp %93 : vector<2x32xf32>
    %cst_46 = arith.constant 1.000000e+00 : f32
    %95 = vector.broadcast %cst_46 : f32 to vector<2x32xf32>
    %96 = arith.addf %95, %94 : vector<2x32xf32>
    %97 = arith.divf %95, %96 : vector<2x32xf32>
    %98 = vector.extract_strided_slice %85 {offsets = [0, 64], sizes = [2, 32], strides = [1, 1]} : vector<2x128xf32> to vector<2x32xf32>
    %99 = math.tanh %98 : vector<2x32xf32>
    %100 = vector.extract_strided_slice %85 {offsets = [0, 96], sizes = [2, 32], strides = [1, 1]} : vector<2x128xf32> to vector<2x32xf32>
    %101 = arith.negf %100 : vector<2x32xf32>
    %102 = math.exp %101 : vector<2x32xf32>
    %cst_47 = arith.constant 1.000000e+00 : f32
    %103 = vector.broadcast %cst_47 : f32 to vector<2x32xf32>
    %104 = arith.addf %103, %102 : vector<2x32xf32>
    %105 = arith.divf %103, %104 : vector<2x32xf32>
    %c0_48 = arith.constant 0 : index
    %c0_49 = arith.constant 0 : index
    %106 = vector.load %arg5[%c0_48, %c0_49] : memref<2x32xf32, #tpu.memory_space<vmem>>, vector<2x32xf32>
    %107 = arith.mulf %97, %106 : vector<2x32xf32>
    %108 = arith.mulf %91, %99 : vector<2x32xf32>
    %109 = arith.addf %107, %108 : vector<2x32xf32>
    %110 = math.tanh %109 : vector<2x32xf32>
    %111 = arith.mulf %105, %110 : vector<2x32xf32>
    %c0_50 = arith.constant 0 : index
    %c0_51 = arith.constant 0 : index
    %112 = vector.load %arg5[%c0_50, %c0_51] : memref<2x32xf32, #tpu.memory_space<vmem>>, vector<2x32xf32>
    tpu.vector_store %arg5[%c0_50, %c0_51], %109 {strides = array<i32>} : memref<2x32xf32, #tpu.memory_space<vmem>>, vector<2x32xf32>,
    %c0_52 = arith.constant 0 : index
    %c0_53 = arith.constant 0 : index
    %113 = vector.load %arg4[%c0_52, %c0_53] : memref<2x32xf32, #tpu.memory_space<vmem>>, vector<2x32xf32>
    tpu.vector_store %arg4[%c0_52, %c0_53], %111 {strides = array<i32>} : memref<2x32xf32, #tpu.memory_space<vmem>>, vector<2x32xf32>,
    %c2_54 = arith.constant 2 : index
    %c0_55 = arith.constant 0 : index
    %c0_56 = arith.constant 0 : index
    %114 = vector.load %arg3[%c2_54, %c0_55, %c0_56] : memref<8x2x32xf32, #tpu.memory_space<vmem>>, vector<1x2x32xf32>
    %115 = vector.shape_cast %114 : vector<1x2x32xf32> to vector<2x32xf32>
    %116 = vector.shape_cast %111 : vector<2x32xf32> to vector<1x2x32xf32>
    tpu.vector_store %arg3[%c2_54, %c0_55, %c0_56], %116 {strides = array<i32>} : memref<8x2x32xf32, #tpu.memory_space<vmem>>, vector<1x2x32xf32>,
    %c3 = arith.constant 3 : index
    %c0_57 = arith.constant 0 : index
    %c0_58 = arith.constant 0 : index
    %117 = vector.load %arg1[%c3, %c0_57, %c0_58] : memref<8x2x128xf32, #tpu.memory_space<vmem>>, vector<1x2x128xf32>
    %118 = vector.shape_cast %117 : vector<1x2x128xf32> to vector<2x128xf32>
    %c0_59 = arith.constant 0 : index
    %c0_60 = arith.constant 0 : index
    %119 = vector.load %arg4[%c0_59, %c0_60] : memref<2x32xf32, #tpu.memory_space<vmem>>, vector<2x32xf32>
    %120 = arith.truncf %119 : vector<2x32xf32> to vector<2x32xbf16>
    %c0_61 = arith.constant 0 : index
    %c0_62 = arith.constant 0 : index
    %121 = vector.load %arg2[%c0_61, %c0_62] : memref<32x128xbf16, #tpu.memory_space<vmem>>, vector<32x128xbf16>
    %cst_63 = arith.constant dense<0.000000e+00> : vector<2x128xf32>
    %122 = tpu.matmul %120, %121, %cst_63 {dimension_numbers = #tpu.dot_dimension_numbers<[1], [0], [0], [1], [0, 0, 1, 1], [], []>} : vector<2x32xbf16>, vector<32x128xbf16>, vector<2x128xf32> -> vector<2x128xf32>
    %123 = arith.addf %118, %122 : vector<2x128xf32>
    %124 = vector.extract_strided_slice %123 {offsets = [0, 0], sizes = [2, 32], strides = [1, 1]} : vector<2x128xf32> to vector<2x32xf32>
    %125 = arith.negf %124 : vector<2x32xf32>
    %126 = math.exp %125 : vector<2x32xf32>
    %cst_64 = arith.constant 1.000000e+00 : f32
    %127 = vector.broadcast %cst_64 : f32 to vector<2x32xf32>
    %128 = arith.addf %127, %126 : vector<2x32xf32>
    %129 = arith.divf %127, %128 : vector<2x32xf32>
    %130 = vector.extract_strided_slice %123 {offsets = [0, 32], sizes = [2, 32], strides = [1, 1]} : vector<2x128xf32> to vector<2x32xf32>
    %131 = arith.negf %130 : vector<2x32xf32>
    %132 = math.exp %131 : vector<2x32xf32>
    %cst_65 = arith.constant 1.000000e+00 : f32
    %133 = vector.broadcast %cst_65 : f32 to vector<2x32xf32>
    %134 = arith.addf %133, %132 : vector<2x32xf32>
    %135 = arith.divf %133, %134 : vector<2x32xf32>
    %136 = vector.extract_strided_slice %123 {offsets = [0, 64], sizes = [2, 32], strides = [1, 1]} : vector<2x128xf32> to vector<2x32xf32>
    %137 = math.tanh %136 : vector<2x32xf32>
    %138 = vector.extract_strided_slice %123 {offsets = [0, 96], sizes = [2, 32], strides = [1, 1]} : vector<2x128xf32> to vector<2x32xf32>
    %139 = arith.negf %138 : vector<2x32xf32>
    %140 = math.exp %139 : vector<2x32xf32>
    %cst_66 = arith.constant 1.000000e+00 : f32
    %141 = vector.broadcast %cst_66 : f32 to vector<2x32xf32>
    %142 = arith.addf %141, %140 : vector<2x32xf32>
    %143 = arith.divf %141, %142 : vector<2x32xf32>
    %c0_67 = arith.constant 0 : index
    %c0_68 = arith.constant 0 : index
    %144 = vector.load %arg5[%c0_67, %c0_68] : memref<2x32xf32, #tpu.memory_space<vmem>>, vector<2x32xf32>
    %145 = arith.mulf %135, %144 : vector<2x32xf32>
    %146 = arith.mulf %129, %137 : vector<2x32xf32>
    %147 = arith.addf %145, %146 : vector<2x32xf32>
    %148 = math.tanh %147 : vector<2x32xf32>
    %149 = arith.mulf %143, %148 : vector<2x32xf32>
    %c0_69 = arith.constant 0 : index
    %c0_70 = arith.constant 0 : index
    %150 = vector.load %arg5[%c0_69, %c0_70] : memref<2x32xf32, #tpu.memory_space<vmem>>, vector<2x32xf32>
    tpu.vector_store %arg5[%c0_69, %c0_70], %147 {strides = array<i32>} : memref<2x32xf32, #tpu.memory_space<vmem>>, vector<2x32xf32>,
    %c0_71 = arith.constant 0 : index
    %c0_72 = arith.constant 0 : index
    %151 = vector.load %arg4[%c0_71, %c0_72] : memref<2x32xf32, #tpu.memory_space<vmem>>, vector<2x32xf32>
    tpu.vector_store %arg4[%c0_71, %c0_72], %149 {strides = array<i32>} : memref<2x32xf32, #tpu.memory_space<vmem>>, vector<2x32xf32>,
    %c3_73 = arith.constant 3 : index
    %c0_74 = arith.constant 0 : index
    %c0_75 = arith.constant 0 : index
    %152 = vector.load %arg3[%c3_73, %c0_74, %c0_75] : memref<8x2x32xf32, #tpu.memory_space<vmem>>, vector<1x2x32xf32>
    %153 = vector.shape_cast %152 : vector<1x2x32xf32> to vector<2x32xf32>
    %154 = vector.shape_cast %149 : vector<2x32xf32> to vector<1x2x32xf32>
    tpu.vector_store %arg3[%c3_73, %c0_74, %c0_75], %154 {strides = array<i32>} : memref<8x2x32xf32, #tpu.memory_space<vmem>>, vector<1x2x32xf32>,
    %c4 = arith.constant 4 : index
    %c0_76 = arith.constant 0 : index
    %c0_77 = arith.constant 0 : index
    %155 = vector.load %arg1[%c4, %c0_76, %c0_77] : memref<8x2x128xf32, #tpu.memory_space<vmem>>, vector<1x2x128xf32>
    %156 = vector.shape_cast %155 : vector<1x2x128xf32> to vector<2x128xf32>
    %c0_78 = arith.constant 0 : index
    %c0_79 = arith.constant 0 : index
    %157 = vector.load %arg4[%c0_78, %c0_79] : memref<2x32xf32, #tpu.memory_space<vmem>>, vector<2x32xf32>
    %158 = arith.truncf %157 : vector<2x32xf32> to vector<2x32xbf16>
    %c0_80 = arith.constant 0 : index
    %c0_81 = arith.constant 0 : index
    %159 = vector.load %arg2[%c0_80, %c0_81] : memref<32x128xbf16, #tpu.memory_space<vmem>>, vector<32x128xbf16>
    %cst_82 = arith.constant dense<0.000000e+00> : vector<2x128xf32>
    %160 = tpu.matmul %158, %159, %cst_82 {dimension_numbers = #tpu.dot_dimension_numbers<[1], [0], [0], [1], [0, 0, 1, 1], [], []>} : vector<2x32xbf16>, vector<32x128xbf16>, vector<2x128xf32> -> vector<2x128xf32>
    %161 = arith.addf %156, %160 : vector<2x128xf32>
    %162 = vector.extract_strided_slice %161 {offsets = [0, 0], sizes = [2, 32], strides = [1, 1]} : vector<2x128xf32> to vector<2x32xf32>
    %163 = arith.negf %162 : vector<2x32xf32>
    %164 = math.exp %163 : vector<2x32xf32>
    %cst_83 = arith.constant 1.000000e+00 : f32
    %165 = vector.broadcast %cst_83 : f32 to vector<2x32xf32>
    %166 = arith.addf %165, %164 : vector<2x32xf32>
    %167 = arith.divf %165, %166 : vector<2x32xf32>
    %168 = vector.extract_strided_slice %161 {offsets = [0, 32], sizes = [2, 32], strides = [1, 1]} : vector<2x128xf32> to vector<2x32xf32>
    %169 = arith.negf %168 : vector<2x32xf32>
    %170 = math.exp %169 : vector<2x32xf32>
    %cst_84 = arith.constant 1.000000e+00 : f32
    %171 = vector.broadcast %cst_84 : f32 to vector<2x32xf32>
    %172 = arith.addf %171, %170 : vector<2x32xf32>
    %173 = arith.divf %171, %172 : vector<2x32xf32>
    %174 = vector.extract_strided_slice %161 {offsets = [0, 64], sizes = [2, 32], strides = [1, 1]} : vector<2x128xf32> to vector<2x32xf32>
    %175 = math.tanh %174 : vector<2x32xf32>
    %176 = vector.extract_strided_slice %161 {offsets = [0, 96], sizes = [2, 32], strides = [1, 1]} : vector<2x128xf32> to vector<2x32xf32>
    %177 = arith.negf %176 : vector<2x32xf32>
    %178 = math.exp %177 : vector<2x32xf32>
    %cst_85 = arith.constant 1.000000e+00 : f32
    %179 = vector.broadcast %cst_85 : f32 to vector<2x32xf32>
    %180 = arith.addf %179, %178 : vector<2x32xf32>
    %181 = arith.divf %179, %180 : vector<2x32xf32>
    %c0_86 = arith.constant 0 : index
    %c0_87 = arith.constant 0 : index
    %182 = vector.load %arg5[%c0_86, %c0_87] : memref<2x32xf32, #tpu.memory_space<vmem>>, vector<2x32xf32>
    %183 = arith.mulf %173, %182 : vector<2x32xf32>
    %184 = arith.mulf %167, %175 : vector<2x32xf32>
    %185 = arith.addf %183, %184 : vector<2x32xf32>
    %186 = math.tanh %185 : vector<2x32xf32>
    %187 = arith.mulf %181, %186 : vector<2x32xf32>
    %c0_88 = arith.constant 0 : index
    %c0_89 = arith.constant 0 : index
    %188 = vector.load %arg5[%c0_88, %c0_89] : memref<2x32xf32, #tpu.memory_space<vmem>>, vector<2x32xf32>
    tpu.vector_store %arg5[%c0_88, %c0_89], %185 {strides = array<i32>} : memref<2x32xf32, #tpu.memory_space<vmem>>, vector<2x32xf32>,
    %c0_90 = arith.constant 0 : index
    %c0_91 = arith.constant 0 : index
    %189 = vector.load %arg4[%c0_90, %c0_91] : memref<2x32xf32, #tpu.memory_space<vmem>>, vector<2x32xf32>
    tpu.vector_store %arg4[%c0_90, %c0_91], %187 {strides = array<i32>} : memref<2x32xf32, #tpu.memory_space<vmem>>, vector<2x32xf32>,
    %c4_92 = arith.constant 4 : index
    %c0_93 = arith.constant 0 : index
    %c0_94 = arith.constant 0 : index
    %190 = vector.load %arg3[%c4_92, %c0_93, %c0_94] : memref<8x2x32xf32, #tpu.memory_space<vmem>>, vector<1x2x32xf32>
    %191 = vector.shape_cast %190 : vector<1x2x32xf32> to vector<2x32xf32>
    %192 = vector.shape_cast %187 : vector<2x32xf32> to vector<1x2x32xf32>
    tpu.vector_store %arg3[%c4_92, %c0_93, %c0_94], %192 {strides = array<i32>} : memref<8x2x32xf32, #tpu.memory_space<vmem>>, vector<1x2x32xf32>,
    %c5 = arith.constant 5 : index
    %c0_95 = arith.constant 0 : index
    %c0_96 = arith.constant 0 : index
    %193 = vector.load %arg1[%c5, %c0_95, %c0_96] : memref<8x2x128xf32, #tpu.memory_space<vmem>>, vector<1x2x128xf32>
    %194 = vector.shape_cast %193 : vector<1x2x128xf32> to vector<2x128xf32>
    %c0_97 = arith.constant 0 : index
    %c0_98 = arith.constant 0 : index
    %195 = vector.load %arg4[%c0_97, %c0_98] : memref<2x32xf32, #tpu.memory_space<vmem>>, vector<2x32xf32>
    %196 = arith.truncf %195 : vector<2x32xf32> to vector<2x32xbf16>
    %c0_99 = arith.constant 0 : index
    %c0_100 = arith.constant 0 : index
    %197 = vector.load %arg2[%c0_99, %c0_100] : memref<32x128xbf16, #tpu.memory_space<vmem>>, vector<32x128xbf16>
    %cst_101 = arith.constant dense<0.000000e+00> : vector<2x128xf32>
    %198 = tpu.matmul %196, %197, %cst_101 {dimension_numbers = #tpu.dot_dimension_numbers<[1], [0], [0], [1], [0, 0, 1, 1], [], []>} : vector<2x32xbf16>, vector<32x128xbf16>, vector<2x128xf32> -> vector<2x128xf32>
    %199 = arith.addf %194, %198 : vector<2x128xf32>
    %200 = vector.extract_strided_slice %199 {offsets = [0, 0], sizes = [2, 32], strides = [1, 1]} : vector<2x128xf32> to vector<2x32xf32>
    %201 = arith.negf %200 : vector<2x32xf32>
    %202 = math.exp %201 : vector<2x32xf32>
    %cst_102 = arith.constant 1.000000e+00 : f32
    %203 = vector.broadcast %cst_102 : f32 to vector<2x32xf32>
    %204 = arith.addf %203, %202 : vector<2x32xf32>
    %205 = arith.divf %203, %204 : vector<2x32xf32>
    %206 = vector.extract_strided_slice %199 {offsets = [0, 32], sizes = [2, 32], strides = [1, 1]} : vector<2x128xf32> to vector<2x32xf32>
    %207 = arith.negf %206 : vector<2x32xf32>
    %208 = math.exp %207 : vector<2x32xf32>
    %cst_103 = arith.constant 1.000000e+00 : f32
    %209 = vector.broadcast %cst_103 : f32 to vector<2x32xf32>
    %210 = arith.addf %209, %208 : vector<2x32xf32>
    %211 = arith.divf %209, %210 : vector<2x32xf32>
    %212 = vector.extract_strided_slice %199 {offsets = [0, 64], sizes = [2, 32], strides = [1, 1]} : vector<2x128xf32> to vector<2x32xf32>
    %213 = math.tanh %212 : vector<2x32xf32>
    %214 = vector.extract_strided_slice %199 {offsets = [0, 96], sizes = [2, 32], strides = [1, 1]} : vector<2x128xf32> to vector<2x32xf32>
    %215 = arith.negf %214 : vector<2x32xf32>
    %216 = math.exp %215 : vector<2x32xf32>
    %cst_104 = arith.constant 1.000000e+00 : f32
    %217 = vector.broadcast %cst_104 : f32 to vector<2x32xf32>
    %218 = arith.addf %217, %216 : vector<2x32xf32>
    %219 = arith.divf %217, %218 : vector<2x32xf32>
    %c0_105 = arith.constant 0 : index
    %c0_106 = arith.constant 0 : index
    %220 = vector.load %arg5[%c0_105, %c0_106] : memref<2x32xf32, #tpu.memory_space<vmem>>, vector<2x32xf32>
    %221 = arith.mulf %211, %220 : vector<2x32xf32>
    %222 = arith.mulf %205, %213 : vector<2x32xf32>
    %223 = arith.addf %221, %222 : vector<2x32xf32>
    %224 = math.tanh %223 : vector<2x32xf32>
    %225 = arith.mulf %219, %224 : vector<2x32xf32>
    %c0_107 = arith.constant 0 : index
    %c0_108 = arith.constant 0 : index
    %226 = vector.load %arg5[%c0_107, %c0_108] : memref<2x32xf32, #tpu.memory_space<vmem>>, vector<2x32xf32>
    tpu.vector_store %arg5[%c0_107, %c0_108], %223 {strides = array<i32>} : memref<2x32xf32, #tpu.memory_space<vmem>>, vector<2x32xf32>,
    %c0_109 = arith.constant 0 : index
    %c0_110 = arith.constant 0 : index
    %227 = vector.load %arg4[%c0_109, %c0_110] : memref<2x32xf32, #tpu.memory_space<vmem>>, vector<2x32xf32>
    tpu.vector_store %arg4[%c0_109, %c0_110], %225 {strides = array<i32>} : memref<2x32xf32, #tpu.memory_space<vmem>>, vector<2x32xf32>,
    %c5_111 = arith.constant 5 : index
    %c0_112 = arith.constant 0 : index
    %c0_113 = arith.constant 0 : index
    %228 = vector.load %arg3[%c5_111, %c0_112, %c0_113] : memref<8x2x32xf32, #tpu.memory_space<vmem>>, vector<1x2x32xf32>
    %229 = vector.shape_cast %228 : vector<1x2x32xf32> to vector<2x32xf32>
    %230 = vector.shape_cast %225 : vector<2x32xf32> to vector<1x2x32xf32>
    tpu.vector_store %arg3[%c5_111, %c0_112, %c0_113], %230 {strides = array<i32>} : memref<8x2x32xf32, #tpu.memory_space<vmem>>, vector<1x2x32xf32>,
    %c6 = arith.constant 6 : index
    %c0_114 = arith.constant 0 : index
    %c0_115 = arith.constant 0 : index
    %231 = vector.load %arg1[%c6, %c0_114, %c0_115] : memref<8x2x128xf32, #tpu.memory_space<vmem>>, vector<1x2x128xf32>
    %232 = vector.shape_cast %231 : vector<1x2x128xf32> to vector<2x128xf32>
    %c0_116 = arith.constant 0 : index
    %c0_117 = arith.constant 0 : index
    %233 = vector.load %arg4[%c0_116, %c0_117] : memref<2x32xf32, #tpu.memory_space<vmem>>, vector<2x32xf32>
    %234 = arith.truncf %233 : vector<2x32xf32> to vector<2x32xbf16>
    %c0_118 = arith.constant 0 : index
    %c0_119 = arith.constant 0 : index
    %235 = vector.load %arg2[%c0_118, %c0_119] : memref<32x128xbf16, #tpu.memory_space<vmem>>, vector<32x128xbf16>
    %cst_120 = arith.constant dense<0.000000e+00> : vector<2x128xf32>
    %236 = tpu.matmul %234, %235, %cst_120 {dimension_numbers = #tpu.dot_dimension_numbers<[1], [0], [0], [1], [0, 0, 1, 1], [], []>} : vector<2x32xbf16>, vector<32x128xbf16>, vector<2x128xf32> -> vector<2x128xf32>
    %237 = arith.addf %232, %236 : vector<2x128xf32>
    %238 = vector.extract_strided_slice %237 {offsets = [0, 0], sizes = [2, 32], strides = [1, 1]} : vector<2x128xf32> to vector<2x32xf32>
    %239 = arith.negf %238 : vector<2x32xf32>
    %240 = math.exp %239 : vector<2x32xf32>
    %cst_121 = arith.constant 1.000000e+00 : f32
    %241 = vector.broadcast %cst_121 : f32 to vector<2x32xf32>
    %242 = arith.addf %241, %240 : vector<2x32xf32>
    %243 = arith.divf %241, %242 : vector<2x32xf32>
    %244 = vector.extract_strided_slice %237 {offsets = [0, 32], sizes = [2, 32], strides = [1, 1]} : vector<2x128xf32> to vector<2x32xf32>
    %245 = arith.negf %244 : vector<2x32xf32>
    %246 = math.exp %245 : vector<2x32xf32>
    %cst_122 = arith.constant 1.000000e+00 : f32
    %247 = vector.broadcast %cst_122 : f32 to vector<2x32xf32>
    %248 = arith.addf %247, %246 : vector<2x32xf32>
    %249 = arith.divf %247, %248 : vector<2x32xf32>
    %250 = vector.extract_strided_slice %237 {offsets = [0, 64], sizes = [2, 32], strides = [1, 1]} : vector<2x128xf32> to vector<2x32xf32>
    %251 = math.tanh %250 : vector<2x32xf32>
    %252 = vector.extract_strided_slice %237 {offsets = [0, 96], sizes = [2, 32], strides = [1, 1]} : vector<2x128xf32> to vector<2x32xf32>
    %253 = arith.negf %252 : vector<2x32xf32>
    %254 = math.exp %253 : vector<2x32xf32>
    %cst_123 = arith.constant 1.000000e+00 : f32
    %255 = vector.broadcast %cst_123 : f32 to vector<2x32xf32>
    %256 = arith.addf %255, %254 : vector<2x32xf32>
    %257 = arith.divf %255, %256 : vector<2x32xf32>
    %c0_124 = arith.constant 0 : index
    %c0_125 = arith.constant 0 : index
    %258 = vector.load %arg5[%c0_124, %c0_125] : memref<2x32xf32, #tpu.memory_space<vmem>>, vector<2x32xf32>
    %259 = arith.mulf %249, %258 : vector<2x32xf32>
    %260 = arith.mulf %243, %251 : vector<2x32xf32>
    %261 = arith.addf %259, %260 : vector<2x32xf32>
    %262 = math.tanh %261 : vector<2x32xf32>
    %263 = arith.mulf %257, %262 : vector<2x32xf32>
    %c0_126 = arith.constant 0 : index
    %c0_127 = arith.constant 0 : index
    %264 = vector.load %arg5[%c0_126, %c0_127] : memref<2x32xf32, #tpu.memory_space<vmem>>, vector<2x32xf32>
    tpu.vector_store %arg5[%c0_126, %c0_127], %261 {strides = array<i32>} : memref<2x32xf32, #tpu.memory_space<vmem>>, vector<2x32xf32>,
    %c0_128 = arith.constant 0 : index
    %c0_129 = arith.constant 0 : index
    %265 = vector.load %arg4[%c0_128, %c0_129] : memref<2x32xf32, #tpu.memory_space<vmem>>, vector<2x32xf32>
    tpu.vector_store %arg4[%c0_128, %c0_129], %263 {strides = array<i32>} : memref<2x32xf32, #tpu.memory_space<vmem>>, vector<2x32xf32>,
    %c6_130 = arith.constant 6 : index
    %c0_131 = arith.constant 0 : index
    %c0_132 = arith.constant 0 : index
    %266 = vector.load %arg3[%c6_130, %c0_131, %c0_132] : memref<8x2x32xf32, #tpu.memory_space<vmem>>, vector<1x2x32xf32>
    %267 = vector.shape_cast %266 : vector<1x2x32xf32> to vector<2x32xf32>
    %268 = vector.shape_cast %263 : vector<2x32xf32> to vector<1x2x32xf32>
    tpu.vector_store %arg3[%c6_130, %c0_131, %c0_132], %268 {strides = array<i32>} : memref<8x2x32xf32, #tpu.memory_space<vmem>>, vector<1x2x32xf32>,
    %c7 = arith.constant 7 : index
    %c0_133 = arith.constant 0 : index
    %c0_134 = arith.constant 0 : index
    %269 = vector.load %arg1[%c7, %c0_133, %c0_134] : memref<8x2x128xf32, #tpu.memory_space<vmem>>, vector<1x2x128xf32>
    %270 = vector.shape_cast %269 : vector<1x2x128xf32> to vector<2x128xf32>
    %c0_135 = arith.constant 0 : index
    %c0_136 = arith.constant 0 : index
    %271 = vector.load %arg4[%c0_135, %c0_136] : memref<2x32xf32, #tpu.memory_space<vmem>>, vector<2x32xf32>
    %272 = arith.truncf %271 : vector<2x32xf32> to vector<2x32xbf16>
    %c0_137 = arith.constant 0 : index
    %c0_138 = arith.constant 0 : index
    %273 = vector.load %arg2[%c0_137, %c0_138] : memref<32x128xbf16, #tpu.memory_space<vmem>>, vector<32x128xbf16>
    %cst_139 = arith.constant dense<0.000000e+00> : vector<2x128xf32>
    %274 = tpu.matmul %272, %273, %cst_139 {dimension_numbers = #tpu.dot_dimension_numbers<[1], [0], [0], [1], [0, 0, 1, 1], [], []>} : vector<2x32xbf16>, vector<32x128xbf16>, vector<2x128xf32> -> vector<2x128xf32>
    %275 = arith.addf %270, %274 : vector<2x128xf32>
    %276 = vector.extract_strided_slice %275 {offsets = [0, 0], sizes = [2, 32], strides = [1, 1]} : vector<2x128xf32> to vector<2x32xf32>
    %277 = arith.negf %276 : vector<2x32xf32>
    %278 = math.exp %277 : vector<2x32xf32>
    %cst_140 = arith.constant 1.000000e+00 : f32
    %279 = vector.broadcast %cst_140 : f32 to vector<2x32xf32>
    %280 = arith.addf %279, %278 : vector<2x32xf32>
    %281 = arith.divf %279, %280 : vector<2x32xf32>
    %282 = vector.extract_strided_slice %275 {offsets = [0, 32], sizes = [2, 32], strides = [1, 1]} : vector<2x128xf32> to vector<2x32xf32>
    %283 = arith.negf %282 : vector<2x32xf32>
    %284 = math.exp %283 : vector<2x32xf32>
    %cst_141 = arith.constant 1.000000e+00 : f32
    %285 = vector.broadcast %cst_141 : f32 to vector<2x32xf32>
    %286 = arith.addf %285, %284 : vector<2x32xf32>
    %287 = arith.divf %285, %286 : vector<2x32xf32>
    %288 = vector.extract_strided_slice %275 {offsets = [0, 64], sizes = [2, 32], strides = [1, 1]} : vector<2x128xf32> to vector<2x32xf32>
    %289 = math.tanh %288 : vector<2x32xf32>
    %290 = vector.extract_strided_slice %275 {offsets = [0, 96], sizes = [2, 32], strides = [1, 1]} : vector<2x128xf32> to vector<2x32xf32>
    %291 = arith.negf %290 : vector<2x32xf32>
    %292 = math.exp %291 : vector<2x32xf32>
    %cst_142 = arith.constant 1.000000e+00 : f32
    %293 = vector.broadcast %cst_142 : f32 to vector<2x32xf32>
    %294 = arith.addf %293, %292 : vector<2x32xf32>
    %295 = arith.divf %293, %294 : vector<2x32xf32>
    %c0_143 = arith.constant 0 : index
    %c0_144 = arith.constant 0 : index
    %296 = vector.load %arg5[%c0_143, %c0_144] : memref<2x32xf32, #tpu.memory_space<vmem>>, vector<2x32xf32>
    %297 = arith.mulf %287, %296 : vector<2x32xf32>
    %298 = arith.mulf %281, %289 : vector<2x32xf32>
    %299 = arith.addf %297, %298 : vector<2x32xf32>
    %300 = math.tanh %299 : vector<2x32xf32>
    %301 = arith.mulf %295, %300 : vector<2x32xf32>
    %c0_145 = arith.constant 0 : index
    %c0_146 = arith.constant 0 : index
    %302 = vector.load %arg5[%c0_145, %c0_146] : memref<2x32xf32, #tpu.memory_space<vmem>>, vector<2x32xf32>
    tpu.vector_store %arg5[%c0_145, %c0_146], %299 {strides = array<i32>} : memref<2x32xf32, #tpu.memory_space<vmem>>, vector<2x32xf32>,
    %c0_147 = arith.constant 0 : index
    %c0_148 = arith.constant 0 : index
    %303 = vector.load %arg4[%c0_147, %c0_148] : memref<2x32xf32, #tpu.memory_space<vmem>>, vector<2x32xf32>
    tpu.vector_store %arg4[%c0_147, %c0_148], %301 {strides = array<i32>} : memref<2x32xf32, #tpu.memory_space<vmem>>, vector<2x32xf32>,
    %c7_149 = arith.constant 7 : index
    %c0_150 = arith.constant 0 : index
    %c0_151 = arith.constant 0 : index
    %304 = vector.load %arg3[%c7_149, %c0_150, %c0_151] : memref<8x2x32xf32, #tpu.memory_space<vmem>>, vector<1x2x32xf32>
    %305 = vector.shape_cast %304 : vector<1x2x32xf32> to vector<2x32xf32>
    %306 = vector.shape_cast %301 : vector<2x32xf32> to vector<1x2x32xf32>
    tpu.vector_store %arg3[%c7_149, %c0_150, %c0_151], %306 {strides = array<i32>} : memref<8x2x32xf32, #tpu.memory_space<vmem>>, vector<1x2x32xf32>,
    return
  }
  func.func @transform_0(%arg0: i32) -> (i32, i32, i32) {
    %c0_i32 = arith.constant 0 : i32
    %c0_i32_0 = arith.constant 0 : i32
    %c0_i32_1 = arith.constant 0 : i32
    return %arg0, %c0_i32, %c0_i32_0 : i32, i32, i32
  }
  func.func @transform_1(%arg0: i32) -> (i32, i32) {
    %c0_i32 = arith.constant 0 : i32
    %c0_i32_0 = arith.constant 0 : i32
    %c0_i32_1 = arith.constant 0 : i32
    return %c0_i32, %c0_i32_0 : i32, i32
  }
  func.func @transform_2(%arg0: i32) -> (i32, i32, i32) {
    %c0_i32 = arith.constant 0 : i32
    %c0_i32_0 = arith.constant 0 : i32
    %c0_i32_1 = arith.constant 0 : i32
    return %arg0, %c0_i32, %c0_i32_0 : i32, i32, i32
  }
}

module attributes {stable_mosaic.version = 11 : i64} {
  func.func @_lstm_kernel(%arg0: i32, %arg1: memref<5x2x128xf32, #tpu.memory_space<vmem>>, %arg2: memref<32x128xbf16, #tpu.memory_space<vmem>>, %arg3: memref<5x2x32xf32, #tpu.memory_space<vmem>>, %arg4: memref<2x32xf32, #tpu.memory_space<vmem>>, %arg5: memref<2x32xf32, #tpu.memory_space<vmem>>) attributes {dimension_semantics = [#tpu.dimension_semantics<arbitrary>], iteration_bounds = array<i64: 1>, scalar_prefetch = 0 : i64, scratch_operands = 2 : i64, tpu.core_type = #tpu.core_type<tc>, window_params = [{transform_indices = @transform_0, window_bounds = array<i64: 5, 2, 128>}, {pipeline_mode = #tpu.pipeline_mode<synchronous>, transform_indices = @transform_1, window_bounds = array<i64: 32, 128>}, {transform_indices = @transform_2, window_bounds = array<i64: 5, 2, 32>}]} {
    %c0_i32 = arith.constant 0 : i32
    %0 = arith.cmpi eq, %arg0, %c0_i32 : i32
    %1 = arith.extui %0 : i1 to i32
    %c0_i32_0 = arith.constant 0 : i32
    %2 = arith.cmpi ne, %1, %c0_i32_0 : i32
    scf.if %2 {
      %cst_95 = arith.constant 0.000000e+00 : f32
      %193 = vector.broadcast %cst_95 : f32 to vector<2x32xf32>
      %c0_96 = arith.constant 0 : index
      %c0_97 = arith.constant 0 : index
      %194 = vector.load %arg4[%c0_96, %c0_97] : memref<2x32xf32, #tpu.memory_space<vmem>>, vector<2x32xf32>
      tpu.vector_store %arg4[%c0_96, %c0_97], %193 {strides = array<i32>} : memref<2x32xf32, #tpu.memory_space<vmem>>, vector<2x32xf32>,
      %cst_98 = arith.constant 0.000000e+00 : f32
      %195 = vector.broadcast %cst_98 : f32 to vector<2x32xf32>
      %c0_99 = arith.constant 0 : index
      %c0_100 = arith.constant 0 : index
      %196 = vector.load %arg5[%c0_99, %c0_100] : memref<2x32xf32, #tpu.memory_space<vmem>>, vector<2x32xf32>
      tpu.vector_store %arg5[%c0_99, %c0_100], %195 {strides = array<i32>} : memref<2x32xf32, #tpu.memory_space<vmem>>, vector<2x32xf32>,
    } else {
    }
    %c0 = arith.constant 0 : index
    %c0_1 = arith.constant 0 : index
    %c0_2 = arith.constant 0 : index
    %3 = vector.load %arg1[%c0, %c0_1, %c0_2] : memref<5x2x128xf32, #tpu.memory_space<vmem>>, vector<1x2x128xf32>
    %4 = vector.shape_cast %3 : vector<1x2x128xf32> to vector<2x128xf32>
    %c0_3 = arith.constant 0 : index
    %c0_4 = arith.constant 0 : index
    %5 = vector.load %arg4[%c0_3, %c0_4] : memref<2x32xf32, #tpu.memory_space<vmem>>, vector<2x32xf32>
    %6 = arith.truncf %5 : vector<2x32xf32> to vector<2x32xbf16>
    %c0_5 = arith.constant 0 : index
    %c0_6 = arith.constant 0 : index
    %7 = vector.load %arg2[%c0_5, %c0_6] : memref<32x128xbf16, #tpu.memory_space<vmem>>, vector<32x128xbf16>
    %cst = arith.constant dense<0.000000e+00> : vector<2x128xf32>
    %8 = tpu.matmul %6, %7, %cst {dimension_numbers = #tpu.dot_dimension_numbers<[1], [0], [0], [1], [0, 0, 1, 1], [], []>} : vector<2x32xbf16>, vector<32x128xbf16>, vector<2x128xf32> -> vector<2x128xf32>
    %9 = arith.addf %4, %8 : vector<2x128xf32>
    %10 = vector.extract_strided_slice %9 {offsets = [0, 0], sizes = [2, 32], strides = [1, 1]} : vector<2x128xf32> to vector<2x32xf32>
    %11 = arith.negf %10 : vector<2x32xf32>
    %12 = math.exp %11 : vector<2x32xf32>
    %cst_7 = arith.constant 1.000000e+00 : f32
    %13 = vector.broadcast %cst_7 : f32 to vector<2x32xf32>
    %14 = arith.addf %13, %12 : vector<2x32xf32>
    %15 = arith.divf %13, %14 : vector<2x32xf32>
    %16 = vector.extract_strided_slice %9 {offsets = [0, 32], sizes = [2, 32], strides = [1, 1]} : vector<2x128xf32> to vector<2x32xf32>
    %17 = arith.negf %16 : vector<2x32xf32>
    %18 = math.exp %17 : vector<2x32xf32>
    %cst_8 = arith.constant 1.000000e+00 : f32
    %19 = vector.broadcast %cst_8 : f32 to vector<2x32xf32>
    %20 = arith.addf %19, %18 : vector<2x32xf32>
    %21 = arith.divf %19, %20 : vector<2x32xf32>
    %22 = vector.extract_strided_slice %9 {offsets = [0, 64], sizes = [2, 32], strides = [1, 1]} : vector<2x128xf32> to vector<2x32xf32>
    %23 = math.tanh %22 : vector<2x32xf32>
    %24 = vector.extract_strided_slice %9 {offsets = [0, 96], sizes = [2, 32], strides = [1, 1]} : vector<2x128xf32> to vector<2x32xf32>
    %25 = arith.negf %24 : vector<2x32xf32>
    %26 = math.exp %25 : vector<2x32xf32>
    %cst_9 = arith.constant 1.000000e+00 : f32
    %27 = vector.broadcast %cst_9 : f32 to vector<2x32xf32>
    %28 = arith.addf %27, %26 : vector<2x32xf32>
    %29 = arith.divf %27, %28 : vector<2x32xf32>
    %c0_10 = arith.constant 0 : index
    %c0_11 = arith.constant 0 : index
    %30 = vector.load %arg5[%c0_10, %c0_11] : memref<2x32xf32, #tpu.memory_space<vmem>>, vector<2x32xf32>
    %31 = arith.mulf %21, %30 : vector<2x32xf32>
    %32 = arith.mulf %15, %23 : vector<2x32xf32>
    %33 = arith.addf %31, %32 : vector<2x32xf32>
    %34 = math.tanh %33 : vector<2x32xf32>
    %35 = arith.mulf %29, %34 : vector<2x32xf32>
    %c0_12 = arith.constant 0 : index
    %c0_13 = arith.constant 0 : index
    %36 = vector.load %arg5[%c0_12, %c0_13] : memref<2x32xf32, #tpu.memory_space<vmem>>, vector<2x32xf32>
    tpu.vector_store %arg5[%c0_12, %c0_13], %33 {strides = array<i32>} : memref<2x32xf32, #tpu.memory_space<vmem>>, vector<2x32xf32>,
    %c0_14 = arith.constant 0 : index
    %c0_15 = arith.constant 0 : index
    %37 = vector.load %arg4[%c0_14, %c0_15] : memref<2x32xf32, #tpu.memory_space<vmem>>, vector<2x32xf32>
    tpu.vector_store %arg4[%c0_14, %c0_15], %35 {strides = array<i32>} : memref<2x32xf32, #tpu.memory_space<vmem>>, vector<2x32xf32>,
    %c0_16 = arith.constant 0 : index
    %c0_17 = arith.constant 0 : index
    %c0_18 = arith.constant 0 : index
    %38 = vector.load %arg3[%c0_16, %c0_17, %c0_18] : memref<5x2x32xf32, #tpu.memory_space<vmem>>, vector<1x2x32xf32>
    %39 = vector.shape_cast %38 : vector<1x2x32xf32> to vector<2x32xf32>
    %40 = vector.shape_cast %35 : vector<2x32xf32> to vector<1x2x32xf32>
    tpu.vector_store %arg3[%c0_16, %c0_17, %c0_18], %40 {strides = array<i32>} : memref<5x2x32xf32, #tpu.memory_space<vmem>>, vector<1x2x32xf32>,
    %c1 = arith.constant 1 : index
    %c0_19 = arith.constant 0 : index
    %c0_20 = arith.constant 0 : index
    %41 = vector.load %arg1[%c1, %c0_19, %c0_20] : memref<5x2x128xf32, #tpu.memory_space<vmem>>, vector<1x2x128xf32>
    %42 = vector.shape_cast %41 : vector<1x2x128xf32> to vector<2x128xf32>
    %c0_21 = arith.constant 0 : index
    %c0_22 = arith.constant 0 : index
    %43 = vector.load %arg4[%c0_21, %c0_22] : memref<2x32xf32, #tpu.memory_space<vmem>>, vector<2x32xf32>
    %44 = arith.truncf %43 : vector<2x32xf32> to vector<2x32xbf16>
    %c0_23 = arith.constant 0 : index
    %c0_24 = arith.constant 0 : index
    %45 = vector.load %arg2[%c0_23, %c0_24] : memref<32x128xbf16, #tpu.memory_space<vmem>>, vector<32x128xbf16>
    %cst_25 = arith.constant dense<0.000000e+00> : vector<2x128xf32>
    %46 = tpu.matmul %44, %45, %cst_25 {dimension_numbers = #tpu.dot_dimension_numbers<[1], [0], [0], [1], [0, 0, 1, 1], [], []>} : vector<2x32xbf16>, vector<32x128xbf16>, vector<2x128xf32> -> vector<2x128xf32>
    %47 = arith.addf %42, %46 : vector<2x128xf32>
    %48 = vector.extract_strided_slice %47 {offsets = [0, 0], sizes = [2, 32], strides = [1, 1]} : vector<2x128xf32> to vector<2x32xf32>
    %49 = arith.negf %48 : vector<2x32xf32>
    %50 = math.exp %49 : vector<2x32xf32>
    %cst_26 = arith.constant 1.000000e+00 : f32
    %51 = vector.broadcast %cst_26 : f32 to vector<2x32xf32>
    %52 = arith.addf %51, %50 : vector<2x32xf32>
    %53 = arith.divf %51, %52 : vector<2x32xf32>
    %54 = vector.extract_strided_slice %47 {offsets = [0, 32], sizes = [2, 32], strides = [1, 1]} : vector<2x128xf32> to vector<2x32xf32>
    %55 = arith.negf %54 : vector<2x32xf32>
    %56 = math.exp %55 : vector<2x32xf32>
    %cst_27 = arith.constant 1.000000e+00 : f32
    %57 = vector.broadcast %cst_27 : f32 to vector<2x32xf32>
    %58 = arith.addf %57, %56 : vector<2x32xf32>
    %59 = arith.divf %57, %58 : vector<2x32xf32>
    %60 = vector.extract_strided_slice %47 {offsets = [0, 64], sizes = [2, 32], strides = [1, 1]} : vector<2x128xf32> to vector<2x32xf32>
    %61 = math.tanh %60 : vector<2x32xf32>
    %62 = vector.extract_strided_slice %47 {offsets = [0, 96], sizes = [2, 32], strides = [1, 1]} : vector<2x128xf32> to vector<2x32xf32>
    %63 = arith.negf %62 : vector<2x32xf32>
    %64 = math.exp %63 : vector<2x32xf32>
    %cst_28 = arith.constant 1.000000e+00 : f32
    %65 = vector.broadcast %cst_28 : f32 to vector<2x32xf32>
    %66 = arith.addf %65, %64 : vector<2x32xf32>
    %67 = arith.divf %65, %66 : vector<2x32xf32>
    %c0_29 = arith.constant 0 : index
    %c0_30 = arith.constant 0 : index
    %68 = vector.load %arg5[%c0_29, %c0_30] : memref<2x32xf32, #tpu.memory_space<vmem>>, vector<2x32xf32>
    %69 = arith.mulf %59, %68 : vector<2x32xf32>
    %70 = arith.mulf %53, %61 : vector<2x32xf32>
    %71 = arith.addf %69, %70 : vector<2x32xf32>
    %72 = math.tanh %71 : vector<2x32xf32>
    %73 = arith.mulf %67, %72 : vector<2x32xf32>
    %c0_31 = arith.constant 0 : index
    %c0_32 = arith.constant 0 : index
    %74 = vector.load %arg5[%c0_31, %c0_32] : memref<2x32xf32, #tpu.memory_space<vmem>>, vector<2x32xf32>
    tpu.vector_store %arg5[%c0_31, %c0_32], %71 {strides = array<i32>} : memref<2x32xf32, #tpu.memory_space<vmem>>, vector<2x32xf32>,
    %c0_33 = arith.constant 0 : index
    %c0_34 = arith.constant 0 : index
    %75 = vector.load %arg4[%c0_33, %c0_34] : memref<2x32xf32, #tpu.memory_space<vmem>>, vector<2x32xf32>
    tpu.vector_store %arg4[%c0_33, %c0_34], %73 {strides = array<i32>} : memref<2x32xf32, #tpu.memory_space<vmem>>, vector<2x32xf32>,
    %c1_35 = arith.constant 1 : index
    %c0_36 = arith.constant 0 : index
    %c0_37 = arith.constant 0 : index
    %76 = vector.load %arg3[%c1_35, %c0_36, %c0_37] : memref<5x2x32xf32, #tpu.memory_space<vmem>>, vector<1x2x32xf32>
    %77 = vector.shape_cast %76 : vector<1x2x32xf32> to vector<2x32xf32>
    %78 = vector.shape_cast %73 : vector<2x32xf32> to vector<1x2x32xf32>
    tpu.vector_store %arg3[%c1_35, %c0_36, %c0_37], %78 {strides = array<i32>} : memref<5x2x32xf32, #tpu.memory_space<vmem>>, vector<1x2x32xf32>,
    %c2 = arith.constant 2 : index
    %c0_38 = arith.constant 0 : index
    %c0_39 = arith.constant 0 : index
    %79 = vector.load %arg1[%c2, %c0_38, %c0_39] : memref<5x2x128xf32, #tpu.memory_space<vmem>>, vector<1x2x128xf32>
    %80 = vector.shape_cast %79 : vector<1x2x128xf32> to vector<2x128xf32>
    %c0_40 = arith.constant 0 : index
    %c0_41 = arith.constant 0 : index
    %81 = vector.load %arg4[%c0_40, %c0_41] : memref<2x32xf32, #tpu.memory_space<vmem>>, vector<2x32xf32>
    %82 = arith.truncf %81 : vector<2x32xf32> to vector<2x32xbf16>
    %c0_42 = arith.constant 0 : index
    %c0_43 = arith.constant 0 : index
    %83 = vector.load %arg2[%c0_42, %c0_43] : memref<32x128xbf16, #tpu.memory_space<vmem>>, vector<32x128xbf16>
    %cst_44 = arith.constant dense<0.000000e+00> : vector<2x128xf32>
    %84 = tpu.matmul %82, %83, %cst_44 {dimension_numbers = #tpu.dot_dimension_numbers<[1], [0], [0], [1], [0, 0, 1, 1], [], []>} : vector<2x32xbf16>, vector<32x128xbf16>, vector<2x128xf32> -> vector<2x128xf32>
    %85 = arith.addf %80, %84 : vector<2x128xf32>
    %86 = vector.extract_strided_slice %85 {offsets = [0, 0], sizes = [2, 32], strides = [1, 1]} : vector<2x128xf32> to vector<2x32xf32>
    %87 = arith.negf %86 : vector<2x32xf32>
    %88 = math.exp %87 : vector<2x32xf32>
    %cst_45 = arith.constant 1.000000e+00 : f32
    %89 = vector.broadcast %cst_45 : f32 to vector<2x32xf32>
    %90 = arith.addf %89, %88 : vector<2x32xf32>
    %91 = arith.divf %89, %90 : vector<2x32xf32>
    %92 = vector.extract_strided_slice %85 {offsets = [0, 32], sizes = [2, 32], strides = [1, 1]} : vector<2x128xf32> to vector<2x32xf32>
    %93 = arith.negf %92 : vector<2x32xf32>
    %94 = math.exp %93 : vector<2x32xf32>
    %cst_46 = arith.constant 1.000000e+00 : f32
    %95 = vector.broadcast %cst_46 : f32 to vector<2x32xf32>
    %96 = arith.addf %95, %94 : vector<2x32xf32>
    %97 = arith.divf %95, %96 : vector<2x32xf32>
    %98 = vector.extract_strided_slice %85 {offsets = [0, 64], sizes = [2, 32], strides = [1, 1]} : vector<2x128xf32> to vector<2x32xf32>
    %99 = math.tanh %98 : vector<2x32xf32>
    %100 = vector.extract_strided_slice %85 {offsets = [0, 96], sizes = [2, 32], strides = [1, 1]} : vector<2x128xf32> to vector<2x32xf32>
    %101 = arith.negf %100 : vector<2x32xf32>
    %102 = math.exp %101 : vector<2x32xf32>
    %cst_47 = arith.constant 1.000000e+00 : f32
    %103 = vector.broadcast %cst_47 : f32 to vector<2x32xf32>
    %104 = arith.addf %103, %102 : vector<2x32xf32>
    %105 = arith.divf %103, %104 : vector<2x32xf32>
    %c0_48 = arith.constant 0 : index
    %c0_49 = arith.constant 0 : index
    %106 = vector.load %arg5[%c0_48, %c0_49] : memref<2x32xf32, #tpu.memory_space<vmem>>, vector<2x32xf32>
    %107 = arith.mulf %97, %106 : vector<2x32xf32>
    %108 = arith.mulf %91, %99 : vector<2x32xf32>
    %109 = arith.addf %107, %108 : vector<2x32xf32>
    %110 = math.tanh %109 : vector<2x32xf32>
    %111 = arith.mulf %105, %110 : vector<2x32xf32>
    %c0_50 = arith.constant 0 : index
    %c0_51 = arith.constant 0 : index
    %112 = vector.load %arg5[%c0_50, %c0_51] : memref<2x32xf32, #tpu.memory_space<vmem>>, vector<2x32xf32>
    tpu.vector_store %arg5[%c0_50, %c0_51], %109 {strides = array<i32>} : memref<2x32xf32, #tpu.memory_space<vmem>>, vector<2x32xf32>,
    %c0_52 = arith.constant 0 : index
    %c0_53 = arith.constant 0 : index
    %113 = vector.load %arg4[%c0_52, %c0_53] : memref<2x32xf32, #tpu.memory_space<vmem>>, vector<2x32xf32>
    tpu.vector_store %arg4[%c0_52, %c0_53], %111 {strides = array<i32>} : memref<2x32xf32, #tpu.memory_space<vmem>>, vector<2x32xf32>,
    %c2_54 = arith.constant 2 : index
    %c0_55 = arith.constant 0 : index
    %c0_56 = arith.constant 0 : index
    %114 = vector.load %arg3[%c2_54, %c0_55, %c0_56] : memref<5x2x32xf32, #tpu.memory_space<vmem>>, vector<1x2x32xf32>
    %115 = vector.shape_cast %114 : vector<1x2x32xf32> to vector<2x32xf32>
    %116 = vector.shape_cast %111 : vector<2x32xf32> to vector<1x2x32xf32>
    tpu.vector_store %arg3[%c2_54, %c0_55, %c0_56], %116 {strides = array<i32>} : memref<5x2x32xf32, #tpu.memory_space<vmem>>, vector<1x2x32xf32>,
    %c3 = arith.constant 3 : index
    %c0_57 = arith.constant 0 : index
    %c0_58 = arith.constant 0 : index
    %117 = vector.load %arg1[%c3, %c0_57, %c0_58] : memref<5x2x128xf32, #tpu.memory_space<vmem>>, vector<1x2x128xf32>
    %118 = vector.shape_cast %117 : vector<1x2x128xf32> to vector<2x128xf32>
    %c0_59 = arith.constant 0 : index
    %c0_60 = arith.constant 0 : index
    %119 = vector.load %arg4[%c0_59, %c0_60] : memref<2x32xf32, #tpu.memory_space<vmem>>, vector<2x32xf32>
    %120 = arith.truncf %119 : vector<2x32xf32> to vector<2x32xbf16>
    %c0_61 = arith.constant 0 : index
    %c0_62 = arith.constant 0 : index
    %121 = vector.load %arg2[%c0_61, %c0_62] : memref<32x128xbf16, #tpu.memory_space<vmem>>, vector<32x128xbf16>
    %cst_63 = arith.constant dense<0.000000e+00> : vector<2x128xf32>
    %122 = tpu.matmul %120, %121, %cst_63 {dimension_numbers = #tpu.dot_dimension_numbers<[1], [0], [0], [1], [0, 0, 1, 1], [], []>} : vector<2x32xbf16>, vector<32x128xbf16>, vector<2x128xf32> -> vector<2x128xf32>
    %123 = arith.addf %118, %122 : vector<2x128xf32>
    %124 = vector.extract_strided_slice %123 {offsets = [0, 0], sizes = [2, 32], strides = [1, 1]} : vector<2x128xf32> to vector<2x32xf32>
    %125 = arith.negf %124 : vector<2x32xf32>
    %126 = math.exp %125 : vector<2x32xf32>
    %cst_64 = arith.constant 1.000000e+00 : f32
    %127 = vector.broadcast %cst_64 : f32 to vector<2x32xf32>
    %128 = arith.addf %127, %126 : vector<2x32xf32>
    %129 = arith.divf %127, %128 : vector<2x32xf32>
    %130 = vector.extract_strided_slice %123 {offsets = [0, 32], sizes = [2, 32], strides = [1, 1]} : vector<2x128xf32> to vector<2x32xf32>
    %131 = arith.negf %130 : vector<2x32xf32>
    %132 = math.exp %131 : vector<2x32xf32>
    %cst_65 = arith.constant 1.000000e+00 : f32
    %133 = vector.broadcast %cst_65 : f32 to vector<2x32xf32>
    %134 = arith.addf %133, %132 : vector<2x32xf32>
    %135 = arith.divf %133, %134 : vector<2x32xf32>
    %136 = vector.extract_strided_slice %123 {offsets = [0, 64], sizes = [2, 32], strides = [1, 1]} : vector<2x128xf32> to vector<2x32xf32>
    %137 = math.tanh %136 : vector<2x32xf32>
    %138 = vector.extract_strided_slice %123 {offsets = [0, 96], sizes = [2, 32], strides = [1, 1]} : vector<2x128xf32> to vector<2x32xf32>
    %139 = arith.negf %138 : vector<2x32xf32>
    %140 = math.exp %139 : vector<2x32xf32>
    %cst_66 = arith.constant 1.000000e+00 : f32
    %141 = vector.broadcast %cst_66 : f32 to vector<2x32xf32>
    %142 = arith.addf %141, %140 : vector<2x32xf32>
    %143 = arith.divf %141, %142 : vector<2x32xf32>
    %c0_67 = arith.constant 0 : index
    %c0_68 = arith.constant 0 : index
    %144 = vector.load %arg5[%c0_67, %c0_68] : memref<2x32xf32, #tpu.memory_space<vmem>>, vector<2x32xf32>
    %145 = arith.mulf %135, %144 : vector<2x32xf32>
    %146 = arith.mulf %129, %137 : vector<2x32xf32>
    %147 = arith.addf %145, %146 : vector<2x32xf32>
    %148 = math.tanh %147 : vector<2x32xf32>
    %149 = arith.mulf %143, %148 : vector<2x32xf32>
    %c0_69 = arith.constant 0 : index
    %c0_70 = arith.constant 0 : index
    %150 = vector.load %arg5[%c0_69, %c0_70] : memref<2x32xf32, #tpu.memory_space<vmem>>, vector<2x32xf32>
    tpu.vector_store %arg5[%c0_69, %c0_70], %147 {strides = array<i32>} : memref<2x32xf32, #tpu.memory_space<vmem>>, vector<2x32xf32>,
    %c0_71 = arith.constant 0 : index
    %c0_72 = arith.constant 0 : index
    %151 = vector.load %arg4[%c0_71, %c0_72] : memref<2x32xf32, #tpu.memory_space<vmem>>, vector<2x32xf32>
    tpu.vector_store %arg4[%c0_71, %c0_72], %149 {strides = array<i32>} : memref<2x32xf32, #tpu.memory_space<vmem>>, vector<2x32xf32>,
    %c3_73 = arith.constant 3 : index
    %c0_74 = arith.constant 0 : index
    %c0_75 = arith.constant 0 : index
    %152 = vector.load %arg3[%c3_73, %c0_74, %c0_75] : memref<5x2x32xf32, #tpu.memory_space<vmem>>, vector<1x2x32xf32>
    %153 = vector.shape_cast %152 : vector<1x2x32xf32> to vector<2x32xf32>
    %154 = vector.shape_cast %149 : vector<2x32xf32> to vector<1x2x32xf32>
    tpu.vector_store %arg3[%c3_73, %c0_74, %c0_75], %154 {strides = array<i32>} : memref<5x2x32xf32, #tpu.memory_space<vmem>>, vector<1x2x32xf32>,
    %c4 = arith.constant 4 : index
    %c0_76 = arith.constant 0 : index
    %c0_77 = arith.constant 0 : index
    %155 = vector.load %arg1[%c4, %c0_76, %c0_77] : memref<5x2x128xf32, #tpu.memory_space<vmem>>, vector<1x2x128xf32>
    %156 = vector.shape_cast %155 : vector<1x2x128xf32> to vector<2x128xf32>
    %c0_78 = arith.constant 0 : index
    %c0_79 = arith.constant 0 : index
    %157 = vector.load %arg4[%c0_78, %c0_79] : memref<2x32xf32, #tpu.memory_space<vmem>>, vector<2x32xf32>
    %158 = arith.truncf %157 : vector<2x32xf32> to vector<2x32xbf16>
    %c0_80 = arith.constant 0 : index
    %c0_81 = arith.constant 0 : index
    %159 = vector.load %arg2[%c0_80, %c0_81] : memref<32x128xbf16, #tpu.memory_space<vmem>>, vector<32x128xbf16>
    %cst_82 = arith.constant dense<0.000000e+00> : vector<2x128xf32>
    %160 = tpu.matmul %158, %159, %cst_82 {dimension_numbers = #tpu.dot_dimension_numbers<[1], [0], [0], [1], [0, 0, 1, 1], [], []>} : vector<2x32xbf16>, vector<32x128xbf16>, vector<2x128xf32> -> vector<2x128xf32>
    %161 = arith.addf %156, %160 : vector<2x128xf32>
    %162 = vector.extract_strided_slice %161 {offsets = [0, 0], sizes = [2, 32], strides = [1, 1]} : vector<2x128xf32> to vector<2x32xf32>
    %163 = arith.negf %162 : vector<2x32xf32>
    %164 = math.exp %163 : vector<2x32xf32>
    %cst_83 = arith.constant 1.000000e+00 : f32
    %165 = vector.broadcast %cst_83 : f32 to vector<2x32xf32>
    %166 = arith.addf %165, %164 : vector<2x32xf32>
    %167 = arith.divf %165, %166 : vector<2x32xf32>
    %168 = vector.extract_strided_slice %161 {offsets = [0, 32], sizes = [2, 32], strides = [1, 1]} : vector<2x128xf32> to vector<2x32xf32>
    %169 = arith.negf %168 : vector<2x32xf32>
    %170 = math.exp %169 : vector<2x32xf32>
    %cst_84 = arith.constant 1.000000e+00 : f32
    %171 = vector.broadcast %cst_84 : f32 to vector<2x32xf32>
    %172 = arith.addf %171, %170 : vector<2x32xf32>
    %173 = arith.divf %171, %172 : vector<2x32xf32>
    %174 = vector.extract_strided_slice %161 {offsets = [0, 64], sizes = [2, 32], strides = [1, 1]} : vector<2x128xf32> to vector<2x32xf32>
    %175 = math.tanh %174 : vector<2x32xf32>
    %176 = vector.extract_strided_slice %161 {offsets = [0, 96], sizes = [2, 32], strides = [1, 1]} : vector<2x128xf32> to vector<2x32xf32>
    %177 = arith.negf %176 : vector<2x32xf32>
    %178 = math.exp %177 : vector<2x32xf32>
    %cst_85 = arith.constant 1.000000e+00 : f32
    %179 = vector.broadcast %cst_85 : f32 to vector<2x32xf32>
    %180 = arith.addf %179, %178 : vector<2x32xf32>
    %181 = arith.divf %179, %180 : vector<2x32xf32>
    %c0_86 = arith.constant 0 : index
    %c0_87 = arith.constant 0 : index
    %182 = vector.load %arg5[%c0_86, %c0_87] : memref<2x32xf32, #tpu.memory_space<vmem>>, vector<2x32xf32>
    %183 = arith.mulf %173, %182 : vector<2x32xf32>
    %184 = arith.mulf %167, %175 : vector<2x32xf32>
    %185 = arith.addf %183, %184 : vector<2x32xf32>
    %186 = math.tanh %185 : vector<2x32xf32>
    %187 = arith.mulf %181, %186 : vector<2x32xf32>
    %c0_88 = arith.constant 0 : index
    %c0_89 = arith.constant 0 : index
    %188 = vector.load %arg5[%c0_88, %c0_89] : memref<2x32xf32, #tpu.memory_space<vmem>>, vector<2x32xf32>
    tpu.vector_store %arg5[%c0_88, %c0_89], %185 {strides = array<i32>} : memref<2x32xf32, #tpu.memory_space<vmem>>, vector<2x32xf32>,
    %c0_90 = arith.constant 0 : index
    %c0_91 = arith.constant 0 : index
    %189 = vector.load %arg4[%c0_90, %c0_91] : memref<2x32xf32, #tpu.memory_space<vmem>>, vector<2x32xf32>
    tpu.vector_store %arg4[%c0_90, %c0_91], %187 {strides = array<i32>} : memref<2x32xf32, #tpu.memory_space<vmem>>, vector<2x32xf32>,
    %c4_92 = arith.constant 4 : index
    %c0_93 = arith.constant 0 : index
    %c0_94 = arith.constant 0 : index
    %190 = vector.load %arg3[%c4_92, %c0_93, %c0_94] : memref<5x2x32xf32, #tpu.memory_space<vmem>>, vector<1x2x32xf32>
    %191 = vector.shape_cast %190 : vector<1x2x32xf32> to vector<2x32xf32>
    %192 = vector.shape_cast %187 : vector<2x32xf32> to vector<1x2x32xf32>
    tpu.vector_store %arg3[%c4_92, %c0_93, %c0_94], %192 {strides = array<i32>} : memref<5x2x32xf32, #tpu.memory_space<vmem>>, vector<1x2x32xf32>,
    return
  }
  func.func @transform_0(%arg0: i32) -> (i32, i32, i32) {
    %c0_i32 = arith.constant 0 : i32
    %c0_i32_0 = arith.constant 0 : i32
    %c0_i32_1 = arith.constant 0 : i32
    return %arg0, %c0_i32, %c0_i32_0 : i32, i32, i32
  }
  func.func @transform_1(%arg0: i32) -> (i32, i32) {
    %c0_i32 = arith.constant 0 : i32
    %c0_i32_0 = arith.constant 0 : i32
    %c0_i32_1 = arith.constant 0 : i32
    return %c0_i32, %c0_i32_0 : i32, i32
  }
  func.func @transform_2(%arg0: i32) -> (i32, i32, i32) {
    %c0_i32 = arith.constant 0 : i32
    %c0_i32_0 = arith.constant 0 : i32
    %c0_i32_1 = arith.constant 0 : i32
    return %arg0, %c0_i32, %c0_i32_0 : i32, i32, i32
  }
}

module attributes {stable_mosaic.version = 11 : i64} {
  func.func @_linear_kernel(%arg0: i32, %arg1: memref<10x32xbf16, #tpu.memory_space<vmem>>, %arg2: memref<32x128xbf16, #tpu.memory_space<vmem>>, %arg3: memref<1x128xf32, #tpu.memory_space<vmem>>, %arg4: memref<10x128xf32, #tpu.memory_space<vmem>>) attributes {dimension_semantics = [#tpu.dimension_semantics<parallel>], iteration_bounds = array<i64: 1>, scalar_prefetch = 0 : i64, scratch_operands = 0 : i64, tpu.core_type = #tpu.core_type<tc>, window_params = [{transform_indices = @transform_0, window_bounds = array<i64: 10, 32>}, {pipeline_mode = #tpu.pipeline_mode<synchronous>, transform_indices = @transform_1, window_bounds = array<i64: 32, 128>}, {pipeline_mode = #tpu.pipeline_mode<synchronous>, transform_indices = @transform_2, window_bounds = array<i64: 1, 128>}, {transform_indices = @transform_3, window_bounds = array<i64: 10, 128>}]} {
    %c0 = arith.constant 0 : index
    %c0_0 = arith.constant 0 : index
    %0 = vector.load %arg1[%c0, %c0_0] : memref<10x32xbf16, #tpu.memory_space<vmem>>, vector<10x32xbf16>
    %c0_1 = arith.constant 0 : index
    %c0_2 = arith.constant 0 : index
    %1 = vector.load %arg2[%c0_1, %c0_2] : memref<32x128xbf16, #tpu.memory_space<vmem>>, vector<32x128xbf16>
    %cst = arith.constant dense<0.000000e+00> : vector<10x128xf32>
    %2 = tpu.matmul %0, %1, %cst {dimension_numbers = #tpu.dot_dimension_numbers<[1], [0], [0], [1], [0, 0, 1, 1], [], []>} : vector<10x32xbf16>, vector<32x128xbf16>, vector<10x128xf32> -> vector<10x128xf32>
    %c0_3 = arith.constant 0 : index
    %c0_4 = arith.constant 0 : index
    %3 = vector.load %arg3[%c0_3, %c0_4] : memref<1x128xf32, #tpu.memory_space<vmem>>, vector<1x128xf32>
    %4 = vector.broadcast %3 : vector<1x128xf32> to vector<10x128xf32>
    %5 = arith.addf %2, %4 : vector<10x128xf32>
    %c0_5 = arith.constant 0 : index
    %c0_6 = arith.constant 0 : index
    %6 = vector.load %arg4[%c0_5, %c0_6] : memref<10x128xf32, #tpu.memory_space<vmem>>, vector<10x128xf32>
    tpu.vector_store %arg4[%c0_5, %c0_6], %5 {strides = array<i32>} : memref<10x128xf32, #tpu.memory_space<vmem>>, vector<10x128xf32>,
    return
  }
  func.func @transform_0(%arg0: i32) -> (i32, i32) {
    %c0_i32 = arith.constant 0 : i32
    %c0_i32_0 = arith.constant 0 : i32
    return %arg0, %c0_i32 : i32, i32
  }
  func.func @transform_1(%arg0: i32) -> (i32, i32) {
    %c0_i32 = arith.constant 0 : i32
    %c0_i32_0 = arith.constant 0 : i32
    %c0_i32_1 = arith.constant 0 : i32
    return %c0_i32, %c0_i32_0 : i32, i32
  }
  func.func @transform_2(%arg0: i32) -> (i32, i32) {
    %c0_i32 = arith.constant 0 : i32
    %c0_i32_0 = arith.constant 0 : i32
    %c0_i32_1 = arith.constant 0 : i32
    return %c0_i32, %c0_i32_0 : i32, i32
  }
  func.func @transform_3(%arg0: i32) -> (i32, i32) {
    %c0_i32 = arith.constant 0 : i32
    %c0_i32_0 = arith.constant 0 : i32
    return %arg0, %c0_i32 : i32, i32
  }
}

module attributes {stable_mosaic.version = 11 : i64} {
  func.func @_joint_kernel(%arg0: i32, %arg1: i32, %arg2: memref<1x8x32xbf16, #tpu.memory_space<vmem>>, %arg3: memref<1x5x32xbf16, #tpu.memory_space<vmem>>, %arg4: memref<32x32xbf16, #tpu.memory_space<vmem>>, %arg5: memref<1x32xf32, #tpu.memory_space<vmem>>, %arg6: memref<32x32xbf16, #tpu.memory_space<vmem>>, %arg7: memref<32x128xbf16, #tpu.memory_space<vmem>>, %arg8: memref<1x128xf32, #tpu.memory_space<vmem>>, %arg9: memref<1x8x5x128xf32, #tpu.memory_space<vmem>>) attributes {dimension_semantics = [#tpu.dimension_semantics<parallel>, #tpu.dimension_semantics<parallel>], iteration_bounds = array<i64: 2, 1>, scalar_prefetch = 0 : i64, scratch_operands = 0 : i64, tpu.core_type = #tpu.core_type<tc>, window_params = [{transform_indices = @transform_0, window_bounds = array<i64: 1, 8, 32>}, {transform_indices = @transform_1, window_bounds = array<i64: 1, 5, 32>}, {pipeline_mode = #tpu.pipeline_mode<synchronous>, transform_indices = @transform_2, window_bounds = array<i64: 32, 32>}, {pipeline_mode = #tpu.pipeline_mode<synchronous>, transform_indices = @transform_3, window_bounds = array<i64: 1, 32>}, {pipeline_mode = #tpu.pipeline_mode<synchronous>, transform_indices = @transform_4, window_bounds = array<i64: 32, 32>}, {pipeline_mode = #tpu.pipeline_mode<synchronous>, transform_indices = @transform_5, window_bounds = array<i64: 32, 128>}, {pipeline_mode = #tpu.pipeline_mode<synchronous>, transform_indices = @transform_6, window_bounds = array<i64: 1, 128>}, {transform_indices = @transform_7, window_bounds = array<i64: 1, 8, 5, 128>}]} {
    %c0 = arith.constant 0 : index
    %c0_0 = arith.constant 0 : index
    %c0_1 = arith.constant 0 : index
    %0 = vector.load %arg2[%c0, %c0_0, %c0_1] : memref<1x8x32xbf16, #tpu.memory_space<vmem>>, vector<1x8x32xbf16>
    %1 = vector.shape_cast %0 : vector<1x8x32xbf16> to vector<8x32xbf16>
    %c0_2 = arith.constant 0 : index
    %c0_3 = arith.constant 0 : index
    %c0_4 = arith.constant 0 : index
    %2 = vector.load %arg3[%c0_2, %c0_3, %c0_4] : memref<1x5x32xbf16, #tpu.memory_space<vmem>>, vector<1x5x32xbf16>
    %3 = vector.shape_cast %2 : vector<1x5x32xbf16> to vector<5x32xbf16>
    %c0_5 = arith.constant 0 : index
    %c0_6 = arith.constant 0 : index
    %4 = vector.load %arg4[%c0_5, %c0_6] : memref<32x32xbf16, #tpu.memory_space<vmem>>, vector<32x32xbf16>
    %cst = arith.constant dense<0.000000e+00> : vector<8x32xf32>
    %5 = tpu.matmul %1, %4, %cst {dimension_numbers = #tpu.dot_dimension_numbers<[1], [0], [0], [1], [0, 0, 1, 1], [], []>} : vector<8x32xbf16>, vector<32x32xbf16>, vector<8x32xf32> -> vector<8x32xf32>
    %c0_7 = arith.constant 0 : index
    %c0_8 = arith.constant 0 : index
    %6 = vector.load %arg5[%c0_7, %c0_8] : memref<1x32xf32, #tpu.memory_space<vmem>>, vector<1x32xf32>
    %7 = vector.broadcast %6 : vector<1x32xf32> to vector<8x32xf32>
    %8 = arith.addf %5, %7 : vector<8x32xf32>
    %c0_9 = arith.constant 0 : index
    %c0_10 = arith.constant 0 : index
    %9 = vector.load %arg6[%c0_9, %c0_10] : memref<32x32xbf16, #tpu.memory_space<vmem>>, vector<32x32xbf16>
    %cst_11 = arith.constant dense<0.000000e+00> : vector<5x32xf32>
    %10 = tpu.matmul %3, %9, %cst_11 {dimension_numbers = #tpu.dot_dimension_numbers<[1], [0], [0], [1], [0, 0, 1, 1], [], []>} : vector<5x32xbf16>, vector<32x32xbf16>, vector<5x32xf32> -> vector<5x32xf32>
    %11 = vector.shape_cast %8 : vector<8x32xf32> to vector<8x1x32xf32>
    %12 = vector.shape_cast %10 : vector<5x32xf32> to vector<1x5x32xf32>
    %13 = vector.broadcast %11 : vector<8x1x32xf32> to vector<8x5x32xf32>
    %14 = vector.broadcast %12 : vector<1x5x32xf32> to vector<8x5x32xf32>
    %15 = arith.addf %13, %14 : vector<8x5x32xf32>
    %16 = math.tanh %15 : vector<8x5x32xf32>
    %17 = vector.shape_cast %16 : vector<8x5x32xf32> to vector<40x32xf32>
    %18 = arith.truncf %17 : vector<40x32xf32> to vector<40x32xbf16>
    %c0_12 = arith.constant 0 : index
    %c0_13 = arith.constant 0 : index
    %19 = vector.load %arg7[%c0_12, %c0_13] : memref<32x128xbf16, #tpu.memory_space<vmem>>, vector<32x128xbf16>
    %cst_14 = arith.constant dense<0.000000e+00> : vector<40x128xf32>
    %20 = tpu.matmul %18, %19, %cst_14 {dimension_numbers = #tpu.dot_dimension_numbers<[1], [0], [0], [1], [0, 0, 1, 1], [], []>} : vector<40x32xbf16>, vector<32x128xbf16>, vector<40x128xf32> -> vector<40x128xf32>
    %c0_15 = arith.constant 0 : index
    %c0_16 = arith.constant 0 : index
    %21 = vector.load %arg8[%c0_15, %c0_16] : memref<1x128xf32, #tpu.memory_space<vmem>>, vector<1x128xf32>
    %22 = vector.broadcast %21 : vector<1x128xf32> to vector<40x128xf32>
    %23 = arith.addf %20, %22 : vector<40x128xf32>
    %cst_17 = arith.constant dense<0xFF800000> : vector<40xf32>
    %24 = vector.multi_reduction <maximumf>, %23, %cst_17 [1] : vector<40x128xf32> to vector<40xf32>
    %25 = vector.shape_cast %24 : vector<40xf32> to vector<40x1xf32>
    %26 = vector.broadcast %25 : vector<40x1xf32> to vector<40x128xf32>
    %27 = arith.subf %23, %26 : vector<40x128xf32>
    %28 = math.exp %27 : vector<40x128xf32>
    %cst_18 = arith.constant dense<0.000000e+00> : vector<40xf32>
    %29 = vector.multi_reduction <add>, %28, %cst_18 [1] : vector<40x128xf32> to vector<40xf32>
    %30 = vector.shape_cast %29 : vector<40xf32> to vector<40x1xf32>
    %31 = math.log %30 : vector<40x1xf32>
    %32 = arith.addf %25, %31 : vector<40x1xf32>
    %33 = vector.broadcast %32 : vector<40x1xf32> to vector<40x128xf32>
    %34 = arith.subf %23, %33 : vector<40x128xf32>
    %35 = vector.shape_cast %34 : vector<40x128xf32> to vector<1x8x5x128xf32>
    %c0_19 = arith.constant 0 : index
    %c0_20 = arith.constant 0 : index
    %c0_21 = arith.constant 0 : index
    %c0_22 = arith.constant 0 : index
    %36 = vector.load %arg9[%c0_19, %c0_20, %c0_21, %c0_22] : memref<1x8x5x128xf32, #tpu.memory_space<vmem>>, vector<1x8x5x128xf32>
    tpu.vector_store %arg9[%c0_19, %c0_20, %c0_21, %c0_22], %35 {strides = array<i32>} : memref<1x8x5x128xf32, #tpu.memory_space<vmem>>, vector<1x8x5x128xf32>,
    return
  }
  func.func @transform_0(%arg0: i32, %arg1: i32) -> (i32, i32, i32) {
    %c0_i32 = arith.constant 0 : i32
    %c0_i32_0 = arith.constant 0 : i32
    return %arg0, %arg1, %c0_i32 : i32, i32, i32
  }
  func.func @transform_1(%arg0: i32, %arg1: i32) -> (i32, i32, i32) {
    %c0_i32 = arith.constant 0 : i32
    %c0_i32_0 = arith.constant 0 : i32
    %c0_i32_1 = arith.constant 0 : i32
    return %arg0, %c0_i32, %c0_i32_0 : i32, i32, i32
  }
  func.func @transform_2(%arg0: i32, %arg1: i32) -> (i32, i32) {
    %c0_i32 = arith.constant 0 : i32
    %c0_i32_0 = arith.constant 0 : i32
    %c0_i32_1 = arith.constant 0 : i32
    return %c0_i32, %c0_i32_0 : i32, i32
  }
  func.func @transform_3(%arg0: i32, %arg1: i32) -> (i32, i32) {
    %c0_i32 = arith.constant 0 : i32
    %c0_i32_0 = arith.constant 0 : i32
    %c0_i32_1 = arith.constant 0 : i32
    return %c0_i32, %c0_i32_0 : i32, i32
  }
  func.func @transform_4(%arg0: i32, %arg1: i32) -> (i32, i32) {
    %c0_i32 = arith.constant 0 : i32
    %c0_i32_0 = arith.constant 0 : i32
    %c0_i32_1 = arith.constant 0 : i32
    return %c0_i32, %c0_i32_0 : i32, i32
  }
  func.func @transform_5(%arg0: i32, %arg1: i32) -> (i32, i32) {
    %c0_i32 = arith.constant 0 : i32
    %c0_i32_0 = arith.constant 0 : i32
    %c0_i32_1 = arith.constant 0 : i32
    return %c0_i32, %c0_i32_0 : i32, i32
  }
  func.func @transform_6(%arg0: i32, %arg1: i32) -> (i32, i32) {
    %c0_i32 = arith.constant 0 : i32
    %c0_i32_0 = arith.constant 0 : i32
    %c0_i32_1 = arith.constant 0 : i32
    return %c0_i32, %c0_i32_0 : i32, i32
  }
  func.func @transform_7(%arg0: i32, %arg1: i32) -> (i32, i32, i32, i32) {
    %c0_i32 = arith.constant 0 : i32
    %c0_i32_0 = arith.constant 0 : i32
    %c0_i32_1 = arith.constant 0 : i32
    return %arg0, %arg1, %c0_i32, %c0_i32_0 : i32, i32, i32, i32
  }
}

</mosaic_0001>

<bundles_post_ra>
// kernel: custom-call.14
= control target key start
LH: loop header
LB: loop body
LE: loop exit
PB: predicated region body
PF: predicated region fallthrough
CT: control target
= control target key end

     0   :  { %s6_s0 = inlined_call_operand.vmem [shape: f32[11,2,5], index: 0, kind: output, shape index: {}]  }

// kernel: e2e_forward.6
= control target key start
LH: loop header
LB: loop body
LE: loop exit
PB: predicated region body
PF: predicated region fallthrough
CT: control target
= control target key end

     0   :  { %v104_v0 = vmov 0.0   ;;  %vm105_vm0 = vmmov 0   ;;  %vm37_vm1 = vcmask 130048   ;;  %s141_s1 = inlined_call_operand.vmem [shape: bf16[16,128], index: 1, kind: input, shape index: {}]   ;;  %s142_s0 = inlined_call_operand.vmem [shape: bf16[16,16], index: 0, kind: input, shape index: {}]   ;;  %s143_s2 = inlined_call_operand.vmem [shape: f32[1,128], index: 2, kind: input, shape index: {}]   ;;  %s144_s3 = inlined_call_operand.vmem [shape: f32[16,128], index: 3, kind: output, shape index: {}]  }
   0x1   :  { %94 = vmatprep.subr.bf16.mxu0 %v104_v0  ;;  %v102_v1 = vld [vmem:[%s141_s1] sm:$0xff]   ;;  %96 = vmatprep.mubr.msk.bf16.mxu0 %vm105_vm0, %v104_v0 }
   0x2   :  { %v103_v2 = vld [vmem:[%s142_s0] sm:$0xff]   ;;  %95 = vmatpush3.bf16.msra.mxu0 %v102_v1 }
   0x3   :  { %v88_v3 = vld [vmem:[%s143_s2] ss:$0 sm:$0xff] }
   0x5   :  { %97 = vmatmul.mubr.msk.bf16.vlgmr.msra.gmra.mrb[0].mxu0 %vm37_vm1, %v103_v2 }
  0xd8   :  { %v75_v4 = vpop.f32.mrb[0].mxu0 }
  0xd9   :  { %v76_v5 = vadd.f32 %v88_v3, %v75_v4  ;;  %v98_v6 = vpop.f32.mrb[1].mxu0 }
  0xda   :  { %v78_v7 = vpop.f32.mrb[2].mxu0 }
  0xdb   :  { %82 = vst [vmem:[%s144_s3] sm:$0xff] %v76_v5  ;;  %v79_v8 = vadd.f32 %v88_v3, %v78_v7  ;;  %v99_v9 = vpop.f32.mrb[3].mxu0 }
  0xdd   :  { %83 = vst [vmem:[%s144_s3 + $0x8] sm:$0xff] %v79_v8 }

// kernel: e2e_forward.8
= control target key start
LH: loop header
LB: loop body
LE: loop exit
PB: predicated region body
PF: predicated region fallthrough
CT: control target
= control target key end

     0   :  { %v117_v0 = vmov 0.0   ;;  %vm118_vm0 = vmmov 0   ;;  %vm45_vm1 = vcmask 261120   ;;  %s157_s1 = inlined_call_operand.vmem [shape: bf16[32,32], index: 1, kind: input, shape index: {}]   ;;  %s158_s0 = inlined_call_operand.vmem [shape: bf16[16,32], index: 0, kind: input, shape index: {}]   ;;  %s159_s2 = inlined_call_operand.vmem [shape: f32[1,32], index: 2, kind: input, shape index: {}]   ;;  %s160_s3 = inlined_call_operand.vmem [shape: f32[16,32], index: 3, kind: output, shape index: {}]  }
   0x1   :  { %104 = vmatprep.subr.bf16.mxu0 %v117_v0  ;;  %v114_v1 = vld [vmem:[%s157_s1] sm:$0xff]   ;;  %108 = vmatprep.mubr.msk.bf16.mxu0 %vm118_vm0, %v117_v0  ;;  %v115_v2 = vld [vmem:[%s157_s1 + $0x8] sm:$0xff]  }
   0x2   :  { %105 = vmatpush3.bf16.msra.mxu0 %v114_v1  ;;  %v116_v3 = vld [vmem:[%s158_s0] sm:$0xff]  }
   0x3   :  { %106 = vmatprep.subr.bf16.mxu0 %v117_v0  ;;  %v96_v4 = vld [vmem:[%s159_s2] ss:$0 sm:$0xff] }
   0x6   :  { %107 = vmatpush3.bf16.msra.mxu0 %v115_v2 }
   0x9   :  { %109 = vmatmul.mubr.msk.bf16.vlgmr.msra.gmra.mrb[0].mxu0 %vm45_vm1, %v116_v3 }
  0xdc   :  { %v83_v5 = vpop.f32.mrb[0].mxu0 }
  0xdd   :  { %v84_v6 = vadd.f32 %v96_v4, %v83_v5  ;;  %v110_v7 = vpop.f32.mrb[1].mxu0 }
  0xde   :  { %v86_v8 = vpop.f32.mrb[2].mxu0 }
  0xdf   :  { %90 = vst.msk [vmem:[%s160_s3] sm:$0xff] %vm45_vm1, %v84_v6  ;;  %v87_v9 = vadd.f32 %v96_v4, %v86_v8  ;;  %v111_v10 = vpop.f32.mrb[3].mxu0 }
  0xe1   :  { %91 = vst.msk [vmem:[%s160_s3 + $0x8] sm:$0xff] %vm45_vm1, %v87_v9 }

// kernel: e2e_forward.9
= control target key start
LH: loop header
LB: loop body
LE: loop exit
PB: predicated region body
PF: predicated region fallthrough
CT: control target
= control target key end

     0   :  { %v117_v0 = vmov 0.0   ;;  %vm118_vm0 = vmmov 0   ;;  %vm45_vm1 = vcmask 261120   ;;  %s157_s1 = inlined_call_operand.vmem [shape: bf16[32,128], index: 1, kind: input, shape index: {}]   ;;  %s158_s0 = inlined_call_operand.vmem [shape: bf16[10,32], index: 0, kind: input, shape index: {}]   ;;  %s159_s2 = inlined_call_operand.vmem [shape: f32[1,128], index: 2, kind: input, shape index: {}]   ;;  %s160_s3 = inlined_call_operand.vmem [shape: f32[10,128], index: 3, kind: output, shape index: {}]  }
   0x1   :  { %104 = vmatprep.subr.bf16.mxu0 %v117_v0  ;;  %v114_v1 = vld [vmem:[%s157_s1] sm:$0xff]   ;;  %108 = vmatprep.mubr.msk.bf16.mxu0 %vm118_vm0, %v117_v0  ;;  %v115_v2 = vld [vmem:[%s157_s1 + $0x8] sm:$0xff]  }
   0x2   :  { %105 = vmatpush3.bf16.msra.mxu0 %v114_v1  ;;  %v116_v3 = vld [vmem:[%s158_s0] sm:$0x1f]  }
   0x3   :  { %106 = vmatprep.subr.bf16.mxu0 %v117_v0  ;;  %v96_v4 = vld [vmem:[%s159_s2] ss:$0 sm:$0xff] }
   0x6   :  { %107 = vmatpush3.bf16.msra.mxu0 %v115_v2 }
   0x9   :  { %109 = vmatmul.mubr.msk.bf16.vlgmr.msra.gmra.mrb[0].mxu0 %vm45_vm1, %v116_v3 }
  0xdc   :  { %v83_v5 = vpop.f32.mrb[0].mxu0 }
  0xdd   :  { %v84_v6 = vadd.f32 %v96_v4, %v83_v5  ;;  %v110_v7 = vpop.f32.mrb[1].mxu0 }
  0xde   :  { %v86_v8 = vpop.f32.mrb[2].mxu0 }
  0xdf   :  { %90 = vst [vmem:[%s160_s3] sm:$0xff] %v84_v6  ;;  %v87_v9 = vadd.f32 %v96_v4, %v86_v8  ;;  %v111_v10 = vpop.f32.mrb[3].mxu0 }
  0xe1   :  { %91 = vst [vmem:[%s160_s3 + $0x8] sm:$0x3] %v87_v9 }

// kernel: e2e_forward.7
= control target key start
LH: loop header
LB: loop body
LE: loop exit
PB: predicated region body
PF: predicated region fallthrough
CT: control target
= control target key end

     0   :  { %vm16_vm0 = vcmask 254976   ;;  %v1082_v0 = vmov 0.0   ;;  %vm1083_vm1 = vmmov 0   ;;  %vm38_vm2 = vcmask 261120   ;;  %s1084_s15 = smov 64   ;;  %s1085_s16 = smov 32   ;;  %s1314_s1 = inlined_call_operand.vmem [shape: bf16[32,128], index: 1, kind: input, shape index: {}]   ;;  %s1315_s0 = inlined_call_operand.vmem [shape: f32[8,2,128], index: 0, kind: input, shape index: {}]   ;;  %s1316_s2 = inlined_call_operand.vmem [shape: f32[8,2,32], index: 2, kind: output, shape index: {}]  }
   0x1   :  { %933 = vmatprep.subr.bf16.mxu0 %v1082_v0  ;;  %v1002_v1 = vld [vmem:[%s1314_s1] sm:$0xff]   ;;  %937 = vmatprep.mubr.msk.bf16.mxu0 %vm1083_vm1, %v1082_v0  ;;  %17 = vst.msk [vmem:[#allocation2] sm:$0x3] %vm16_vm0, %v1082_v0  ;;  %18 = vst.msk [vmem:[#allocation3] sm:$0x3] %vm16_vm0, %v1082_v0  ;;  %v1003_v2 = vld [vmem:[%s1314_s1 + $0x8] sm:$0xff]  }
   0x2   :  { %941 = vmatprep.subr.bf16.mxu1 %v1082_v0  ;;  %945 = vmatprep.mubr.msk.bf16.mxu1 %vm1083_vm1, %v1082_v0  ;;  %v19_v5 = vld [vmem:[%s1315_s0] sm:$0x3]  ;;  %s1086_s17 = smov 96   ;;  %v1005_v25 = vld [vmem:[%s1314_s1 + $0x8] sm:$0xff]   ;;  %v867_v33 = vld [vmem:[%s1315_s0 + $0x2] sm:$0x3] }
   0x3   :  { %934 = vmatpush3.bf16.msra.mxu0 %v1002_v1  ;;  %v1004_v24 = vld [vmem:[%s1314_s1] sm:$0xff]   ;;  %v1007_v52 = vld [vmem:[%s1314_s1 + $0x8] sm:$0xff]  }
   0x4   :  { %935 = vmatprep.subr.bf16.mxu0 %v1082_v0  ;;  %942 = vmatpush3.bf16.msra.mxu1 %v1004_v24  ;;  %v1006_v51 = vld [vmem:[%s1314_s1] sm:$0xff]  }
   0x5   :  { %943 = vmatprep.subr.bf16.mxu1 %v1082_v0  ;;  %v873_v60 = vld [vmem:[%s1315_s0 + $0x4] sm:$0x3]  ;;  %v879_v24 = vld [vmem:[%s1315_s0 + $0x6] sm:$0x3] }
   0x7   :  { %936 = vmatpush3.bf16.msra.mxu0 %v1003_v2 }
   0x8   :  { %v20_v3 = vld [vmem:[#allocation2] sm:$0x3]  ;;  %949 = vmatprep.subr.bf16.mxu0 %v1082_v0  ;;  %v90_v12 = vld [vmem:[#allocation3] sm:$0x3]  ;;  %944 = vmatpush3.bf16.msra.mxu1 %v1005_v25 }
   0x9   :  { %v21_v4 = vpack.c.bf16 %v20_v3, %v20_v3  ;;  %957 = vmatprep.subr.bf16.mxu1 %v1082_v0 }
   0xb   :  { %938 = vmatmul.mubr.msk.bf16.vlgmr.msra.gmra.mrb[0].mxu0 %vm38_vm2, %v21_v4 }
   0xc   :  { %953 = vmatprep.mubr.msk.bf16.mxu0 %vm1083_vm1, %v1082_v0  ;;  %950 = vmatpush3.bf16.msra.mxu0 %v1006_v51  ;;  %v885_v51 = vld [vmem:[%s1315_s0 + $0x8] sm:$0x3] }
   0xd   :  { %951 = vmatprep.subr.bf16.mxu0 %v1082_v0 }
  0x10   :  { %952 = vmatpush3.bf16.msra.mxu0 %v1007_v52 }
  0x11   :  { %965 = vmatprep.subr.bf16.mxu0 %v1082_v0 }
  0xde   :  { %v76_v6 = vpop.f32.mrb[0].mxu0 }
  0xdf   :  { %v82_v7 = vadd.f32 %v76_v6, %v19_v5  ;;  %v939_v8 = vpop.f32.mrb[1].mxu0 }
  0xe0   :  { %v79_v9 = vpop.f32.mrb[2].mxu0 }
  0xe1   :  { %1018 = vtanh.f32 %v82_v7  ;;  %v940_v10 = vpop.f32.mrb[3].mxu0  ;;  %v866_v13 = vmul.f32 -1.442695, %v82_v7 }
  0xe3   :  { %1020 = vpow2.f32 %v866_v13 }
  0xeb   :  { %v1019_v11 = vpop.eup %1018 }
  0xec   :  { %97 = vrot.lane.b32.xlu0 %v1019_v11, %s1084_s15 }
  0xed   :  { %v1021_v14 = vpop.eup %1020 }
  0xee   :  { %v86_v15 = vadd.f32 1.0, %v1021_v14 }
  0xf0   :  { %92 = vrot.lane.b32.xlu0 %v90_v12, %s1085_s16  ;;  %1022 = vrcp.f32 %v86_v15  ;;  %v1008_v15 = vld [vmem:[%s1314_s1] sm:$0xff]  }
  0xfa   :  { %v1023_v16 = vpop.eup %1022 }
 0x15e   :  { %v98_v17 = vpop.permute.xlu0 %97 }
 0x15f   :  { %v100_v18 = vmul.f32 %v1023_v16, %v98_v17 }
 0x161   :  { %102 = vrot.lane.b32.xlu1 %v100_v18, %s1085_s16 }
 0x162   :  { %v93_v19 = vpop.permute.xlu0 %92 }
 0x163   :  { %v95_v20 = vmul.f32 %v1023_v16, %v93_v19 }
 0x1d3   :  { %v103_v21 = vpop.permute.xlu1 %102 }
 0x1d4   :  { %v105_v22 = vadd.f32 %v103_v21, %v95_v20 }
 0x1d6   :  { %1024 = vtanh.f32 %v105_v22 }
 0x1e0   :  { %v1025_v23 = vpop.eup %1024 }
 0x1e1   :  { %108 = vrot.lane.b32.xlu1 %v1025_v23, %s1084_s15 }
 0x1e5   :  { %113 = vrot.lane.b32.xlu1 %v105_v22, %s1086_s17 }
 0x253   :  { %v109_v26 = vpop.permute.xlu1 %108 }
 0x254   :  { %v111_v27 = vmul.f32 %v1023_v16, %v109_v26  ;;  %v1009_v16 = vld [vmem:[%s1314_s1 + $0x8] sm:$0xff]  }
 0x256   :  { %119 = vrot.lane.b32.xlu0 %v111_v27, %s1085_s16 }
 0x257   :  { %v114_v28 = vpop.permute.xlu1 %113 }
 0x258   :  { %117 = vst.msk [vmem:[#allocation3] sm:$0x3] %vm16_vm0, %v114_v28 }
 0x25f   :  { %v195_v29 = vld [vmem:[#allocation3] sm:$0x3] }
 0x260   :  { %197 = vrot.lane.b32.xlu1 %v195_v29, %s1085_s16 }
 0x2c8   :  { %v120_v30 = vpop.permute.xlu0 %119 }
 0x2c9   :  { %122 = vst.msk [vmem:[#allocation2] sm:$0x3] %vm16_vm0, %v120_v30  ;;  %123 = vst.msk [vmem:[%s1316_s2] sm:$0x3] %vm16_vm0, %v120_v30 }
 0x2d0   :  { %v126_v31 = vld [vmem:[#allocation2] sm:$0x3] }
 0x2d1   :  { %v127_v32 = vpack.c.bf16 %v126_v31, %v126_v31 }
 0x2d2   :  { %v198_v46 = vpop.permute.xlu1 %197 }
 0x2d3   :  { %946 = vmatmul.mubr.msk.bf16.vlgmr.msra.gmra.mrb[0].mxu1 %vm38_vm2, %v127_v32 }
 0x2d4   :  { %961 = vmatprep.mubr.msk.bf16.mxu1 %vm1083_vm1, %v1082_v0  ;;  %958 = vmatpush3.bf16.msra.mxu1 %v1008_v15  ;;  %v891_v15 = vld [vmem:[%s1315_s0 + $0xa] sm:$0x3] }
 0x2d5   :  { %959 = vmatprep.subr.bf16.mxu1 %v1082_v0 }
 0x2d8   :  { %960 = vmatpush3.bf16.msra.mxu1 %v1009_v16 }
 0x2d9   :  { %973 = vmatprep.subr.bf16.mxu1 %v1082_v0 }
 0x3a6   :  { %v181_v34 = vpop.f32.mrb[0].mxu1 }
 0x3a7   :  { %v187_v35 = vadd.f32 %v867_v33, %v181_v34  ;;  %v947_v36 = vpop.f32.mrb[1].mxu1 }
 0x3a8   :  { %v184_v37 = vpop.f32.mrb[2].mxu1 }
 0x3a9   :  { %1026 = vtanh.f32 %v187_v35  ;;  %v948_v38 = vpop.f32.mrb[3].mxu1  ;;  %v871_v40 = vmul.f32 -1.442695, %v187_v35 }
 0x3ab   :  { %1028 = vpow2.f32 %v871_v40 }
 0x3b3   :  { %v1027_v39 = vpop.eup %1026 }
 0x3b4   :  { %202 = vrot.lane.b32.xlu0 %v1027_v39, %s1084_s15 }
 0x3b5   :  { %v1029_v41 = vpop.eup %1028 }
 0x3b6   :  { %v191_v42 = vadd.f32 1.0, %v1029_v41 }
 0x3b8   :  { %1030 = vrcp.f32 %v191_v42  ;;  %v1010_v42 = vld [vmem:[%s1314_s1] sm:$0xff]  }
 0x3c2   :  { %v1031_v43 = vpop.eup %1030 }
 0x3c3   :  { %v200_v47 = vmul.f32 %v1031_v43, %v198_v46 }
 0x426   :  { %v203_v44 = vpop.permute.xlu0 %202 }
 0x427   :  { %v205_v45 = vmul.f32 %v1031_v43, %v203_v44 }
 0x429   :  { %207 = vrot.lane.b32.xlu0 %v205_v45, %s1085_s16 }
 0x49b   :  { %v208_v48 = vpop.permute.xlu0 %207 }
 0x49c   :  { %v210_v49 = vadd.f32 %v208_v48, %v200_v47 }
 0x49e   :  { %1032 = vtanh.f32 %v210_v49 }
 0x4a8   :  { %v1033_v50 = vpop.eup %1032 }
 0x4a9   :  { %213 = vrot.lane.b32.xlu1 %v1033_v50, %s1084_s15 }
 0x4ad   :  { %218 = vrot.lane.b32.xlu1 %v210_v49, %s1086_s17 }
 0x51b   :  { %v214_v53 = vpop.permute.xlu1 %213 }
 0x51c   :  { %v216_v54 = vmul.f32 %v1031_v43, %v214_v53  ;;  %v1011_v43 = vld [vmem:[%s1314_s1 + $0x8] sm:$0xff]  }
 0x51e   :  { %223 = vrot.lane.b32.xlu0 %v216_v54, %s1085_s16 }
 0x51f   :  { %v219_v55 = vpop.permute.xlu1 %218 }
 0x520   :  { %221 = vst.msk [vmem:[#allocation3] sm:$0x3] %vm16_vm0, %v219_v55 }
 0x527   :  { %v300_v56 = vld [vmem:[#allocation3] sm:$0x3] }
 0x528   :  { %302 = vrot.lane.b32.xlu1 %v300_v56, %s1085_s16 }
 0x590   :  { %v224_v57 = vpop.permute.xlu0 %223 }
 0x591   :  { %226 = vst.msk [vmem:[#allocation2] sm:$0x3] %vm16_vm0, %v224_v57  ;;  %872 = vst.msk [vmem:[%s1316_s2 + $0x2] sm:$0x3] %vm16_vm0, %v224_v57 }
 0x598   :  { %v231_v58 = vld [vmem:[#allocation2] sm:$0x3] }
 0x599   :  { %v232_v59 = vpack.c.bf16 %v231_v58, %v231_v58 }
 0x59a   :  { %v303_v10 = vpop.permute.xlu1 %302 }
 0x59b   :  { %954 = vmatmul.mubr.msk.bf16.vlgmr.msra.gmra.mrb[4].mxu0 %vm38_vm2, %v232_v59 }
 0x59c   :  { %969 = vmatprep.mubr.msk.bf16.mxu0 %vm1083_vm1, %v1082_v0  ;;  %966 = vmatpush3.bf16.msra.mxu0 %v1010_v42  ;;  %v897_v42 = vld [vmem:[%s1315_s0 + $0xc] sm:$0x3] }
 0x59d   :  { %967 = vmatprep.subr.bf16.mxu0 %v1082_v0 }
 0x5a0   :  { %968 = vmatpush3.bf16.msra.mxu0 %v1011_v43 }
 0x5a1   :  { %981 = vmatprep.subr.bf16.mxu0 %v1082_v0 }
 0x66e   :  { %v286_v61 = vpop.f32.mrb[4].mxu0 }
 0x66f   :  { %v292_v62 = vadd.f32 %v873_v60, %v286_v61  ;;  %v955_v63 = vpop.f32.mrb[5].mxu0 }
 0x670   :  { %v289_v1 = vpop.f32.mrb[6].mxu0 }
 0x671   :  { %1034 = vtanh.f32 %v292_v62  ;;  %v956_v2 = vpop.f32.mrb[7].mxu0  ;;  %v877_v4 = vmul.f32 -1.442695, %v292_v62 }
 0x673   :  { %1036 = vpow2.f32 %v877_v4 }
 0x67b   :  { %v1035_v3 = vpop.eup %1034 }
 0x67c   :  { %307 = vrot.lane.b32.xlu0 %v1035_v3, %s1084_s15 }
 0x67d   :  { %v1037_v5 = vpop.eup %1036 }
 0x67e   :  { %v296_v6 = vadd.f32 1.0, %v1037_v5 }
 0x680   :  { %1038 = vrcp.f32 %v296_v6  ;;  %v1012_v6 = vld [vmem:[%s1314_s1] sm:$0xff]  }
 0x68a   :  { %v1039_v7 = vpop.eup %1038 }
 0x68b   :  { %v305_v11 = vmul.f32 %v1039_v7, %v303_v10 }
 0x6ee   :  { %v308_v8 = vpop.permute.xlu0 %307 }
 0x6ef   :  { %v310_v9 = vmul.f32 %v1039_v7, %v308_v8 }
 0x6f1   :  { %312 = vrot.lane.b32.xlu0 %v310_v9, %s1085_s16 }
 0x763   :  { %v313_v12 = vpop.permute.xlu0 %312 }
 0x764   :  { %v315_v13 = vadd.f32 %v313_v12, %v305_v11 }
 0x766   :  { %1040 = vtanh.f32 %v315_v13 }
 0x770   :  { %v1041_v14 = vpop.eup %1040 }
 0x771   :  { %318 = vrot.lane.b32.xlu1 %v1041_v14, %s1084_s15 }
 0x775   :  { %323 = vrot.lane.b32.xlu1 %v315_v13, %s1086_s17 }
 0x7e3   :  { %v319_v17 = vpop.permute.xlu1 %318 }
 0x7e4   :  { %v321_v18 = vmul.f32 %v1039_v7, %v319_v17  ;;  %v1013_v7 = vld [vmem:[%s1314_s1 + $0x8] sm:$0xff]  }
 0x7e6   :  { %328 = vrot.lane.b32.xlu0 %v321_v18, %s1085_s16 }
 0x7e7   :  { %v324_v19 = vpop.permute.xlu1 %323 }
 0x7e8   :  { %326 = vst.msk [vmem:[#allocation3] sm:$0x3] %vm16_vm0, %v324_v19 }
 0x7ef   :  { %v405_v20 = vld [vmem:[#allocation3] sm:$0x3] }
 0x7f0   :  { %407 = vrot.lane.b32.xlu1 %v405_v20, %s1085_s16 }
 0x858   :  { %v329_v21 = vpop.permute.xlu0 %328 }
 0x859   :  { %331 = vst.msk [vmem:[#allocation2] sm:$0x3] %vm16_vm0, %v329_v21  ;;  %878 = vst.msk [vmem:[%s1316_s2 + $0x4] sm:$0x3] %vm16_vm0, %v329_v21 }
 0x860   :  { %v336_v22 = vld [vmem:[#allocation2] sm:$0x3] }
 0x861   :  { %v337_v23 = vpack.c.bf16 %v336_v22, %v336_v22 }
 0x862   :  { %v408_v37 = vpop.permute.xlu1 %407 }
 0x863   :  { %962 = vmatmul.mubr.msk.bf16.vlgmr.msra.gmra.mrb[4].mxu1 %vm38_vm2, %v337_v23 }
 0x864   :  { %977 = vmatprep.mubr.msk.bf16.mxu1 %vm1083_vm1, %v1082_v0  ;;  %974 = vmatpush3.bf16.msra.mxu1 %v1012_v6 }
 0x865   :  { %975 = vmatprep.subr.bf16.mxu1 %v1082_v0 }
 0x868   :  { %976 = vmatpush3.bf16.msra.mxu1 %v1013_v7 }
 0x869   :  { %989 = vmatprep.subr.bf16.mxu1 %v1082_v0 }
 0x936   :  { %v391_v25 = vpop.f32.mrb[4].mxu1 }
 0x937   :  { %v397_v26 = vadd.f32 %v879_v24, %v391_v25  ;;  %v963_v27 = vpop.f32.mrb[5].mxu1 }
 0x938   :  { %v394_v28 = vpop.f32.mrb[6].mxu1 }
 0x939   :  { %1042 = vtanh.f32 %v397_v26  ;;  %v964_v29 = vpop.f32.mrb[7].mxu1  ;;  %v883_v31 = vmul.f32 -1.442695, %v397_v26 }
 0x93b   :  { %1044 = vpow2.f32 %v883_v31 }
 0x943   :  { %v1043_v30 = vpop.eup %1042 }
 0x944   :  { %412 = vrot.lane.b32.xlu0 %v1043_v30, %s1084_s15 }
 0x945   :  { %v1045_v32 = vpop.eup %1044 }
 0x946   :  { %v401_v33 = vadd.f32 1.0, %v1045_v32 }
 0x948   :  { %1046 = vrcp.f32 %v401_v33  ;;  %v1014_v33 = vld [vmem:[%s1314_s1] sm:$0xff]  }
 0x952   :  { %v1047_v34 = vpop.eup %1046 }
 0x953   :  { %v410_v38 = vmul.f32 %v1047_v34, %v408_v37 }
 0x9b6   :  { %v413_v35 = vpop.permute.xlu0 %412 }
 0x9b7   :  { %v415_v36 = vmul.f32 %v1047_v34, %v413_v35 }
 0x9b9   :  { %417 = vrot.lane.b32.xlu0 %v415_v36, %s1085_s16 }
 0xa2b   :  { %v418_v39 = vpop.permute.xlu0 %417 }
 0xa2c   :  { %v420_v40 = vadd.f32 %v418_v39, %v410_v38 }
 0xa2e   :  { %1048 = vtanh.f32 %v420_v40 }
 0xa38   :  { %v1049_v41 = vpop.eup %1048 }
 0xa39   :  { %423 = vrot.lane.b32.xlu1 %v1049_v41, %s1084_s15 }
 0xa3d   :  { %428 = vrot.lane.b32.xlu1 %v420_v40, %s1086_s17 }
 0xaab   :  { %v424_v44 = vpop.permute.xlu1 %423 }
 0xaac   :  { %v426_v45 = vmul.f32 %v1047_v34, %v424_v44  ;;  %v1015_v34 = vld [vmem:[%s1314_s1 + $0x8] sm:$0xff]  }
 0xaae   :  { %433 = vrot.lane.b32.xlu0 %v426_v45, %s1085_s16 }
 0xaaf   :  { %v429_v46 = vpop.permute.xlu1 %428 }
 0xab0   :  { %431 = vst.msk [vmem:[#allocation3] sm:$0x3] %vm16_vm0, %v429_v46 }
 0xab7   :  { %v510_v47 = vld [vmem:[#allocation3] sm:$0x3] }
 0xab8   :  { %512 = vrot.lane.b32.xlu1 %v510_v47, %s1085_s16 }
 0xb20   :  { %v434_v48 = vpop.permute.xlu0 %433 }
 0xb21   :  { %436 = vst.msk [vmem:[#allocation2] sm:$0x3] %vm16_vm0, %v434_v48  ;;  %884 = vst.msk [vmem:[%s1316_s2 + $0x6] sm:$0x3] %vm16_vm0, %v434_v48 }
 0xb28   :  { %v441_v49 = vld [vmem:[#allocation2] sm:$0x3] }
 0xb29   :  { %v442_v50 = vpack.c.bf16 %v441_v49, %v441_v49 }
 0xb2a   :  { %v513_v1 = vpop.permute.xlu1 %512 }
 0xb2b   :  { %970 = vmatmul.mubr.msk.bf16.vlgmr.msra.gmra.mrb[8].mxu0 %vm38_vm2, %v442_v50 }
 0xb2c   :  { %985 = vmatprep.mubr.msk.bf16.mxu0 %vm1083_vm1, %v1082_v0  ;;  %982 = vmatpush3.bf16.msra.mxu0 %v1014_v33 }
 0xb2d   :  { %983 = vmatprep.subr.bf16.mxu0 %v1082_v0 }
 0xb30   :  { %984 = vmatpush3.bf16.msra.mxu0 %v1015_v34 }
 0xbfe   :  { %v496_v52 = vpop.f32.mrb[8].mxu0 }
 0xbff   :  { %v502_v53 = vadd.f32 %v885_v51, %v496_v52  ;;  %v971_v54 = vpop.f32.mrb[9].mxu0 }
 0xc00   :  { %v499_v55 = vpop.f32.mrb[10].mxu0 }
 0xc01   :  { %1050 = vtanh.f32 %v502_v53  ;;  %v972_v56 = vpop.f32.mrb[11].mxu0  ;;  %v889_v58 = vmul.f32 -1.442695, %v502_v53 }
 0xc03   :  { %1052 = vpow2.f32 %v889_v58 }
 0xc0b   :  { %v1051_v57 = vpop.eup %1050 }
 0xc0c   :  { %517 = vrot.lane.b32.xlu0 %v1051_v57, %s1084_s15 }
 0xc0d   :  { %v1053_v59 = vpop.eup %1052 }
 0xc0e   :  { %v506_v60 = vadd.f32 1.0, %v1053_v59 }
 0xc10   :  { %1054 = vrcp.f32 %v506_v60  ;;  %v1016_v60 = vld [vmem:[%s1314_s1] sm:$0xff]  }
 0xc1a   :  { %v1055_v61 = vpop.eup %1054 }
 0xc1b   :  { %v515_v2 = vmul.f32 %v1055_v61, %v513_v1 }
 0xc7e   :  { %v518_v62 = vpop.permute.xlu0 %517 }
 0xc7f   :  { %v520_v63 = vmul.f32 %v1055_v61, %v518_v62 }
 0xc81   :  { %522 = vrot.lane.b32.xlu0 %v520_v63, %s1085_s16 }
 0xcf3   :  { %v523_v3 = vpop.permute.xlu0 %522 }
 0xcf4   :  { %v525_v4 = vadd.f32 %v523_v3, %v515_v2 }
 0xcf6   :  { %1056 = vtanh.f32 %v525_v4 }
 0xd00   :  { %v1057_v5 = vpop.eup %1056 }
 0xd01   :  { %528 = vrot.lane.b32.xlu1 %v1057_v5, %s1084_s15  ;;  %v903_v5 = vld [vmem:[%s1315_s0 + $0xe] sm:$0x3] }
 0xd05   :  { %533 = vrot.lane.b32.xlu1 %v525_v4, %s1086_s17 }
 0xd73   :  { %v529_v8 = vpop.permute.xlu1 %528 }
 0xd74   :  { %v531_v9 = vmul.f32 %v1055_v61, %v529_v8  ;;  %v1017_v61 = vld [vmem:[%s1314_s1 + $0x8] sm:$0xff]  }
 0xd76   :  { %538 = vrot.lane.b32.xlu0 %v531_v9, %s1085_s16 }
 0xd77   :  { %v534_v10 = vpop.permute.xlu1 %533 }
 0xd78   :  { %536 = vst.msk [vmem:[#allocation3] sm:$0x3] %vm16_vm0, %v534_v10 }
 0xd7f   :  { %v615_v11 = vld [vmem:[#allocation3] sm:$0x3] }
 0xd80   :  { %617 = vrot.lane.b32.xlu1 %v615_v11, %s1085_s16 }
 0xde8   :  { %v539_v12 = vpop.permute.xlu0 %538 }
 0xde9   :  { %541 = vst.msk [vmem:[#allocation2] sm:$0x3] %vm16_vm0, %v539_v12  ;;  %890 = vst.msk [vmem:[%s1316_s2 + $0x8] sm:$0x3] %vm16_vm0, %v539_v12 }
 0xdf0   :  { %v546_v13 = vld [vmem:[#allocation2] sm:$0x3] }
 0xdf1   :  { %v547_v14 = vpack.c.bf16 %v546_v13, %v546_v13 }
 0xdf2   :  { %v618_v28 = vpop.permute.xlu1 %617 }
 0xdf3   :  { %978 = vmatmul.mubr.msk.bf16.vlgmr.msra.gmra.mrb[8].mxu1 %vm38_vm2, %v547_v14 }
 0xdf4   :  { %993 = vmatprep.mubr.msk.bf16.mxu1 %vm1083_vm1, %v1082_v0  ;;  %990 = vmatpush3.bf16.msra.mxu1 %v1016_v60 }
 0xdf5   :  { %991 = vmatprep.subr.bf16.mxu1 %v1082_v0 }
 0xdf8   :  { %992 = vmatpush3.bf16.msra.mxu1 %v1017_v61 }
 0xec6   :  { %v601_v16 = vpop.f32.mrb[8].mxu1 }
 0xec7   :  { %v607_v17 = vadd.f32 %v891_v15, %v601_v16  ;;  %v979_v18 = vpop.f32.mrb[9].mxu1 }
 0xec8   :  { %v604_v19 = vpop.f32.mrb[10].mxu1 }
 0xec9   :  { %1058 = vtanh.f32 %v607_v17  ;;  %v980_v20 = vpop.f32.mrb[11].mxu1  ;;  %v895_v22 = vmul.f32 -1.442695, %v607_v17 }
 0xecb   :  { %1060 = vpow2.f32 %v895_v22 }
 0xed3   :  { %v1059_v21 = vpop.eup %1058 }
 0xed4   :  { %622 = vrot.lane.b32.xlu0 %v1059_v21, %s1084_s15 }
 0xed5   :  { %v1061_v23 = vpop.eup %1060 }
 0xed6   :  { %v611_v24 = vadd.f32 1.0, %v1061_v23 }
 0xed8   :  { %1062 = vrcp.f32 %v611_v24 }
 0xee2   :  { %v1063_v25 = vpop.eup %1062 }
 0xee3   :  { %v620_v29 = vmul.f32 %v1063_v25, %v618_v28 }
 0xf46   :  { %v623_v26 = vpop.permute.xlu0 %622 }
 0xf47   :  { %v625_v27 = vmul.f32 %v1063_v25, %v623_v26 }
 0xf49   :  { %627 = vrot.lane.b32.xlu0 %v625_v27, %s1085_s16 }
 0xfbb   :  { %v628_v30 = vpop.permute.xlu0 %627 }
 0xfbc   :  { %v630_v31 = vadd.f32 %v628_v30, %v620_v29 }
 0xfbe   :  { %1064 = vtanh.f32 %v630_v31 }
 0xfc8   :  { %v1065_v32 = vpop.eup %1064 }
 0xfc9   :  { %633 = vrot.lane.b32.xlu1 %v1065_v32, %s1084_s15 }
 0xfcd   :  { %638 = vrot.lane.b32.xlu1 %v630_v31, %s1086_s17 }
0x103b   :  { %v634_v35 = vpop.permute.xlu1 %633 }
0x103c   :  { %v636_v36 = vmul.f32 %v1063_v25, %v634_v35 }
0x103e   :  { %643 = vrot.lane.b32.xlu0 %v636_v36, %s1085_s16 }
0x103f   :  { %v639_v37 = vpop.permute.xlu1 %638 }
0x1040   :  { %641 = vst.msk [vmem:[#allocation3] sm:$0x3] %vm16_vm0, %v639_v37 }
0x1047   :  { %v720_v38 = vld [vmem:[#allocation3] sm:$0x3] }
0x1048   :  { %722 = vrot.lane.b32.xlu1 %v720_v38, %s1085_s16 }
0x10b0   :  { %v644_v39 = vpop.permute.xlu0 %643 }
0x10b1   :  { %646 = vst.msk [vmem:[#allocation2] sm:$0x3] %vm16_vm0, %v644_v39  ;;  %896 = vst.msk [vmem:[%s1316_s2 + $0xa] sm:$0x3] %vm16_vm0, %v644_v39 }
0x10b8   :  { %v651_v40 = vld [vmem:[#allocation2] sm:$0x3] }
0x10b9   :  { %v652_v41 = vpack.c.bf16 %v651_v40, %v651_v40 }
0x10ba   :  { %v723_v55 = vpop.permute.xlu1 %722 }
0x10bb   :  { %986 = vmatmul.mubr.msk.bf16.vlgmr.msra.gmra.mrb[12].mxu0 %vm38_vm2, %v652_v41 }
0x118e   :  { %v706_v43 = vpop.f32.mrb[12].mxu0 }
0x118f   :  { %v712_v44 = vadd.f32 %v897_v42, %v706_v43  ;;  %v987_v45 = vpop.f32.mrb[13].mxu0 }
0x1190   :  { %v709_v46 = vpop.f32.mrb[14].mxu0 }
0x1191   :  { %1066 = vtanh.f32 %v712_v44  ;;  %v988_v47 = vpop.f32.mrb[15].mxu0  ;;  %v901_v49 = vmul.f32 -1.442695, %v712_v44 }
0x1193   :  { %1068 = vpow2.f32 %v901_v49 }
0x119b   :  { %v1067_v48 = vpop.eup %1066 }
0x119c   :  { %727 = vrot.lane.b32.xlu0 %v1067_v48, %s1084_s15 }
0x119d   :  { %v1069_v50 = vpop.eup %1068 }
0x119e   :  { %v716_v51 = vadd.f32 1.0, %v1069_v50 }
0x11a0   :  { %1070 = vrcp.f32 %v716_v51 }
0x11aa   :  { %v1071_v52 = vpop.eup %1070 }
0x11ab   :  { %v725_v56 = vmul.f32 %v1071_v52, %v723_v55 }
0x120e   :  { %v728_v53 = vpop.permute.xlu0 %727 }
0x120f   :  { %v730_v54 = vmul.f32 %v1071_v52, %v728_v53 }
0x1211   :  { %732 = vrot.lane.b32.xlu0 %v730_v54, %s1085_s16 }
0x1283   :  { %v733_v57 = vpop.permute.xlu0 %732 }
0x1284   :  { %v735_v58 = vadd.f32 %v733_v57, %v725_v56 }
0x1286   :  { %1072 = vtanh.f32 %v735_v58 }
0x1290   :  { %v1073_v59 = vpop.eup %1072 }
0x1291   :  { %738 = vrot.lane.b32.xlu1 %v1073_v59, %s1084_s15 }
0x1295   :  { %743 = vrot.lane.b32.xlu1 %v735_v58, %s1086_s17 }
0x1303   :  { %v739_v62 = vpop.permute.xlu1 %738 }
0x1304   :  { %v741_v63 = vmul.f32 %v1071_v52, %v739_v62 }
0x1306   :  { %748 = vrot.lane.b32.xlu0 %v741_v63, %s1085_s16 }
0x1307   :  { %v744_v1 = vpop.permute.xlu1 %743 }
0x1308   :  { %746 = vst.msk [vmem:[#allocation3] sm:$0x3] %vm16_vm0, %v744_v1 }
0x130f   :  { %v825_v2 = vld [vmem:[#allocation3] sm:$0x3] }
0x1310   :  { %827 = vrot.lane.b32.xlu1 %v825_v2, %s1085_s16 }
0x1378   :  { %v749_v3 = vpop.permute.xlu0 %748 }
0x1379   :  { %751 = vst.msk [vmem:[#allocation2] sm:$0x3] %vm16_vm0, %v749_v3  ;;  %902 = vst.msk [vmem:[%s1316_s2 + $0xc] sm:$0x3] %vm16_vm0, %v749_v3 }
0x1380   :  { %v756_v0 = vld [vmem:[#allocation2] sm:$0x3] }
0x1381   :  { %v757_v4 = vpack.c.bf16 %v756_v0, %v756_v0 }
0x1382   :  { %v828_v18 = vpop.permute.xlu1 %827 }
0x1383   :  { %994 = vmatmul.mubr.msk.bf16.vlgmr.msra.gmra.mrb[12].mxu1 %vm38_vm2, %v757_v4 }
0x1456   :  { %v811_v6 = vpop.f32.mrb[12].mxu1 }
0x1457   :  { %v817_v7 = vadd.f32 %v903_v5, %v811_v6  ;;  %v995_v8 = vpop.f32.mrb[13].mxu1 }
0x1458   :  { %v814_v9 = vpop.f32.mrb[14].mxu1 }
0x1459   :  { %1074 = vtanh.f32 %v817_v7  ;;  %v996_v10 = vpop.f32.mrb[15].mxu1  ;;  %v907_v12 = vmul.f32 -1.442695, %v817_v7 }
0x145b   :  { %1076 = vpow2.f32 %v907_v12 }
0x1463   :  { %v1075_v11 = vpop.eup %1074 }
0x1464   :  { %832 = vrot.lane.b32.xlu0 %v1075_v11, %s1084_s15 }
0x1465   :  { %v1077_v13 = vpop.eup %1076 }
0x1466   :  { %v821_v14 = vadd.f32 1.0, %v1077_v13 }
0x1468   :  { %1078 = vrcp.f32 %v821_v14 }
0x1472   :  { %v1079_v15 = vpop.eup %1078 }
0x1473   :  { %v830_v19 = vmul.f32 %v1079_v15, %v828_v18 }
0x14d6   :  { %v833_v16 = vpop.permute.xlu0 %832 }
0x14d7   :  { %v835_v17 = vmul.f32 %v1079_v15, %v833_v16 }
0x14d9   :  { %837 = vrot.lane.b32.xlu0 %v835_v17, %s1085_s16 }
0x154b   :  { %v838_v20 = vpop.permute.xlu0 %837 }
0x154c   :  { %v840_v21 = vadd.f32 %v838_v20, %v830_v19 }
0x154e   :  { %1080 = vtanh.f32 %v840_v21  ;;  %848 = vrot.lane.b32.xlu0 %v840_v21, %s1086_s17 }
0x1558   :  { %v1081_v22 = vpop.eup %1080 }
0x1559   :  { %843 = vrot.lane.b32.xlu1 %v1081_v22, %s1084_s15 }
0x15c0   :  { %v849_v23 = vpop.permute.xlu0 %848 }
0x15c1   :  { %851 = vst.msk [vmem:[#allocation3] sm:$0x3] %vm16_vm0, %v849_v23 }
0x15cb   :  { %v844_v24 = vpop.permute.xlu1 %843 }
0x15cc   :  { %v846_v25 = vmul.f32 %v1079_v15, %v844_v24 }
0x15ce   :  { %853 = vrot.lane.b32.xlu1 %v846_v25, %s1085_s16 }
0x1640   :  { %v854_v26 = vpop.permute.xlu1 %853 }
0x1641   :  { %856 = vst.msk [vmem:[#allocation2] sm:$0x3] %vm16_vm0, %v854_v26  ;;  %908 = vst.msk [vmem:[%s1316_s2 + $0xe] sm:$0x3] %vm16_vm0, %v854_v26 }

// kernel: e2e_forward.10
= control target key start
LH: loop header
LB: loop body
LE: loop exit
PB: predicated region body
PF: predicated region fallthrough
CT: control target
= control target key end

     0   :  { %vm16_vm0 = vcmask 254976   ;;  %v686_v0 = vmov 0.0   ;;  %vm687_vm1 = vmmov 0   ;;  %vm38_vm2 = vcmask 261120   ;;  %s688_s15 = smov 64   ;;  %s689_s16 = smov 32   ;;  %s840_s1 = inlined_call_operand.vmem [shape: bf16[32,128], index: 1, kind: input, shape index: {}]   ;;  %s841_s0 = inlined_call_operand.vmem [shape: f32[5,2,128], index: 0, kind: input, shape index: {}]   ;;  %s842_s2 = inlined_call_operand.vmem [shape: f32[5,2,32], index: 2, kind: output, shape index: {}]  }
   0x1   :  { %591 = vmatprep.subr.bf16.mxu0 %v686_v0  ;;  %v636_v1 = vld [vmem:[%s840_s1] sm:$0xff]   ;;  %595 = vmatprep.mubr.msk.bf16.mxu0 %vm687_vm1, %v686_v0  ;;  %17 = vst.msk [vmem:[#allocation2] sm:$0x3] %vm16_vm0, %v686_v0  ;;  %18 = vst.msk [vmem:[#allocation3] sm:$0x3] %vm16_vm0, %v686_v0  ;;  %v637_v2 = vld [vmem:[%s840_s1 + $0x8] sm:$0xff]  }
   0x2   :  { %599 = vmatprep.subr.bf16.mxu1 %v686_v0  ;;  %603 = vmatprep.mubr.msk.bf16.mxu1 %vm687_vm1, %v686_v0  ;;  %v19_v5 = vld [vmem:[%s841_s0] sm:$0x3]  ;;  %s690_s17 = smov 96   ;;  %v639_v25 = vld [vmem:[%s840_s1 + $0x8] sm:$0xff]   ;;  %v552_v33 = vld [vmem:[%s841_s0 + $0x2] sm:$0x3] }
   0x3   :  { %592 = vmatpush3.bf16.msra.mxu0 %v636_v1  ;;  %v638_v24 = vld [vmem:[%s840_s1] sm:$0xff]   ;;  %v641_v52 = vld [vmem:[%s840_s1 + $0x8] sm:$0xff]  }
   0x4   :  { %593 = vmatprep.subr.bf16.mxu0 %v686_v0  ;;  %600 = vmatpush3.bf16.msra.mxu1 %v638_v24  ;;  %v640_v51 = vld [vmem:[%s840_s1] sm:$0xff]  }
   0x5   :  { %601 = vmatprep.subr.bf16.mxu1 %v686_v0  ;;  %v558_v60 = vld [vmem:[%s841_s0 + $0x4] sm:$0x3]  ;;  %v564_v24 = vld [vmem:[%s841_s0 + $0x6] sm:$0x3] }
   0x7   :  { %594 = vmatpush3.bf16.msra.mxu0 %v637_v2 }
   0x8   :  { %v20_v3 = vld [vmem:[#allocation2] sm:$0x3]  ;;  %607 = vmatprep.subr.bf16.mxu0 %v686_v0  ;;  %v90_v12 = vld [vmem:[#allocation3] sm:$0x3]  ;;  %602 = vmatpush3.bf16.msra.mxu1 %v639_v25 }
   0x9   :  { %v21_v4 = vpack.c.bf16 %v20_v3, %v20_v3  ;;  %615 = vmatprep.subr.bf16.mxu1 %v686_v0 }
   0xb   :  { %596 = vmatmul.mubr.msk.bf16.vlgmr.msra.gmra.mrb[0].mxu0 %vm38_vm2, %v21_v4 }
   0xc   :  { %611 = vmatprep.mubr.msk.bf16.mxu0 %vm687_vm1, %v686_v0  ;;  %608 = vmatpush3.bf16.msra.mxu0 %v640_v51 }
   0xd   :  { %609 = vmatprep.subr.bf16.mxu0 %v686_v0 }
  0x10   :  { %610 = vmatpush3.bf16.msra.mxu0 %v641_v52 }
  0x11   :  { %623 = vmatprep.subr.bf16.mxu0 %v686_v0 }
  0xde   :  { %v76_v6 = vpop.f32.mrb[0].mxu0 }
  0xdf   :  { %v82_v7 = vadd.f32 %v76_v6, %v19_v5  ;;  %v597_v8 = vpop.f32.mrb[1].mxu0 }
  0xe0   :  { %v79_v9 = vpop.f32.mrb[2].mxu0 }
  0xe1   :  { %646 = vtanh.f32 %v82_v7  ;;  %v598_v10 = vpop.f32.mrb[3].mxu0  ;;  %v551_v13 = vmul.f32 -1.442695, %v82_v7 }
  0xe3   :  { %648 = vpow2.f32 %v551_v13 }
  0xeb   :  { %v647_v11 = vpop.eup %646 }
  0xec   :  { %97 = vrot.lane.b32.xlu0 %v647_v11, %s688_s15 }
  0xed   :  { %v649_v14 = vpop.eup %648 }
  0xee   :  { %v86_v15 = vadd.f32 1.0, %v649_v14 }
  0xf0   :  { %92 = vrot.lane.b32.xlu0 %v90_v12, %s689_s16  ;;  %650 = vrcp.f32 %v86_v15  ;;  %v642_v15 = vld [vmem:[%s840_s1] sm:$0xff]  }
  0xfa   :  { %v651_v16 = vpop.eup %650 }
 0x15e   :  { %v98_v17 = vpop.permute.xlu0 %97 }
 0x15f   :  { %v100_v18 = vmul.f32 %v651_v16, %v98_v17 }
 0x161   :  { %102 = vrot.lane.b32.xlu1 %v100_v18, %s689_s16 }
 0x162   :  { %v93_v19 = vpop.permute.xlu0 %92 }
 0x163   :  { %v95_v20 = vmul.f32 %v651_v16, %v93_v19 }
 0x1d3   :  { %v103_v21 = vpop.permute.xlu1 %102 }
 0x1d4   :  { %v105_v22 = vadd.f32 %v103_v21, %v95_v20 }
 0x1d6   :  { %652 = vtanh.f32 %v105_v22 }
 0x1e0   :  { %v653_v23 = vpop.eup %652 }
 0x1e1   :  { %108 = vrot.lane.b32.xlu1 %v653_v23, %s688_s15 }
 0x1e5   :  { %113 = vrot.lane.b32.xlu1 %v105_v22, %s690_s17 }
 0x253   :  { %v109_v26 = vpop.permute.xlu1 %108 }
 0x254   :  { %v111_v27 = vmul.f32 %v651_v16, %v109_v26  ;;  %v643_v16 = vld [vmem:[%s840_s1 + $0x8] sm:$0xff]  }
 0x256   :  { %119 = vrot.lane.b32.xlu0 %v111_v27, %s689_s16 }
 0x257   :  { %v114_v28 = vpop.permute.xlu1 %113 }
 0x258   :  { %117 = vst.msk [vmem:[#allocation3] sm:$0x3] %vm16_vm0, %v114_v28 }
 0x25f   :  { %v195_v29 = vld [vmem:[#allocation3] sm:$0x3] }
 0x260   :  { %197 = vrot.lane.b32.xlu1 %v195_v29, %s689_s16 }
 0x2c8   :  { %v120_v30 = vpop.permute.xlu0 %119 }
 0x2c9   :  { %122 = vst.msk [vmem:[#allocation2] sm:$0x3] %vm16_vm0, %v120_v30  ;;  %123 = vst.msk [vmem:[%s842_s2] sm:$0x3] %vm16_vm0, %v120_v30 }
 0x2d0   :  { %v126_v31 = vld [vmem:[#allocation2] sm:$0x3] }
 0x2d1   :  { %v127_v32 = vpack.c.bf16 %v126_v31, %v126_v31 }
 0x2d2   :  { %v198_v46 = vpop.permute.xlu1 %197 }
 0x2d3   :  { %604 = vmatmul.mubr.msk.bf16.vlgmr.msra.gmra.mrb[0].mxu1 %vm38_vm2, %v127_v32 }
 0x2d4   :  { %619 = vmatprep.mubr.msk.bf16.mxu1 %vm687_vm1, %v686_v0  ;;  %616 = vmatpush3.bf16.msra.mxu1 %v642_v15 }
 0x2d5   :  { %617 = vmatprep.subr.bf16.mxu1 %v686_v0 }
 0x2d8   :  { %618 = vmatpush3.bf16.msra.mxu1 %v643_v16 }
 0x3a6   :  { %v181_v34 = vpop.f32.mrb[0].mxu1 }
 0x3a7   :  { %v187_v35 = vadd.f32 %v552_v33, %v181_v34  ;;  %v605_v36 = vpop.f32.mrb[1].mxu1 }
 0x3a8   :  { %v184_v37 = vpop.f32.mrb[2].mxu1 }
 0x3a9   :  { %654 = vtanh.f32 %v187_v35  ;;  %v606_v38 = vpop.f32.mrb[3].mxu1  ;;  %v556_v40 = vmul.f32 -1.442695, %v187_v35 }
 0x3ab   :  { %656 = vpow2.f32 %v556_v40 }
 0x3b3   :  { %v655_v39 = vpop.eup %654 }
 0x3b4   :  { %202 = vrot.lane.b32.xlu0 %v655_v39, %s688_s15 }
 0x3b5   :  { %v657_v41 = vpop.eup %656 }
 0x3b6   :  { %v191_v42 = vadd.f32 1.0, %v657_v41 }
 0x3b8   :  { %658 = vrcp.f32 %v191_v42  ;;  %v644_v42 = vld [vmem:[%s840_s1] sm:$0xff]  }
 0x3c2   :  { %v659_v43 = vpop.eup %658 }
 0x3c3   :  { %v200_v47 = vmul.f32 %v659_v43, %v198_v46 }
 0x426   :  { %v203_v44 = vpop.permute.xlu0 %202 }
 0x427   :  { %v205_v45 = vmul.f32 %v659_v43, %v203_v44 }
 0x429   :  { %207 = vrot.lane.b32.xlu0 %v205_v45, %s689_s16 }
 0x49b   :  { %v208_v48 = vpop.permute.xlu0 %207 }
 0x49c   :  { %v210_v49 = vadd.f32 %v208_v48, %v200_v47 }
 0x49e   :  { %660 = vtanh.f32 %v210_v49 }
 0x4a8   :  { %v661_v50 = vpop.eup %660 }
 0x4a9   :  { %213 = vrot.lane.b32.xlu1 %v661_v50, %s688_s15  ;;  %v570_v50 = vld [vmem:[%s841_s0 + $0x8] sm:$0x3] }
 0x4ad   :  { %218 = vrot.lane.b32.xlu1 %v210_v49, %s690_s17 }
 0x51b   :  { %v214_v53 = vpop.permute.xlu1 %213 }
 0x51c   :  { %v216_v54 = vmul.f32 %v659_v43, %v214_v53  ;;  %v645_v43 = vld [vmem:[%s840_s1 + $0x8] sm:$0xff]  }
 0x51e   :  { %223 = vrot.lane.b32.xlu0 %v216_v54, %s689_s16 }
 0x51f   :  { %v219_v55 = vpop.permute.xlu1 %218 }
 0x520   :  { %221 = vst.msk [vmem:[#allocation3] sm:$0x3] %vm16_vm0, %v219_v55 }
 0x527   :  { %v300_v56 = vld [vmem:[#allocation3] sm:$0x3] }
 0x528   :  { %302 = vrot.lane.b32.xlu1 %v300_v56, %s689_s16 }
 0x590   :  { %v224_v57 = vpop.permute.xlu0 %223 }
 0x591   :  { %226 = vst.msk [vmem:[#allocation2] sm:$0x3] %vm16_vm0, %v224_v57  ;;  %557 = vst.msk [vmem:[%s842_s2 + $0x2] sm:$0x3] %vm16_vm0, %v224_v57 }
 0x598   :  { %v231_v58 = vld [vmem:[#allocation2] sm:$0x3] }
 0x599   :  { %v232_v59 = vpack.c.bf16 %v231_v58, %v231_v58 }
 0x59a   :  { %v303_v10 = vpop.permute.xlu1 %302 }
 0x59b   :  { %612 = vmatmul.mubr.msk.bf16.vlgmr.msra.gmra.mrb[4].mxu0 %vm38_vm2, %v232_v59 }
 0x59c   :  { %627 = vmatprep.mubr.msk.bf16.mxu0 %vm687_vm1, %v686_v0  ;;  %624 = vmatpush3.bf16.msra.mxu0 %v644_v42 }
 0x59d   :  { %625 = vmatprep.subr.bf16.mxu0 %v686_v0 }
 0x5a0   :  { %626 = vmatpush3.bf16.msra.mxu0 %v645_v43 }
 0x66e   :  { %v286_v61 = vpop.f32.mrb[4].mxu0 }
 0x66f   :  { %v292_v62 = vadd.f32 %v558_v60, %v286_v61  ;;  %v613_v63 = vpop.f32.mrb[5].mxu0 }
 0x670   :  { %v289_v1 = vpop.f32.mrb[6].mxu0 }
 0x671   :  { %662 = vtanh.f32 %v292_v62  ;;  %v614_v2 = vpop.f32.mrb[7].mxu0  ;;  %v562_v4 = vmul.f32 -1.442695, %v292_v62 }
 0x673   :  { %664 = vpow2.f32 %v562_v4 }
 0x67b   :  { %v663_v3 = vpop.eup %662 }
 0x67c   :  { %307 = vrot.lane.b32.xlu0 %v663_v3, %s688_s15 }
 0x67d   :  { %v665_v5 = vpop.eup %664 }
 0x67e   :  { %v296_v6 = vadd.f32 1.0, %v665_v5 }
 0x680   :  { %666 = vrcp.f32 %v296_v6 }
 0x68a   :  { %v667_v7 = vpop.eup %666 }
 0x68b   :  { %v305_v11 = vmul.f32 %v667_v7, %v303_v10 }
 0x6ee   :  { %v308_v8 = vpop.permute.xlu0 %307 }
 0x6ef   :  { %v310_v9 = vmul.f32 %v667_v7, %v308_v8 }
 0x6f1   :  { %312 = vrot.lane.b32.xlu0 %v310_v9, %s689_s16 }
 0x763   :  { %v313_v12 = vpop.permute.xlu0 %312 }
 0x764   :  { %v315_v13 = vadd.f32 %v313_v12, %v305_v11 }
 0x766   :  { %668 = vtanh.f32 %v315_v13 }
 0x770   :  { %v669_v14 = vpop.eup %668 }
 0x771   :  { %318 = vrot.lane.b32.xlu1 %v669_v14, %s688_s15 }
 0x775   :  { %323 = vrot.lane.b32.xlu1 %v315_v13, %s690_s17 }
 0x7e3   :  { %v319_v17 = vpop.permute.xlu1 %318 }
 0x7e4   :  { %v321_v18 = vmul.f32 %v667_v7, %v319_v17 }
 0x7e6   :  { %328 = vrot.lane.b32.xlu0 %v321_v18, %s689_s16 }
 0x7e7   :  { %v324_v19 = vpop.permute.xlu1 %323 }
 0x7e8   :  { %326 = vst.msk [vmem:[#allocation3] sm:$0x3] %vm16_vm0, %v324_v19 }
 0x7ef   :  { %v405_v20 = vld [vmem:[#allocation3] sm:$0x3] }
 0x7f0   :  { %407 = vrot.lane.b32.xlu1 %v405_v20, %s689_s16 }
 0x858   :  { %v329_v21 = vpop.permute.xlu0 %328 }
 0x859   :  { %331 = vst.msk [vmem:[#allocation2] sm:$0x3] %vm16_vm0, %v329_v21  ;;  %563 = vst.msk [vmem:[%s842_s2 + $0x4] sm:$0x3] %vm16_vm0, %v329_v21 }
 0x860   :  { %v336_v22 = vld [vmem:[#allocation2] sm:$0x3] }
 0x861   :  { %v337_v23 = vpack.c.bf16 %v336_v22, %v336_v22 }
 0x862   :  { %v408_v37 = vpop.permute.xlu1 %407 }
 0x863   :  { %620 = vmatmul.mubr.msk.bf16.vlgmr.msra.gmra.mrb[4].mxu1 %vm38_vm2, %v337_v23 }
 0x936   :  { %v391_v25 = vpop.f32.mrb[4].mxu1 }
 0x937   :  { %v397_v26 = vadd.f32 %v564_v24, %v391_v25  ;;  %v621_v27 = vpop.f32.mrb[5].mxu1 }
 0x938   :  { %v394_v28 = vpop.f32.mrb[6].mxu1 }
 0x939   :  { %670 = vtanh.f32 %v397_v26  ;;  %v622_v29 = vpop.f32.mrb[7].mxu1  ;;  %v568_v31 = vmul.f32 -1.442695, %v397_v26 }
 0x93b   :  { %672 = vpow2.f32 %v568_v31 }
 0x943   :  { %v671_v30 = vpop.eup %670 }
 0x944   :  { %412 = vrot.lane.b32.xlu0 %v671_v30, %s688_s15 }
 0x945   :  { %v673_v32 = vpop.eup %672 }
 0x946   :  { %v401_v33 = vadd.f32 1.0, %v673_v32 }
 0x948   :  { %674 = vrcp.f32 %v401_v33 }
 0x952   :  { %v675_v34 = vpop.eup %674 }
 0x953   :  { %v410_v38 = vmul.f32 %v675_v34, %v408_v37 }
 0x9b6   :  { %v413_v35 = vpop.permute.xlu0 %412 }
 0x9b7   :  { %v415_v36 = vmul.f32 %v675_v34, %v413_v35 }
 0x9b9   :  { %417 = vrot.lane.b32.xlu0 %v415_v36, %s689_s16 }
 0xa2b   :  { %v418_v39 = vpop.permute.xlu0 %417 }
 0xa2c   :  { %v420_v40 = vadd.f32 %v418_v39, %v410_v38 }
 0xa2e   :  { %676 = vtanh.f32 %v420_v40 }
 0xa38   :  { %v677_v41 = vpop.eup %676 }
 0xa39   :  { %423 = vrot.lane.b32.xlu1 %v677_v41, %s688_s15 }
 0xa3d   :  { %428 = vrot.lane.b32.xlu1 %v420_v40, %s690_s17 }
 0xaab   :  { %v424_v44 = vpop.permute.xlu1 %423 }
 0xaac   :  { %v426_v45 = vmul.f32 %v675_v34, %v424_v44 }
 0xaae   :  { %433 = vrot.lane.b32.xlu0 %v426_v45, %s689_s16 }
 0xaaf   :  { %v429_v46 = vpop.permute.xlu1 %428 }
 0xab0   :  { %431 = vst.msk [vmem:[#allocation3] sm:$0x3] %vm16_vm0, %v429_v46 }
 0xab7   :  { %v510_v47 = vld [vmem:[#allocation3] sm:$0x3] }
 0xab8   :  { %512 = vrot.lane.b32.xlu1 %v510_v47, %s689_s16 }
 0xb20   :  { %v434_v48 = vpop.permute.xlu0 %433 }
 0xb21   :  { %436 = vst.msk [vmem:[#allocation2] sm:$0x3] %vm16_vm0, %v434_v48  ;;  %569 = vst.msk [vmem:[%s842_s2 + $0x6] sm:$0x3] %vm16_vm0, %v434_v48 }
 0xb28   :  { %v441_v0 = vld [vmem:[#allocation2] sm:$0x3] }
 0xb29   :  { %v442_v49 = vpack.c.bf16 %v441_v0, %v441_v0 }
 0xb2a   :  { %v513_v63 = vpop.permute.xlu1 %512 }
 0xb2b   :  { %628 = vmatmul.mubr.msk.bf16.vlgmr.msra.gmra.mrb[8].mxu0 %vm38_vm2, %v442_v49 }
 0xbfe   :  { %v496_v51 = vpop.f32.mrb[8].mxu0 }
 0xbff   :  { %v502_v52 = vadd.f32 %v570_v50, %v496_v51  ;;  %v629_v53 = vpop.f32.mrb[9].mxu0 }
 0xc00   :  { %v499_v54 = vpop.f32.mrb[10].mxu0 }
 0xc01   :  { %678 = vtanh.f32 %v502_v52  ;;  %v630_v55 = vpop.f32.mrb[11].mxu0  ;;  %v574_v57 = vmul.f32 -1.442695, %v502_v52 }
 0xc03   :  { %680 = vpow2.f32 %v574_v57 }
 0xc0b   :  { %v679_v56 = vpop.eup %678 }
 0xc0c   :  { %517 = vrot.lane.b32.xlu0 %v679_v56, %s688_s15 }
 0xc0d   :  { %v681_v58 = vpop.eup %680 }
 0xc0e   :  { %v506_v59 = vadd.f32 1.0, %v681_v58 }
 0xc10   :  { %682 = vrcp.f32 %v506_v59 }
 0xc1a   :  { %v683_v60 = vpop.eup %682 }
 0xc1b   :  { %v515_v1 = vmul.f32 %v683_v60, %v513_v63 }
 0xc7e   :  { %v518_v61 = vpop.permute.xlu0 %517 }
 0xc7f   :  { %v520_v62 = vmul.f32 %v683_v60, %v518_v61 }
 0xc81   :  { %522 = vrot.lane.b32.xlu0 %v520_v62, %s689_s16 }
 0xcf3   :  { %v523_v2 = vpop.permute.xlu0 %522 }
 0xcf4   :  { %v525_v3 = vadd.f32 %v523_v2, %v515_v1 }
 0xcf6   :  { %684 = vtanh.f32 %v525_v3  ;;  %533 = vrot.lane.b32.xlu0 %v525_v3, %s690_s17 }
 0xd00   :  { %v685_v4 = vpop.eup %684 }
 0xd01   :  { %528 = vrot.lane.b32.xlu1 %v685_v4, %s688_s15 }
 0xd68   :  { %v534_v5 = vpop.permute.xlu0 %533 }
 0xd69   :  { %536 = vst.msk [vmem:[#allocation3] sm:$0x3] %vm16_vm0, %v534_v5 }
 0xd73   :  { %v529_v6 = vpop.permute.xlu1 %528 }
 0xd74   :  { %v531_v7 = vmul.f32 %v683_v60, %v529_v6 }
 0xd76   :  { %538 = vrot.lane.b32.xlu1 %v531_v7, %s689_s16 }
 0xde8   :  { %v539_v8 = vpop.permute.xlu1 %538 }
 0xde9   :  { %541 = vst.msk [vmem:[#allocation2] sm:$0x3] %vm16_vm0, %v539_v8  ;;  %575 = vst.msk [vmem:[%s842_s2 + $0x8] sm:$0x3] %vm16_vm0, %v539_v8 }

// kernel: e2e_forward.11
= control target key start
LH: loop header
LB: loop body
LE: loop exit
PB: predicated region body
PF: predicated region fallthrough
CT: control target
= control target key end

     0   :  { %s2164_s24 = smov 0   ;;  %s2166_s25 = smov 0   ;;  %s2449_s0 = inlined_call_operand.vmem [shape: bf16[2,8,32], index: 0, kind: input, shape index: {}]   ;;  %s2450_s1 = inlined_call_operand.vmem [shape: bf16[2,5,32], index: 1, kind: input, shape index: {}]   ;;  %s2451_s2 = inlined_call_operand.vmem [shape: bf16[32,32], index: 2, kind: input, shape index: {}]   ;;  %s2452_s3 = inlined_call_operand.vmem [shape: f32[1,32], index: 3, kind: input, shape index: {}]   ;;  %s2453_s4 = inlined_call_operand.vmem [shape: bf16[32,32], index: 4, kind: input, shape index: {}]   ;;  %s2454_s5 = inlined_call_operand.vmem [shape: bf16[32,128], index: 5, kind: input, shape index: {}]   ;;  %s2455_s6 = inlined_call_operand.vmem [shape: f32[1,128], index: 6, kind: input, shape index: {}]   ;;  %s2456_s7 = inlined_call_operand.vmem [shape: f32[2,8,5,128], index: 7, kind: output, shape index: {}]  }
   0x1   :  { %s2168_s26 = smov 0  }
   0x2 LB: > { %s29_s27 = sadd.s32 1, %s2115_s25  ;;  %p1956_p0 = scmp.ge.s32.totalorder %s2119_s26, 1  ;;  %s2119_s26 = sphi %s2168_s26, %s17_s26   ;;  %s2115_s25 = sphi %s2166_s25, %s2458_s25   ;;  %s2111_s24 = sphi %s2164_s24, %s2457_s24  }
   0x3   : > { %p31_p1 = scmp.ge.s32.totalorder %s29_s27, 2  ;;  %p264_p2 = scmp.lt.s32.totalorder %s2119_s26, 3 }
   0x5   : > { %s2460_s27 = smov (%p31_p1, %s29_s27), 0  ;;  %p265_p3 = pnand %p1956_p0, %p264_p2 }
   0x6   : > { %v2055_v0 = vld [vmem:[%s2451_s2] sm:$0xff] (!%p265_p3)   ;;  %v2121_v1 = vmov (!%p265_p3), 0.0   ;;  %v2056_v2 = vld [vmem:[%s2451_s2 + $0x8] sm:$0xff] (!%p265_p3)   ;;  %vm2122_vm0 = vmmov (!%p265_p3), 0   ;;  %p306_p4 = scmp.lt.s32.totalorder (!%p265_p3), %s2111_s24, 1  ;;  %vm353_vm1 = vcmask (!%p265_p3), 261120   ;;  %v461_v11 = vlaneseq (!%p265_p3) }
   0x7   : > { %268 = sbr.rel (%p265_p3) target bundleno = 857 (0x359), region = 48  ;;  %1996 = vmatprep.subr.bf16.mxu1 (!%p265_p3), %v2121_v1  ;;  %2012 = vmatprep.subr.bf16.mxu0 (!%p265_p3), %v2121_v1  ;;  %v2057_v3 = vld [vmem:[%s2453_s4] sm:$0xff] (!%p265_p3)   ;;  %v2058_v5 = vld [vmem:[%s2453_s4 + $0x8] sm:$0xff] (!%p265_p3)   ;;  %v2123_v9 = vmov (!%p265_p3), 1966171168  }
   0x8   : > { %1997 = vmatpush3.bf16.msra.mxu1 (!%p265_p3), %v2055_v0  ;;  %2000 = vmatprep.mubr.msk.bf16.mxu1 (!%p265_p3), %vm2122_vm0, %v2121_v1  ;;  %v2059_v7 = vld [vmem:[%s2454_s5] sm:$0xff] (!%p265_p3)   ;;  %v2060_v8 = vld [vmem:[%s2454_s5 + $0x8] sm:$0xff] (!%p265_p3)   ;;  %v459_v10 = vunpack.c.l.s4 (!%p265_p3), %v2123_v9  ;;  %v462_v13 = vshrl.u32 (!%p265_p3), %v461_v11, 7 }
   0x9   : > { %1998 = vmatprep.subr.bf16.mxu1 (!%p265_p3), %v2121_v1  ;;  %2016 = vmatprep.mubr.msk.bf16.mxu0 (!%p265_p3), %vm2122_vm0, %v2121_v1  ;;  %v1961_v14 = vld [vmem:[%s2452_s3] ss:$0 sm:$0xff] (!%p265_p3) }
   0xa   : > { %2013 = vmatpush3.bf16.msra.mxu0 (!%p265_p3), %v2059_v7  ;;  %v460_v12 = vunpack.c.0.s8 (!%p265_p3), %v459_v10  ;;  %v508_v23 = vsub.s32 (!%p265_p3), 0, %v462_v13 }
   0xb   : > { %2014 = vmatprep.subr.bf16.mxu0 (!%p265_p3), %v2121_v1 }
   0xc   : > { %1999 = vmatpush3.bf16.msra.mxu1 (!%p265_p3), %v2056_v2  ;;  %v2226_v15 = vsub.s32 (!%p265_p3), %v460_v12, %v462_v13 }
   0xd   : > { %2004 = vmatprep.subr.bf16.mxu1 (!%p265_p3), %v2121_v1 }
   0xe   : > { %s2462_s24 = smov (!%p306_p4, %s2111_s24), 1  ;;  %2015 = vmatpush3.bf16.msra.mxu0 %v2060_v8 }
   0xf   : > { %s1957_s9 = sshll.u32 %s2462_s24, 2 }
  0x10   : > { %s312_s14 = scalar_lea.vmem %s2449_s0, %s1957_s9  ;;  %s316_s19 = scalar_lea.vmem %s2450_s1, %s1957_s9 }
  0x11   : > { %v328_v4 = vld [vmem:[%s312_s14] sm:$0xf]  ;;  %s1984_s9 = sshll.u32 %s2462_s24, 6 }
  0x12   : > { %2001 = vmatmul.mubr.msk.bf16.vlgmr.msra.gmra.mrb[0].mxu1 %vm353_vm1, %v328_v4  ;;  %v329_v6 = vld [vmem:[%s316_s19] sm:$0x7]  ;;  %s2375_s11 = scalar_lea.vmem %s2456_s7, %s1984_s9 }
  0x13   : > { %2005 = vmatpush3.bf16.msra.mxu1 %v2057_v3  ;;  %2008 = vmatprep.mubr.msk.bf16.mxu1 %vm2122_vm0, %v2121_v1 }
  0x14   : > { %2006 = vmatprep.subr.bf16.mxu1 %v2121_v1 }
  0x17   : > { %2007 = vmatpush3.bf16.msra.mxu1 %v2058_v5 }
  0x1a   : > { %2009 = vmatmul.mubr.msk.bf16.vlgmr.msra.gmra.mrb[4].mxu1 %vm353_vm1, %v329_v6 }
  0xe5   : > { %v391_v16 = vpop.f32.mrb[0].mxu1 }
  0xe6   : > { %v392_v17 = vadd.f32 %v1961_v14, %v391_v16  ;;  %v2002_v18 = vpop.f32.mrb[1].mxu1 }
  0xe7   : > { %v394_v19 = vpop.f32.mrb[2].mxu1 }
  0xe8   : > { %v457_v20 = vcombine.high %v392_v17, %v392_v17  ;;  %v464_v21 = vrot.slane %v392_v17, %v2226_v15  ;;  %v2003_v22 = vpop.f32.mrb[3].mxu1 }
  0xea   : > { %v471_v24 = vrot.slane %v457_v20, %v2226_v15  ;;  %v472_v25 = vcombine.high %v464_v21, %v464_v21  ;;  %v480_v26 = vrot.slane %v464_v21, %v2226_v15 }
  0xec   : > { %v473_v27 = vcombine.high %v471_v24, %v471_v24  ;;  %v487_v28 = vrot.slane %v471_v24, %v2226_v15  ;;  %v494_v29 = vrot.slane %v472_v25, %v2226_v15  ;;  %v502_v30 = vcombine.high %v480_v26, %v480_v26 }
  0xed   : > { %v509_v31 = vrot.slane %v480_v26, %v508_v23  ;;  %v450_v32 = vpop.f32.mrb[4].mxu1 }
  0xee   : > { %v501_v33 = vrot.slane %v473_v27, %v2226_v15  ;;  %v503_v34 = vcombine.high %v487_v28, %v487_v28  ;;  %v504_v35 = vcombine.high %v494_v29, %v494_v29  ;;  %v513_v36 = vrot.slane %v494_v29, %v508_v23  ;;  %v2010_v37 = vpop.f32.mrb[5].mxu1 }
  0xef   : > { %v517_v38 = vrot.slane %v502_v30, %v508_v23  ;;  %v525_v39 = vrot.slane %v487_v28, %v508_v23  ;;  %v546_v40 = vadd.f32 %v509_v31, %v450_v32  ;;  %v453_v41 = vpop.f32.mrb[6].mxu1 }
  0xf0   : > { %v505_v42 = vcombine.high %v501_v33, %v501_v33  ;;  %v521_v43 = vrot.slane %v504_v35, %v508_v23  ;;  %v529_v44 = vrot.slane %v501_v33, %v508_v23  ;;  %v533_v45 = vrot.slane %v503_v34, %v508_v23  ;;  %v2011_v46 = vpop.f32.mrb[7].mxu1 }
  0xf1   : > { %v547_v47 = vadd.f32 %v513_v36, %v450_v32  ;;  %v548_v48 = vadd.f32 %v517_v38, %v450_v32  ;;  %v550_v49 = vadd.f32 %v525_v39, %v450_v32  ;;  %2061 = vtanh.f32 %v546_v40 }
  0xf2   : > { %v537_v50 = vrot.slane %v505_v42, %v508_v23  ;;  %v549_v51 = vadd.f32 %v521_v43, %v450_v32  ;;  %v551_v52 = vadd.f32 %v529_v44, %v450_v32  ;;  %v552_v53 = vadd.f32 %v533_v45, %v450_v32 }
  0xf3   : > { %2063 = vtanh.f32 %v547_v47 }
  0xf4   : > { %v553_v54 = vadd.f32 %v537_v50, %v450_v32  ;;  %2065 = vtanh.f32 %v548_v48 }
  0xf5   : > { %2067 = vtanh.f32 %v549_v51 }
  0xf6   : > { %2069 = vtanh.f32 %v550_v49 }
  0xf7   : > { %2071 = vtanh.f32 %v551_v52 }
  0xf8   : > { %2073 = vtanh.f32 %v552_v53 }
  0xf9   : > { %2075 = vtanh.f32 %v553_v54 }
  0xfb   : > { %v2062_v55 = vpop.eup %2061 }
  0xfc   : > { %v570_v56 = vcombine.high %v2062_v55, %v2062_v55  ;;  %v577_v57 = vrot.slane %v2062_v55, %v2226_v15 }
  0xfd   : > { %v2064_v58 = vpop.eup %2063 }
  0xfe   : > { %v2066_v59 = vpop.eup %2065  ;;  %v584_v60 = vrot.slane %v570_v56, %v2226_v15  ;;  %v585_v61 = vcombine.high %v577_v57, %v577_v57  ;;  %v609_v62 = vcombine.high %v2064_v58, %v2064_v58  ;;  %v592_v0 = vrot.slane %v577_v57, %v2226_v15 }
  0xff   : > { %v2068_v63 = vpop.eup %2067  ;;  %v616_v2 = vrot.slane %v2064_v58, %v2226_v15  ;;  %v648_v3 = vcombine.high %v2066_v59, %v2066_v59  ;;  %v655_v4 = vrot.slane %v2066_v59, %v2226_v15 }
 0x100   : > { %v599_v5 = vrot.slane %v584_v60, %v2226_v15  ;;  %v606_v6 = vrot.slane %v585_v61, %v2226_v15  ;;  %v623_v7 = vrot.slane %v609_v62, %v2226_v15  ;;  %v694_v8 = vrot.slane %v2068_v63, %v2226_v15  ;;  %v2070_v26 = vpop.eup %2069 }
 0x101   : > { %v624_v9 = vcombine.high %v616_v2, %v616_v2  ;;  %v631_v10 = vrot.slane %v616_v2, %v2226_v15  ;;  %v662_v11 = vrot.slane %v648_v3, %v2226_v15  ;;  %v663_v12 = vcombine.high %v655_v4, %v655_v4  ;;  %v2072_v31 = vpop.eup %2071 }
 0x102   : > { %v638_v13 = vrot.slane %v623_v7, %v2226_v15  ;;  %v670_v14 = vrot.slane %v655_v4, %v2226_v15  ;;  %v709_v16 = vrot.slane %v694_v8, %v2226_v15  ;;  %v882_v17 = vcombine.low %v592_v0, %v606_v6  ;;  %v2255_v36 = vpop.eup %2073 }
 0x103   : > { %v645_v18 = vrot.slane %v624_v9, %v2226_v15  ;;  %v646_v19 = vcombine.high %v631_v10, %v631_v10  ;;  %v677_v20 = vrot.slane %v662_v11, %v2226_v15  ;;  %v684_v21 = vrot.slane %v663_v12, %v2226_v15  ;;  %v2260_v41 = vpop.eup %2075 }
 0x104   : > { %v1968_v22 = vcombine.high %v592_v0, %v606_v6  ;;  %v884_v23 = vcombine.low %v599_v5, %v631_v10  ;;  %v892_v24 = vrot.slane %v882_v17, %v2226_v15  ;;  %v687_v25 = vcombine.high %v2068_v63, %v2068_v63 }
 0x105   : > { %v647_v27 = vcombine.high %v645_v18, %v645_v18  ;;  %v885_v28 = vcombine.low %v645_v18, %v646_v19  ;;  %v932_v29 = vcombine.low %v670_v14, %v684_v21  ;;  %v1969_v30 = vcombine.high %v670_v14, %v684_v21 }
 0x106   : > { %v899_v32 = vrot.slane %v1968_v22, %v2226_v15  ;;  %v906_v33 = vrot.slane %v884_v23, %v2226_v15  ;;  %v934_v34 = vcombine.low %v677_v20, %v709_v16  ;;  %v701_v35 = vrot.slane %v687_v25, %v2226_v15 }
 0x107   : > { %v913_v37 = vrot.slane %v885_v28, %v2226_v15  ;;  %v931_v38 = vcombine.low %v647_v27, %v638_v13  ;;  %v948_v39 = vrot.slane %v932_v29, %v2226_v15  ;;  %v955_v40 = vrot.slane %v1969_v30, %v2226_v15 }
 0x108   : > { %v914_v42 = vcombine.low %v892_v24, %v899_v32  ;;  %v962_v43 = vrot.slane %v934_v34, %v2226_v15  ;;  %v702_v44 = vcombine.high %v694_v8, %v694_v8  ;;  %v716_v45 = vrot.slane %v701_v35, %v2226_v15 }
 0x109   : > { %v915_v46 = vcombine.low %v906_v33, %v913_v37  ;;  %v941_v47 = vrot.slane %v931_v38, %v2226_v15  ;;  %v724_v48 = vcombine.high %v709_v16, %v709_v16  ;;  %v726_v49 = vcombine.high %v2070_v26, %v2070_v26 }
 0x10a   : > { %v922_v50 = vrot.slane %v914_v42, %v2226_v15  ;;  %v964_v51 = vcombine.low %v955_v40, %v962_v43  ;;  %v723_v52 = vrot.slane %v702_v44, %v2226_v15  ;;  %v733_v53 = vrot.slane %v2070_v26, %v2226_v15 }
 0x10b   : > { %v929_v54 = vrot.slane %v915_v46, %v2226_v15  ;;  %v963_v55 = vcombine.low %v941_v47, %v948_v39  ;;  %v740_v56 = vrot.slane %v726_v49, %v2226_v15  ;;  %v765_v57 = vcombine.high %v2072_v31, %v2072_v31 }
 0x10c   : > { %v978_v58 = vrot.slane %v964_v51, %v2226_v15  ;;  %v725_v59 = vcombine.high %v723_v52, %v723_v52  ;;  %v741_v60 = vcombine.high %v733_v53, %v733_v53  ;;  %v748_v61 = vrot.slane %v733_v53, %v2226_v15 }
 0x10d   : > { %v930_v62 = vcombine.low %v922_v50, %v929_v54  ;;  %v971_v63 = vrot.slane %v963_v55, %v2226_v15  ;;  %v755_v0 = vrot.slane %v740_v56, %v2226_v15  ;;  %v772_v2 = vrot.slane %v2072_v31, %v2226_v15 }
 0x10e   : > { %v762_v3 = vrot.slane %v741_v60, %v2226_v15  ;;  %v779_v4 = vrot.slane %v765_v57, %v2226_v15  ;;  %v811_v5 = vrot.slane %v2255_v36, %v2226_v15  ;;  %v980_v6 = vcombine.low %v723_v52, %v724_v48 }
 0x10f   : > { %v979_v7 = vcombine.low %v971_v63, %v978_v58  ;;  %v780_v8 = vcombine.high %v772_v2, %v772_v2  ;;  %v787_v9 = vrot.slane %v772_v2, %v2226_v15  ;;  %v981_v10 = vcombine.low %v725_v59, %v716_v45 }
 0x110   : > { %v794_v11 = vrot.slane %v779_v4, %v2226_v15  ;;  %v819_v12 = vcombine.high %v811_v5, %v811_v5  ;;  %v826_v13 = vrot.slane %v811_v5, %v2226_v15  ;;  %v982_v14 = vcombine.low %v748_v61, %v762_v3 }
 0x111   : > { %v1132_v16 = vpack.c.bf16 %v979_v7, %v930_v62  ;;  %v801_v17 = vrot.slane %v780_v8, %v2226_v15  ;;  %v802_v18 = vcombine.high %v787_v9, %v787_v9  ;;  %v1970_v19 = vcombine.high %v748_v61, %v762_v3  ;;  %v1972_v8 = vld [vmem:[%s2455_s6] ss:$0 sm:$0xff] }
 0x112   : > { %v840_v20 = vrot.slane %v819_v12, %v2226_v15  ;;  %v990_v21 = vrot.slane %v980_v6, %v2226_v15  ;;  %v997_v22 = vrot.slane %v981_v10, %v2226_v15  ;;  %v1004_v23 = vrot.slane %v982_v14, %v2226_v15 }
 0x113   : > { %2017 = vmatmul.mubr.msk.bf16.vlgmr.msra.gmra.mrb[0].mxu0 %vm353_vm1, %v1132_v16  ;;  %v803_v24 = vcombine.high %v801_v17, %v801_v17  ;;  %v1011_v25 = vrot.slane %v1970_v19, %v2226_v15  ;;  %v1029_v26 = vcombine.low %v755_v0, %v787_v9  ;;  %v1030_v27 = vcombine.low %v801_v17, %v802_v18 }
 0x114   : > { %2020 = vmatprep.mubr.msk.bf16.mxu0 %vm2122_vm0, %v2121_v1  ;;  %v1012_v28 = vcombine.low %v990_v21, %v997_v22  ;;  %v1032_v29 = vcombine.low %v826_v13, %v840_v20  ;;  %v804_v30 = vcombine.high %v2255_v36, %v2255_v36  ;;  %v843_v31 = vcombine.high %v2260_v41, %v2260_v41 }
 0x115   : > { %v1013_v32 = vcombine.low %v1004_v23, %v1011_v25  ;;  %v1031_v33 = vcombine.low %v803_v24, %v794_v11  ;;  %v1039_v34 = vrot.slane %v1029_v26, %v2226_v15  ;;  %v1046_v35 = vrot.slane %v1030_v27, %v2226_v15 }
 0x116   : > { %v1020_v37 = vrot.slane %v1012_v28, %v2226_v15  ;;  %v1060_v38 = vrot.slane %v1032_v29, %v2226_v15  ;;  %v818_v39 = vrot.slane %v804_v30, %v2226_v15  ;;  %v850_v40 = vrot.slane %v2260_v41, %v2226_v15 }
 0x117   : > { %v1027_v36 = vrot.slane %v1013_v32, %v2226_v15  ;;  %v1053_v42 = vrot.slane %v1031_v33, %v2226_v15  ;;  %v1061_v43 = vcombine.low %v1039_v34, %v1046_v35  ;;  %v857_v44 = vrot.slane %v843_v31, %v2226_v15 }
 0x118   : > { %v833_v45 = vrot.slane %v818_v39, %v2226_v15  ;;  %v858_v46 = vcombine.high %v850_v40, %v850_v40  ;;  %v865_v47 = vrot.slane %v850_v40, %v2226_v15  ;;  %v1971_v48 = vcombine.high %v826_v13, %v840_v20 }
 0x119   : > { %v1028_v49 = vcombine.low %v1020_v37, %v1027_v36  ;;  %v1062_v50 = vcombine.low %v1053_v42, %v1060_v38  ;;  %v1069_v54 = vrot.slane %v1061_v43, %v2226_v15  ;;  %v872_v56 = vrot.slane %v857_v44, %v2226_v15 }
 0x11a   : > { %v879_v51 = vrot.slane %v858_v46, %v2226_v15  ;;  %v880_v52 = vcombine.high %v865_v47, %v865_v47  ;;  %v1079_v53 = vcombine.low %v833_v45, %v865_v47  ;;  %v1088_v41 = vrot.slane %v1971_v48, %v2226_v15 }
 0x11b   : > { %v1076_v55 = vrot.slane %v1062_v50, %v2226_v15 }
 0x11c   : > { %v881_v57 = vcombine.high %v879_v51, %v879_v51  ;;  %v1080_v58 = vcombine.low %v879_v51, %v880_v52  ;;  %v1095_v59 = vrot.slane %v1079_v53, %v2226_v15 }
 0x11d   : > { %v1077_v60 = vcombine.low %v1069_v54, %v1076_v55 }
 0x11e   : > { %v1081_v61 = vcombine.low %v881_v57, %v872_v56  ;;  %v1110_v62 = vcombine.low %v1088_v41, %v1095_v59  ;;  %v1102_v0 = vrot.slane %v1080_v58, %v2226_v15 }
 0x11f   : > { %v1133_v63 = vpack.c.bf16 %v1077_v60, %v1028_v49 }
 0x120   : > { %v1109_v2 = vrot.slane %v1081_v61, %v2226_v15  ;;  %v1118_v4 = vrot.slane %v1110_v62, %v2226_v15 }
 0x121   : > { %2021 = vmatmul.mubr.msk.bf16.gmra.mrb[4].mxu0 %vm353_vm1, %v1133_v63 }
 0x122   : > { %2024 = vmatprep.mubr.msk.bf16.mxu0 %vm2122_vm0, %v2121_v1  ;;  %v1111_v3 = vcombine.low %v1102_v0, %v1109_v2 }
 0x124   : > { %v1125_v5 = vrot.slane %v1111_v3, %v2226_v15 }
 0x126   : > { %v1126_v6 = vcombine.low %v1118_v4, %v1125_v5 }
 0x128   : > { %v1134_v7 = vpack.c.bf16 %v1126_v6, %v1126_v6 }
 0x12a   : > { %2025 = vmatmul.mubr.msk.bf16.gmra.mrb[8].mxu0 %vm353_vm1, %v1134_v7 }
 0x1e6   : > { %v1201_v9 = vpop.f32.mrb[0].mxu0 }
 0x1e7   : > { %v1202_v10 = vadd.f32 %v1972_v8, %v1201_v9  ;;  %v2018_v11 = vpop.f32.mrb[1].mxu0 }
 0x1e8   : > { %v1204_v12 = vpop.f32.mrb[2].mxu0 }
 0x1e9   : > { %1223 = vmax.xlane.f32.xlu0 %v1202_v10  ;;  %v2019_v13 = vpop.f32.mrb[3].mxu0  ;;  %v2324_v1 = vadd.f32 %v1972_v8, %v1204_v12 }
 0x1ed   : > { %1225 = vmax.xlane.f32.xlu0 %v2324_v1 }
 0x1f4   : > { %v1209_v14 = vpop.f32.mrb[4].mxu0 }
 0x1f5   : > { %v2327_v16 = vadd.f32 %v1972_v8, %v1209_v14  ;;  %v2022_v17 = vpop.f32.mrb[5].mxu0 }
 0x1f6   : > { %v1212_v18 = vpop.f32.mrb[6].mxu0 }
 0x1f7   : > { %1227 = vmax.xlane.f32.xlu1 %v2327_v16  ;;  %v2023_v19 = vpop.f32.mrb[7].mxu0  ;;  %v2330_v20 = vadd.f32 %v1972_v8, %v1212_v18 }
 0x1fb   : > { %1229 = vmax.xlane.f32.xlu1 %v2330_v20 }
 0x1fd   : > { %v1217_v21 = vpop.f32.mrb[8].mxu0 }
 0x1fe   : > { %v2333_v22 = vadd.f32 %v1972_v8, %v1217_v21  ;;  %v2026_v23 = vpop.f32.mrb[9].mxu0 }
 0x1ff   : > { %v1220_v24 = vpop.f32.mrb[10].mxu0 }
 0x200   : > { %1231 = vmax.xlane.f32.xlu0 %v2333_v22  ;;  %v2027_v25 = vpop.f32.mrb[11].mxu0 }
 0x276   : > { %v1224_v26 = vpop.xlane.xlu0 %1223 }
 0x277   : > { %v1233_v27 = vsub.f32 %v1202_v10, %v1224_v26 }
 0x279   : > { %v1238_v28 = vmul.f32 1.442695, %v1233_v27 }
 0x27a   : > { %v1226_v29 = vpop.xlane.xlu0 %1225 }
 0x27b   : > { %2077 = vpow2.f32 %v1238_v28  ;;  %v1234_v30 = vsub.f32 %v2324_v1, %v1226_v29 }
 0x27d   : > { %v1240_v31 = vmul.f32 1.442695, %v1234_v30 }
 0x27f   : > { %2079 = vpow2.f32 %v1240_v31 }
 0x284   : > { %v2337_v32 = vpop.xlane.xlu1 %1227 }
 0x285   : > { %v2078_v33 = vpop.eup %2077  ;;  %v1235_v34 = vsub.f32 %v2327_v16, %v2337_v32 }
 0x286   : > { %1248 = vadd.xlane.f32.xlu1 %v2078_v33 }
 0x287   : > { %v1242_v35 = vmul.f32 1.442695, %v1235_v34 }
 0x288   : > { %v2341_v37 = vpop.xlane.xlu1 %1229 }
 0x289   : > { %v2080_v38 = vpop.eup %2079  ;;  %2081 = vpow2.f32 %v1242_v35  ;;  %v1236_v39 = vsub.f32 %v2330_v20, %v2341_v37 }
 0x28a   : > { %1250 = vadd.xlane.f32.xlu0 %v2080_v38 }
 0x28b   : > { %v1244_v40 = vmul.f32 1.442695, %v1236_v39 }
 0x28d   : > { %2083 = vpow2.f32 %v1244_v40  ;;  %v2345_v36 = vpop.xlane.xlu0 %1231 }
 0x28e   : > { %v1237_v42 = vsub.f32 %v2333_v22, %v2345_v36 }
 0x290   : > { %v1246_v43 = vmul.f32 1.442695, %v1237_v42 }
 0x292   : > { %2085 = vpow2.f32 %v1246_v43 }
 0x293   : > { %v2082_v44 = vpop.eup %2081 }
 0x294   : > { %1252 = vadd.xlane.f32.xlu1 %v2082_v44 }
 0x297   : > { %v2084_v45 = vpop.eup %2083 }
 0x298   : > { %1254 = vadd.xlane.f32.xlu0 %v2084_v45 }
 0x29c   : > { %v2086_v46 = vpop.eup %2085 }
 0x29d   : > { %1256 = vadd.xlane.f32.xlu1 %v2086_v46 }
 0x313   : > { %v1249_v47 = vpop.xlane.xlu1 %1248 }
 0x314   : > { %2087 = vlog2.f32 %v1249_v47 }
 0x317   : > { %v1251_v48 = vpop.xlane.xlu0 %1250 }
 0x318   : > { %2089 = vlog2.f32 %v1251_v48 }
 0x31e   : > { %v2088_v49 = vpop.eup %2087 }
 0x31f   : > { %v1259_v50 = vmul.f32 0.6931472, %v2088_v49 }
 0x321   : > { %v1268_v51 = vadd.f32 %v1259_v50, %v1224_v26  ;;  %v1253_v52 = vpop.xlane.xlu1 %1252 }
 0x322   : > { %v2090_v53 = vpop.eup %2089  ;;  %2091 = vlog2.f32 %v1253_v52 }
 0x323   : > { %v1273_v41 = vsub.f32 %v1202_v10, %v1268_v51  ;;  %v1261_v54 = vmul.f32 0.6931472, %v2090_v53 }
 0x325   : > { %v1283_v55 = vcombine.high %v1273_v41, %v1273_v41  ;;  %v1290_v56 = vrot.slane %v1273_v41, %v2226_v15  ;;  %v1269_v57 = vadd.f32 %v1261_v54, %v1226_v29  ;;  %v1255_v58 = vpop.xlane.xlu0 %1254 }
 0x326   : > { %2093 = vlog2.f32 %v1255_v58 }
 0x327   : > { %v1297_v59 = vrot.slane %v1283_v55, %v2226_v15  ;;  %v1298_v60 = vcombine.high %v1290_v56, %v1290_v56  ;;  %v1274_v61 = vsub.f32 %v2324_v1, %v1269_v57  ;;  %v1306_v62 = vrot.slane %v1290_v56, %v2226_v15 }
 0x329   : > { %v1299_v63 = vcombine.high %v1297_v59, %v1297_v59  ;;  %v1313_v0 = vrot.slane %v1297_v59, %v2226_v15  ;;  %v1320_v2 = vrot.slane %v1298_v60, %v2226_v15  ;;  %v1332_v3 = vcombine.high %v1274_v61, %v1274_v61 }
 0x32a   : > { %v1339_v4 = vrot.slane %v1274_v61, %v2226_v15  ;;  %v1257_v42 = vpop.xlane.xlu1 %1256 }
 0x32b   : > { %v1327_v5 = vrot.slane %v1299_v63, %v2226_v15  ;;  %v1329_v6 = vcombine.high %v1313_v0, %v1313_v0  ;;  %v1528_v7 = vcombine.low %v1306_v62, %v1320_v2  ;;  %v1978_v8 = vcombine.high %v1306_v62, %v1320_v2 }
 0x32c   : > { %v2092_v9 = vpop.eup %2091  ;;  %v1550_v10 = vrot.slane %v1313_v0, %v2226_v15  ;;  %v1346_v11 = vrot.slane %v1332_v3, %v2226_v15  ;;  %v1347_v12 = vcombine.high %v1339_v4, %v1339_v4  ;;  %v1355_v13 = vrot.slane %v1339_v4, %v2226_v15 }
 0x32d   : > { %v1536_v1 = vrot.slane %v1528_v7, %v2226_v15  ;;  %v1543_v14 = vrot.slane %v1978_v8, %v2226_v15  ;;  %v1567_v17 = vcombine.low %v1327_v5, %v1329_v6  ;;  %v1331_v18 = vcombine.high %v1327_v5, %v1327_v5 }
 0x32e   : > { %v1565_v19 = vrot.slane %v1550_v10, %v2226_v15  ;;  %v1348_v21 = vcombine.high %v1346_v11, %v1346_v11  ;;  %v1362_v23 = vrot.slane %v1346_v11, %v2226_v15  ;;  %v1369_v24 = vrot.slane %v1347_v12, %v2226_v15 }
 0x32f   : > { %v1551_v25 = vcombine.low %v1536_v1, %v1543_v14  ;;  %v1575_v26 = vrot.slane %v1567_v17, %v2226_v15  ;;  %v1568_v27 = vcombine.low %v1331_v18, %v1355_v13  ;;  %v1263_v28 = vmul.f32 0.6931472, %v2092_v9 }
 0x330   : > { %v2094_v29 = vpop.eup %2093  ;;  %v1376_v30 = vrot.slane %v1348_v21, %v2226_v15  ;;  %v1378_v31 = vcombine.high %v1362_v23, %v1362_v23  ;;  %v1589_v33 = vrot.slane %v1369_v24, %v2226_v15  ;;  %v1979_v34 = vcombine.high %v1355_v13, %v1369_v24 }
 0x331   : > { %v1558_v35 = vrot.slane %v1551_v25, %v2226_v15  ;;  %v1582_v38 = vrot.slane %v1568_v27, %v2226_v15  ;;  %v1270_v39 = vadd.f32 %v1263_v28, %v2337_v32  ;;  %v1265_v40 = vmul.f32 0.6931472, %v2094_v29 }
 0x332   : > { %v1607_v43 = vcombine.low %v1362_v23, %v1376_v30  ;;  %v1614_v46 = vrot.slane %v1979_v34, %v2226_v15  ;;  %v1628_v49 = vrot.slane %v1378_v31, %v2226_v15  ;;  %2095 = vlog2.f32 %v1257_v42 }
 0x333   : > { %v1566_v44 = vcombine.low %v1558_v35, %v1565_v19  ;;  %v1590_v45 = vcombine.low %v1575_v26, %v1582_v38  ;;  %v1275_v47 = vsub.f32 %v2327_v16, %v1270_v39  ;;  %v1271_v32 = vadd.f32 %v1265_v40, %v2341_v37 }
 0x334   : > { %v1621_v48 = vrot.slane %v1607_v43, %v2226_v15  ;;  %v1604_v51 = vrot.slane %v1589_v33, %v2226_v15  ;;  %v1380_v54 = vcombine.high %v1376_v30, %v1376_v30  ;;  %v1643_v59 = vrot.slane %v1628_v49, %v2226_v15 }
 0x335   : > { %1848 = vst [vmem:[%s2375_s11] sm:$0x1f] %v1566_v44  ;;  %v1597_v50 = vrot.slane %v1590_v45, %v2226_v15  ;;  %v1381_v52 = vcombine.high %v1275_v47, %v1275_v47  ;;  %v1388_v53 = vrot.slane %v1275_v47, %v2226_v15  ;;  %v1276_v16 = vsub.f32 %v2330_v20, %v1271_v32 }
 0x336   : > { %v1629_v41 = vcombine.low %v1614_v46, %v1621_v48 }
 0x337   : > { %v1605_v55 = vcombine.low %v1597_v50, %v1604_v51  ;;  %v1395_v56 = vrot.slane %v1381_v52, %v2226_v15  ;;  %v1396_v57 = vcombine.high %v1388_v53, %v1388_v53  ;;  %v1404_v37 = vrot.slane %v1388_v53, %v2226_v15 }
 0x338   : > { %v1636_v58 = vrot.slane %v1629_v41, %v2226_v15  ;;  %v1430_v60 = vcombine.high %v1276_v16, %v1276_v16  ;;  %v1437_v61 = vrot.slane %v1276_v16, %v2226_v15 }
 0x339   : > { %1849 = vst [vmem:[%s2375_s11 + $0x8] sm:$0x1f] %v1605_v55  ;;  %v1397_v62 = vcombine.high %v1395_v56, %v1395_v56  ;;  %v1411_v63 = vrot.slane %v1395_v56, %v2226_v15  ;;  %v1418_v20 = vrot.slane %v1396_v57, %v2226_v15  ;;  %v1426_v0 = vcombine.high %v1404_v37, %v1404_v37 }
 0x33a   : > { %v1644_v2 = vcombine.low %v1636_v58, %v1643_v59  ;;  %v1645_v3 = vcombine.low %v1380_v54, %v1404_v37  ;;  %v1444_v4 = vrot.slane %v1430_v60, %v2226_v15  ;;  %v1445_v5 = vcombine.high %v1437_v61, %v1437_v61 }
 0x33b   : > { %v1425_v6 = vrot.slane %v1397_v62, %v2226_v15  ;;  %v1428_v7 = vcombine.high %v1418_v20, %v1418_v20  ;;  %v1646_v8 = vcombine.low %v1418_v20, %v1426_v0  ;;  %v1453_v9 = vrot.slane %v1437_v61, %v2226_v15 }
 0x33c   : > { %1850 = vst [vmem:[%s2375_s11 + $0x10] sm:$0x1f] %v1644_v2  ;;  %v1653_v10 = vrot.slane %v1645_v3, %v2226_v15  ;;  %v1446_v11 = vcombine.high %v1444_v4, %v1444_v4  ;;  %v1467_v12 = vrot.slane %v1445_v5, %v2226_v15  ;;  %v2096_v18 = vpop.eup %2095  ;;  %v1460_v19 = vrot.slane %v1444_v4, %v2226_v15 }
 0x33d   : > { %v1660_v13 = vrot.slane %v1646_v8, %v2226_v15  ;;  %v1667_v1 = vrot.slane %v1428_v7, %v2226_v15  ;;  %v1684_v14 = vcombine.low %v1411_v63, %v1425_v6  ;;  %v1980_v17 = vcombine.high %v1411_v63, %v1425_v6 }
 0x33e   : > { %v1474_v21 = vrot.slane %v1446_v11, %v2226_v15  ;;  %v1475_v23 = vcombine.high %v1453_v9, %v1453_v9  ;;  %v1477_v24 = vcombine.high %v1467_v12, %v1467_v12  ;;  %v1706_v28 = vrot.slane %v1453_v9, %v2226_v15 }
 0x33f   : > { %v1668_v25 = vcombine.low %v1653_v10, %v1660_v13  ;;  %v1692_v26 = vrot.slane %v1684_v14, %v2226_v15  ;;  %v1699_v27 = vrot.slane %v1980_v17, %v2226_v15  ;;  %v1682_v33 = vrot.slane %v1667_v1, %v2226_v15 }
 0x340   : > { %v1723_v29 = vcombine.low %v1467_v12, %v1475_v23  ;;  %v1724_v30 = vcombine.low %v1477_v24, %v1460_v19  ;;  %v1267_v35 = vmul.f32 0.6931472, %v2096_v18  ;;  %v1745_v40 = vrot.slane %v1474_v21, %v2226_v15 }
 0x341   : > { %v1675_v31 = vrot.slane %v1668_v25, %v2226_v15  ;;  %v1707_v34 = vcombine.low %v1692_v26, %v1699_v27  ;;  %v1721_v44 = vrot.slane %v1706_v28, %v2226_v15 }
 0x342   : > { %v1731_v38 = vrot.slane %v1723_v29, %v2226_v15  ;;  %v1738_v39 = vrot.slane %v1724_v30, %v2226_v15  ;;  %v1272_v45 = vadd.f32 %v1267_v35, %v2345_v36  ;;  %v1760_v32 = vrot.slane %v1745_v40, %v2226_v15 }
 0x343   : > { %v1683_v42 = vcombine.low %v1675_v31, %v1682_v33  ;;  %v1714_v43 = vrot.slane %v1707_v34, %v2226_v15  ;;  %v1981_v36 = vcombine.high %v1460_v19, %v1474_v21 }
 0x344   : > { %v1746_v46 = vcombine.low %v1731_v38, %v1738_v39  ;;  %v1277_v48 = vsub.f32 %v2333_v22, %v1272_v45 }
 0x345   : > { %1851 = vst [vmem:[%s2375_s11 + $0x18] sm:$0x1f] %v1683_v42  ;;  %v1722_v47 = vcombine.low %v1714_v43, %v1721_v44  ;;  %v1770_v60 = vrot.slane %v1981_v36, %v2226_v15 }
 0x346   : > { %v1753_v49 = vrot.slane %v1746_v46, %v2226_v15  ;;  %v1479_v50 = vcombine.high %v1277_v48, %v1277_v48  ;;  %v1486_v51 = vrot.slane %v1277_v48, %v2226_v15 }
 0x347   : > { %1852 = vst [vmem:[%s2375_s11 + $0x20] sm:$0x1f] %v1722_v47 }
 0x348   : > { %v1761_v52 = vcombine.low %v1753_v49, %v1760_v32  ;;  %v1493_v53 = vrot.slane %v1479_v50, %v2226_v15  ;;  %v1494_v41 = vcombine.high %v1486_v51, %v1486_v51  ;;  %v1502_v54 = vrot.slane %v1486_v51, %v2226_v15 }
 0x34a   : > { %1853 = vst [vmem:[%s2375_s11 + $0x28] sm:$0x1f] %v1761_v52  ;;  %v1495_v16 = vcombine.high %v1493_v53, %v1493_v53  ;;  %v1509_v55 = vrot.slane %v1493_v53, %v2226_v15  ;;  %v1516_v22 = vrot.slane %v1494_v41, %v2226_v15  ;;  %v1524_v56 = vcombine.high %v1502_v54, %v1502_v54 }
 0x34c   : > { %v1523_v57 = vrot.slane %v1495_v16, %v2226_v15  ;;  %v1525_v37 = vcombine.high %v1509_v55, %v1509_v55  ;;  %v1526_v58 = vcombine.high %v1516_v22, %v1516_v22  ;;  %v1763_v59 = vcombine.low %v1502_v54, %v1516_v22 }
 0x34d   : > { %v1784_v61 = vrot.slane %v1524_v56, %v2226_v15 }
 0x34e   : > { %v1527_v62 = vcombine.high %v1523_v57, %v1523_v57  ;;  %v1777_v63 = vrot.slane %v1763_v59, %v2226_v15  ;;  %v1801_v20 = vcombine.low %v1526_v58, %v1509_v55  ;;  %v1802_v0 = vcombine.low %v1523_v57, %v1525_v37 }
 0x34f   : > { %v1799_v7 = vrot.slane %v1784_v61, %v2226_v15 }
 0x350   : > { %v1785_v2 = vcombine.low %v1770_v60, %v1777_v63  ;;  %v1809_v3 = vrot.slane %v1801_v20, %v2226_v15  ;;  %v1816_v4 = vrot.slane %v1802_v0, %v2226_v15  ;;  %v1823_v5 = vrot.slane %v1527_v62, %v2226_v15 }
 0x352   : > { %v1792_v6 = vrot.slane %v1785_v2, %v2226_v15  ;;  %v1824_v8 = vcombine.low %v1809_v3, %v1816_v4  ;;  %v1838_v11 = vrot.slane %v1823_v5, %v2226_v15 }
 0x354   : > { %v1800_v9 = vcombine.low %v1792_v6, %v1799_v7  ;;  %v1831_v10 = vrot.slane %v1824_v8, %v2226_v15 }
 0x356   : > { %v1839_v12 = vcombine.low %v1831_v10, %v1838_v11  ;;  %1854 = vst [vmem:[%s2375_s11 + $0x30] sm:$0x1f] %v1800_v9 }
 0x358   : > { %1855 = vst [vmem:[%s2375_s11 + $0x38] sm:$0x1f] %v1839_v12 }
 0x359 PF: > { %s17_s26 = sadd.s32 1, %s2119_s26   ;;  %s2457_s24 = smov %s2115_s25 }
 0x35a   : > { %p14_p5 = scmp.ge.s32.totalorder %s17_s26, 4   ;;  %s2458_s25 = smov %s2460_s27 }
 0x35c   :  { %16 = sbr.rel (!%p14_p5) target bundleno = 2 (0x2), region = 81 }

</bundles_post_ra>
